<compile_context>
chip_gen: v7x
topology: tpu7x:2x2x1
jax: 0.10.0
libtpu: 0.0.40
codegen_flags: <defaults>
</compile_context>

<pallas_src>
from functools import partial

import jax
import jax.numpy as jnp
from jax.experimental import pallas as pl
from jax.experimental.pallas import tpu as pltpu

EPS = 1e-5


def _fused_kernel(x_ref, w1_ref, g1_ref, b1_ref, w2_ref, g2_ref, b2_ref,
                  o_ref, xp_ref, y2_ref, *, N, H, W, C, G, KH, KW):
    """One grid step = one conv group.

    x_ref : (1, N, H, W, Cg) bf16   this group's input (BlockSpec-streamed)
    w1_ref: (1, KH*KW, Cg, Cg) bf16 this group's 3x3 weights, tap-major
    g1/b1 : (1, 1, Cg)  f32         BN1 affine params of this group
    w2_ref: (1, Cg, Cp) bf16        1x1 weights rows of this input group
    g2/b2 : (1, Cp)     f32         BN2 affine params (channel-padded)
    o_ref : (NHW, Cp)   f32         output slab (written at last group)
    xp_ref: (N, H+2, W, Cg) bf16    scratch: H-padded input of current group
    y2_ref: (NHW, Cp)   f32         scratch: conv2 accumulator across groups
    """
    Cg = C // G
    NHW = N * H * W
    inv_nhw = 1.0 / NHW
    g = pl.program_id(0)

    # Zero only the two H-pad border rows, once; they stay zero for every group.
    @pl.when(g == 0)
    def _init_pad():
        zrow = jnp.zeros((N, 1, W, Cg), dtype=xp_ref.dtype)
        xp_ref[:, 0:1] = zrow
        xp_ref[:, H + 1:H + 2] = zrow

    # Interior <- this group's (bf16) input.
    xp_ref[:, 1:H + 1] = x_ref[0]

    # Column-validity masks for the two W-shifted tap columns.
    w_ids = jax.lax.broadcasted_iota(jnp.int32, (N, H, W, 1), 2).reshape(NHW, 1)
    valid = {-1: w_ids >= 1, 1: w_ids <= W - 2}

    # The three kh-shifted slabs: slab-granular slices of the H-padded scratch.
    slabs = [xp_ref[:, kh:kh + H].reshape(NHW, Cg) for kh in range(KH)]

    # ---- grouped 3x3 conv: 9 per-tap matmuls (bf16 x bf16 -> f32).  The W
    #      shift is applied to the f32 output (1 roll + 1 mask per dw) instead
    #      of building strided input windows.
    acc = None
    for kw in range(KW):
        dw = kw - 1
        u = None
        for kh in range(KH):
            t = jnp.dot(slabs[kh], w1_ref[0, kh * KW + kw],
                        preferred_element_type=jnp.float32)
            u = t if u is None else u + t
        if dw != 0:
            u = pltpu.roll(u, (-dw) % NHW, 0)        # f32 sublane rotate (XLU)
            u = jnp.where(valid[dw], u, 0.0)         # zero the wrapped column
        acc = u if acc is None else acc + u

    # ---- BatchNorm #1 (training-mode batch stats, two-pass) + ReLU ----
    m1 = jnp.sum(acc, axis=0, keepdims=True) * inv_nhw
    d1 = acc - m1
    v1 = jnp.sum(d1 * d1, axis=0, keepdims=True) * inv_nhw
    s1 = jax.lax.rsqrt(v1 + EPS) * g1_ref[0]
    y1r = jnp.maximum(d1 * s1 + b1_ref[0], 0.0)

    # ---- 1x1 conv: per-group partial product, accumulated across groups ----
    part = jnp.dot(y1r.astype(jnp.bfloat16), w2_ref[0],
                   preferred_element_type=jnp.float32)

    @pl.when(g == 0)
    def _first():
        y2_ref[...] = part

    @pl.when(g > 0)
    def _accum():
        y2_ref[...] = y2_ref[...] + part

    # ---- BatchNorm #2 + lane-dense output store on the last group ----
    @pl.when(g == G - 1)
    def _finalize():
        y2 = y2_ref[...]
        m2 = jnp.sum(y2, axis=0, keepdims=True) * inv_nhw
        d2 = y2 - m2
        v2 = jnp.sum(d2 * d2, axis=0, keepdims=True) * inv_nhw
        s2 = jax.lax.rsqrt(v2 + EPS) * g2_ref[...]
        o_ref[...] = (d2 * s2 + b2_ref[...]).astype(o_ref.dtype)


def _nbytes(shape, itemsize):
    n = itemsize
    for s in shape:
        n *= s
    return n


@jax.jit
def forward_nchw(x_nchw, w1, g1, b1, w2, g2, b2):
    """PyTorch-style entry point: NCHW in, NCHW out.

    w1: (G, KH, KW, Cg_in, Cg_out)  grouped 3x3 conv weights
    w2: (Cin, Cout)                 1x1 conv weights
    g*/b*: (C,)                     BN affine params
    """
    N, C, H, W = x_nchw.shape
    G, KH, KW, Cg, _ = w1.shape
    assert C == G * Cg
    NHW = N * H * W
    Cp = ((C + 127) // 128) * 128          # lane-dense output channels

    # Single NCHW -> (G, N, H, W, Cg) layout transform + bf16 cast (fused in XLA).
    xg = (x_nchw.reshape(N, G, Cg, H, W)
                .transpose(1, 0, 3, 4, 2)
                .astype(jnp.bfloat16))

    w1p = w1.reshape(G, KH * KW, Cg, Cg).astype(jnp.bfloat16)
    w2p = jnp.pad(w2, ((0, 0), (0, Cp - C))).reshape(G, Cg, Cp).astype(jnp.bfloat16)
    g1p = g1.reshape(G, 1, Cg).astype(jnp.float32)
    b1p = b1.reshape(G, 1, Cg).astype(jnp.float32)
    g2p = jnp.pad(g2, (0, Cp - C)).reshape(1, Cp).astype(jnp.float32)
    b2p = jnp.pad(b2, (0, Cp - C)).reshape(1, Cp).astype(jnp.float32)

    # VMEM budget from actual buffer sizes (double-buffered inputs + resident
    # scratch + temporaries), capped to leave headroom on v7x's 64 MiB.
    resident = (2 * _nbytes((1, N, H, W, Cg), 2)
                + 2 * _nbytes((1, KH * KW, Cg, Cg), 2)
                + 2 * _nbytes((1, Cg, Cp), 2)
                + _nbytes((N, H + 2, W, Cg), 2)        # padded-input scratch
                + _nbytes((NHW, Cp), 4)                # y2 accumulator
                + _nbytes((NHW, Cp), 4)                # output block
                + 6 * _nbytes((NHW, Cg), 4)            # conv1/BN1 temporaries
                + 2 * _nbytes((NHW, Cp), 4))           # conv2/BN2 temporaries
    vmem_limit = int(min(56 * 1024 * 1024, max(8 * 1024 * 1024, 2 * resident)))

    kernel = partial(_fused_kernel, N=N, H=H, W=W, C=C, G=G, KH=KH, KW=KW)

    grid_spec = pltpu.PrefetchScalarGridSpec(
        num_scalar_prefetch=0,
        grid=(G,),
        in_specs=[
            pl.BlockSpec((1, N, H, W, Cg), lambda g: (g, 0, 0, 0, 0)),
            pl.BlockSpec((1, KH * KW, Cg, Cg), lambda g: (g, 0, 0, 0)),
            pl.BlockSpec((1, 1, Cg), lambda g: (g, 0, 0)),
            pl.BlockSpec((1, 1, Cg), lambda g: (g, 0, 0)),
            pl.BlockSpec((1, Cg, Cp), lambda g: (g, 0, 0)),
            pl.BlockSpec((1, Cp), lambda g: (0, 0)),
            pl.BlockSpec((1, Cp), lambda g: (0, 0)),
        ],
        out_specs=pl.BlockSpec((NHW, Cp), lambda g: (0, 0)),
        scratch_shapes=[
            pltpu.VMEM((N, H + 2, W, Cg), jnp.bfloat16),   # H-padded input
            pltpu.VMEM((NHW, Cp), jnp.float32),            # conv2 accumulator
        ],
    )

    y2d = pl.pallas_call(
        kernel,
        out_shape=jax.ShapeDtypeStruct((NHW, Cp), jnp.float32),
        grid_spec=grid_spec,
        compiler_params=pltpu.CompilerParams(
            dimension_semantics=("arbitrary",),
            vmem_limit_bytes=vmem_limit),
    )(xg, w1p, g1p, b1p, w2p, g2p, b2p)

    return y2d[:, :C].reshape(N, H, W, C).transpose(0, 3, 1, 2)


def reference_nchw(x_nchw, w1, g1, b1, w2, g2, b2):
    """Pure-JAX fp32 reference reproducing the PyTorch forward (training-mode BN)."""
    x = jnp.transpose(x_nchw, (0, 2, 3, 1))
    G, KH, KW, Cg, _ = w1.shape
    C = G * Cg
    w_hwio = jnp.transpose(w1, (1, 2, 3, 0, 4)).reshape(KH, KW, Cg, C)
    y1 = jax.lax.conv_general_dilated(
        x, w_hwio, window_strides=(1, 1), padding=((1, 1), (1, 1)),
        dimension_numbers=('NHWC', 'HWIO', 'NHWC'), feature_group_count=G)

    def bn(y, gamma, beta):
        m = jnp.mean(y, axis=(0, 1, 2), keepdims=True)
        v = jnp.mean((y - m) ** 2, axis=(0, 1, 2), keepdims=True)
        return (y - m) * jax.lax.rsqrt(v + EPS) * gamma + beta

    y1 = jnp.maximum(bn(y1, g1, b1), 0.0)
    y2 = jnp.einsum('nhwc,cd->nhwd', y1, w2)
    y2 = bn(y2, g2, b2)
    return jnp.transpose(y2, (0, 3, 1, 2))


if __name__ == "__main__":
    # Small shapes consistent with the module: groups=2, 3x3 pad-1 conv, 1x1 conv.
    # (Original module uses C=336, 56x56; scaled to C=16, 16x16, keeping groups=2.)
    N, C, H, W, G = 2, 16, 16, 16, 2
    Cg = C // G

    key = jax.random.PRNGKey(0)
    ks = jax.random.split(key, 7)
    x = jax.random.normal(ks[0], (N, C, H, W), jnp.float32)
    w1 = 0.1 * jax.random.normal(ks[1], (G, 3, 3, Cg, Cg), jnp.float32)
    g1 = 1.0 + 0.1 * jax.random.normal(ks[2], (C,), jnp.float32)
    b1 = 0.1 * jax.random.normal(ks[3], (C,), jnp.float32)
    w2 = 0.1 * jax.random.normal(ks[4], (C, C), jnp.float32)
    g2 = 1.0 + 0.1 * jax.random.normal(ks[5], (C,), jnp.float32)
    b2 = 0.1 * jax.random.normal(ks[6], (C,), jnp.float32)

    out = forward_nchw(x, w1, g1, b1, w2, g2, b2)
    out = jax.block_until_ready(out)
    assert out.shape == (N, C, H, W)

    ref = reference_nchw(x, w1, g1, b1, w2, g2, b2)
    err = float(jnp.max(jnp.abs(out - ref)))
    # bf16 MXU operands (fp32 accumulation) give ~1e-2-level rounding on the
    # BN-normalized (unit-variance) output vs the pure-fp32 reference.
    if not (err < 3e-2):
        raise AssertionError(
            f"Pallas kernel mismatch vs reference, max abs err {err:e}")

    print("KERNEL_OK")
</pallas_src>

<mosaic_0001>
module attributes {stable_mosaic.version = 11 : i64} {
  func.func @_fused_kernel(%arg0: i32, %arg1: memref<1x2x16x16x8xbf16, #tpu.memory_space<vmem>>, %arg2: memref<1x9x8x8xbf16, #tpu.memory_space<vmem>>, %arg3: memref<1x1x8xf32, #tpu.memory_space<vmem>>, %arg4: memref<1x1x8xf32, #tpu.memory_space<vmem>>, %arg5: memref<1x8x128xbf16, #tpu.memory_space<vmem>>, %arg6: memref<1x128xf32, #tpu.memory_space<vmem>>, %arg7: memref<1x128xf32, #tpu.memory_space<vmem>>, %arg8: memref<512x128xf32, #tpu.memory_space<vmem>>, %arg9: memref<2x18x16x8xbf16, #tpu.memory_space<vmem>>, %arg10: memref<512x128xf32, #tpu.memory_space<vmem>>) attributes {dimension_semantics = [#tpu.dimension_semantics<arbitrary>], iteration_bounds = array<i64: 2>, scalar_prefetch = 0 : i64, scratch_operands = 2 : i64, tpu.core_type = #tpu.core_type<tc>, window_params = [{transform_indices = @transform_0, window_bounds = array<i64: 1, 2, 16, 16, 8>}, {transform_indices = @transform_1, window_bounds = array<i64: 1, 9, 8, 8>}, {transform_indices = @transform_2, window_bounds = array<i64: 1, 1, 8>}, {transform_indices = @transform_3, window_bounds = array<i64: 1, 1, 8>}, {transform_indices = @transform_4, window_bounds = array<i64: 1, 8, 128>}, {pipeline_mode = #tpu.pipeline_mode<synchronous>, transform_indices = @transform_5, window_bounds = array<i64: 1, 128>}, {pipeline_mode = #tpu.pipeline_mode<synchronous>, transform_indices = @transform_6, window_bounds = array<i64: 1, 128>}, {pipeline_mode = #tpu.pipeline_mode<synchronous>, transform_indices = @transform_7, window_bounds = array<i64: 512, 128>}]} {
    %c0_i32 = arith.constant 0 : i32
    %0 = arith.cmpi eq, %arg0, %c0_i32 : i32
    %1 = arith.extui %0 : i1 to i32
    %c0_i32_0 = arith.constant 0 : i32
    %2 = arith.cmpi ne, %1, %c0_i32_0 : i32
    scf.if %2 {
      %cst_82 = arith.constant 0.000000e+00 : bf16
      %101 = vector.broadcast %cst_82 : bf16 to vector<2x1x16x8xbf16>
      %c0_83 = arith.constant 0 : index
      %c0_84 = arith.constant 0 : index
      %c0_85 = arith.constant 0 : index
      %c0_86 = arith.constant 0 : index
      %102 = vector.load %arg9[%c0_83, %c0_84, %c0_85, %c0_86] : memref<2x18x16x8xbf16, #tpu.memory_space<vmem>>, vector<2x1x16x8xbf16>
      tpu.vector_store %arg9[%c0_83, %c0_84, %c0_85, %c0_86], %101 {strides = array<i32>} : memref<2x18x16x8xbf16, #tpu.memory_space<vmem>>, vector<2x1x16x8xbf16>,
      %c0_87 = arith.constant 0 : index
      %c17 = arith.constant 17 : index
      %c0_88 = arith.constant 0 : index
      %c0_89 = arith.constant 0 : index
      %103 = vector.load %arg9[%c0_87, %c17, %c0_88, %c0_89] : memref<2x18x16x8xbf16, #tpu.memory_space<vmem>>, vector<2x1x16x8xbf16>
      tpu.vector_store %arg9[%c0_87, %c17, %c0_88, %c0_89], %101 {strides = array<i32>} : memref<2x18x16x8xbf16, #tpu.memory_space<vmem>>, vector<2x1x16x8xbf16>,
    } else {
    }
    %c0 = arith.constant 0 : index
    %c0_1 = arith.constant 0 : index
    %c0_2 = arith.constant 0 : index
    %c0_3 = arith.constant 0 : index
    %c0_4 = arith.constant 0 : index
    %3 = vector.load %arg1[%c0, %c0_1, %c0_2, %c0_3, %c0_4] : memref<1x2x16x16x8xbf16, #tpu.memory_space<vmem>>, vector<1x2x16x16x8xbf16>
    %4 = vector.shape_cast %3 : vector<1x2x16x16x8xbf16> to vector<2x16x16x8xbf16>
    %c0_5 = arith.constant 0 : index
    %c1 = arith.constant 1 : index
    %c0_6 = arith.constant 0 : index
    %c0_7 = arith.constant 0 : index
    %5 = vector.load %arg9[%c0_5, %c1, %c0_6, %c0_7] : memref<2x18x16x8xbf16, #tpu.memory_space<vmem>>, vector<2x16x16x8xbf16>
    tpu.vector_store %arg9[%c0_5, %c1, %c0_6, %c0_7], %4 {strides = array<i32>} : memref<2x18x16x8xbf16, #tpu.memory_space<vmem>>, vector<2x16x16x8xbf16>,
    %6 = tpu.iota {dimensions = array<i32: 2>} : vector<2x16x16x1xi32>
    %7 = vector.shape_cast %6 : vector<2x16x16x1xi32> to vector<512x1xi32>
    %c1_i32 = arith.constant 1 : i32
    %8 = vector.broadcast %c1_i32 : i32 to vector<512x1xi32>
    %9 = arith.cmpi sge, %7, %8 : vector<512x1xi32>
    %c14_i32 = arith.constant 14 : i32
    %10 = vector.broadcast %c14_i32 : i32 to vector<512x1xi32>
    %11 = arith.cmpi sle, %7, %10 : vector<512x1xi32>
    %c0_8 = arith.constant 0 : index
    %c0_9 = arith.constant 0 : index
    %c0_10 = arith.constant 0 : index
    %c0_11 = arith.constant 0 : index
    %12 = vector.load %arg9[%c0_8, %c0_9, %c0_10, %c0_11] : memref<2x18x16x8xbf16, #tpu.memory_space<vmem>>, vector<2x16x16x8xbf16>
    %13 = vector.shape_cast %12 : vector<2x16x16x8xbf16> to vector<512x8xbf16>
    %c0_12 = arith.constant 0 : index
    %c1_13 = arith.constant 1 : index
    %c0_14 = arith.constant 0 : index
    %c0_15 = arith.constant 0 : index
    %14 = vector.load %arg9[%c0_12, %c1_13, %c0_14, %c0_15] : memref<2x18x16x8xbf16, #tpu.memory_space<vmem>>, vector<2x16x16x8xbf16>
    %15 = vector.shape_cast %14 : vector<2x16x16x8xbf16> to vector<512x8xbf16>
    %c0_16 = arith.constant 0 : index
    %c2 = arith.constant 2 : index
    %c0_17 = arith.constant 0 : index
    %c0_18 = arith.constant 0 : index
    %16 = vector.load %arg9[%c0_16, %c2, %c0_17, %c0_18] : memref<2x18x16x8xbf16, #tpu.memory_space<vmem>>, vector<2x16x16x8xbf16>
    %17 = vector.shape_cast %16 : vector<2x16x16x8xbf16> to vector<512x8xbf16>
    %c0_19 = arith.constant 0 : index
    %c0_20 = arith.constant 0 : index
    %c0_21 = arith.constant 0 : index
    %c0_22 = arith.constant 0 : index
    %18 = vector.load %arg2[%c0_19, %c0_20, %c0_21, %c0_22] : memref<1x9x8x8xbf16, #tpu.memory_space<vmem>>, vector<1x1x8x8xbf16>
    %19 = vector.shape_cast %18 : vector<1x1x8x8xbf16> to vector<8x8xbf16>
    %cst = arith.constant dense<0.000000e+00> : vector<512x8xf32>
    %20 = tpu.matmul %13, %19, %cst {dimension_numbers = #tpu.dot_dimension_numbers<[1], [0], [0], [1], [0, 0, 1, 1], [], []>} : vector<512x8xbf16>, vector<8x8xbf16>, vector<512x8xf32> -> vector<512x8xf32>
    %c0_23 = arith.constant 0 : index
    %c3 = arith.constant 3 : index
    %c0_24 = arith.constant 0 : index
    %c0_25 = arith.constant 0 : index
    %21 = vector.load %arg2[%c0_23, %c3, %c0_24, %c0_25] : memref<1x9x8x8xbf16, #tpu.memory_space<vmem>>, vector<1x1x8x8xbf16>
    %22 = vector.shape_cast %21 : vector<1x1x8x8xbf16> to vector<8x8xbf16>
    %cst_26 = arith.constant dense<0.000000e+00> : vector<512x8xf32>
    %23 = tpu.matmul %15, %22, %cst_26 {dimension_numbers = #tpu.dot_dimension_numbers<[1], [0], [0], [1], [0, 0, 1, 1], [], []>} : vector<512x8xbf16>, vector<8x8xbf16>, vector<512x8xf32> -> vector<512x8xf32>
    %24 = arith.addf %20, %23 : vector<512x8xf32>
    %c0_27 = arith.constant 0 : index
    %c6 = arith.constant 6 : index
    %c0_28 = arith.constant 0 : index
    %c0_29 = arith.constant 0 : index
    %25 = vector.load %arg2[%c0_27, %c6, %c0_28, %c0_29] : memref<1x9x8x8xbf16, #tpu.memory_space<vmem>>, vector<1x1x8x8xbf16>
    %26 = vector.shape_cast %25 : vector<1x1x8x8xbf16> to vector<8x8xbf16>
    %cst_30 = arith.constant dense<0.000000e+00> : vector<512x8xf32>
    %27 = tpu.matmul %17, %26, %cst_30 {dimension_numbers = #tpu.dot_dimension_numbers<[1], [0], [0], [1], [0, 0, 1, 1], [], []>} : vector<512x8xbf16>, vector<8x8xbf16>, vector<512x8xf32> -> vector<512x8xf32>
    %28 = arith.addf %24, %27 : vector<512x8xf32>
    %c1_i32_31 = arith.constant 1 : i32
    %29 = tpu.dynamic_rotate %28 by %c1_i32_31 dim 0 : vector<512x8xf32>, i32 -> vector<512x8xf32>
    %cst_32 = arith.constant 0.000000e+00 : f32
    %30 = vector.shape_cast %9 : vector<512x1xi1> to vector<512x1xi1>
    %31 = vector.broadcast %30 : vector<512x1xi1> to vector<512x8xi1>
    %32 = vector.broadcast %cst_32 : f32 to vector<512x8xf32>
    %33 = arith.select %31, %29, %32 : vector<512x8xi1>, vector<512x8xf32>
    %c0_33 = arith.constant 0 : index
    %c1_34 = arith.constant 1 : index
    %c0_35 = arith.constant 0 : index
    %c0_36 = arith.constant 0 : index
    %34 = vector.load %arg2[%c0_33, %c1_34, %c0_35, %c0_36] : memref<1x9x8x8xbf16, #tpu.memory_space<vmem>>, vector<1x1x8x8xbf16>
    %35 = vector.shape_cast %34 : vector<1x1x8x8xbf16> to vector<8x8xbf16>
    %cst_37 = arith.constant dense<0.000000e+00> : vector<512x8xf32>
    %36 = tpu.matmul %13, %35, %cst_37 {dimension_numbers = #tpu.dot_dimension_numbers<[1], [0], [0], [1], [0, 0, 1, 1], [], []>} : vector<512x8xbf16>, vector<8x8xbf16>, vector<512x8xf32> -> vector<512x8xf32>
    %c0_38 = arith.constant 0 : index
    %c4 = arith.constant 4 : index
    %c0_39 = arith.constant 0 : index
    %c0_40 = arith.constant 0 : index
    %37 = vector.load %arg2[%c0_38, %c4, %c0_39, %c0_40] : memref<1x9x8x8xbf16, #tpu.memory_space<vmem>>, vector<1x1x8x8xbf16>
    %38 = vector.shape_cast %37 : vector<1x1x8x8xbf16> to vector<8x8xbf16>
    %cst_41 = arith.constant dense<0.000000e+00> : vector<512x8xf32>
    %39 = tpu.matmul %15, %38, %cst_41 {dimension_numbers = #tpu.dot_dimension_numbers<[1], [0], [0], [1], [0, 0, 1, 1], [], []>} : vector<512x8xbf16>, vector<8x8xbf16>, vector<512x8xf32> -> vector<512x8xf32>
    %40 = arith.addf %36, %39 : vector<512x8xf32>
    %c0_42 = arith.constant 0 : index
    %c7 = arith.constant 7 : index
    %c0_43 = arith.constant 0 : index
    %c0_44 = arith.constant 0 : index
    %41 = vector.load %arg2[%c0_42, %c7, %c0_43, %c0_44] : memref<1x9x8x8xbf16, #tpu.memory_space<vmem>>, vector<1x1x8x8xbf16>
    %42 = vector.shape_cast %41 : vector<1x1x8x8xbf16> to vector<8x8xbf16>
    %cst_45 = arith.constant dense<0.000000e+00> : vector<512x8xf32>
    %43 = tpu.matmul %17, %42, %cst_45 {dimension_numbers = #tpu.dot_dimension_numbers<[1], [0], [0], [1], [0, 0, 1, 1], [], []>} : vector<512x8xbf16>, vector<8x8xbf16>, vector<512x8xf32> -> vector<512x8xf32>
    %44 = arith.addf %40, %43 : vector<512x8xf32>
    %45 = arith.addf %33, %44 : vector<512x8xf32>
    %c0_46 = arith.constant 0 : index
    %c2_47 = arith.constant 2 : index
    %c0_48 = arith.constant 0 : index
    %c0_49 = arith.constant 0 : index
    %46 = vector.load %arg2[%c0_46, %c2_47, %c0_48, %c0_49] : memref<1x9x8x8xbf16, #tpu.memory_space<vmem>>, vector<1x1x8x8xbf16>
    %47 = vector.shape_cast %46 : vector<1x1x8x8xbf16> to vector<8x8xbf16>
    %cst_50 = arith.constant dense<0.000000e+00> : vector<512x8xf32>
    %48 = tpu.matmul %13, %47, %cst_50 {dimension_numbers = #tpu.dot_dimension_numbers<[1], [0], [0], [1], [0, 0, 1, 1], [], []>} : vector<512x8xbf16>, vector<8x8xbf16>, vector<512x8xf32> -> vector<512x8xf32>
    %c0_51 = arith.constant 0 : index
    %c5 = arith.constant 5 : index
    %c0_52 = arith.constant 0 : index
    %c0_53 = arith.constant 0 : index
    %49 = vector.load %arg2[%c0_51, %c5, %c0_52, %c0_53] : memref<1x9x8x8xbf16, #tpu.memory_space<vmem>>, vector<1x1x8x8xbf16>
    %50 = vector.shape_cast %49 : vector<1x1x8x8xbf16> to vector<8x8xbf16>
    %cst_54 = arith.constant dense<0.000000e+00> : vector<512x8xf32>
    %51 = tpu.matmul %15, %50, %cst_54 {dimension_numbers = #tpu.dot_dimension_numbers<[1], [0], [0], [1], [0, 0, 1, 1], [], []>} : vector<512x8xbf16>, vector<8x8xbf16>, vector<512x8xf32> -> vector<512x8xf32>
    %52 = arith.addf %48, %51 : vector<512x8xf32>
    %c0_55 = arith.constant 0 : index
    %c8 = arith.constant 8 : index
    %c0_56 = arith.constant 0 : index
    %c0_57 = arith.constant 0 : index
    %53 = vector.load %arg2[%c0_55, %c8, %c0_56, %c0_57] : memref<1x9x8x8xbf16, #tpu.memory_space<vmem>>, vector<1x1x8x8xbf16>
    %54 = vector.shape_cast %53 : vector<1x1x8x8xbf16> to vector<8x8xbf16>
    %cst_58 = arith.constant dense<0.000000e+00> : vector<512x8xf32>
    %55 = tpu.matmul %17, %54, %cst_58 {dimension_numbers = #tpu.dot_dimension_numbers<[1], [0], [0], [1], [0, 0, 1, 1], [], []>} : vector<512x8xbf16>, vector<8x8xbf16>, vector<512x8xf32> -> vector<512x8xf32>
    %56 = arith.addf %52, %55 : vector<512x8xf32>
    %c511_i32 = arith.constant 511 : i32
    %57 = tpu.dynamic_rotate %56 by %c511_i32 dim 0 : vector<512x8xf32>, i32 -> vector<512x8xf32>
    %cst_59 = arith.constant 0.000000e+00 : f32
    %58 = vector.shape_cast %11 : vector<512x1xi1> to vector<512x1xi1>
    %59 = vector.broadcast %58 : vector<512x1xi1> to vector<512x8xi1>
    %60 = vector.broadcast %cst_59 : f32 to vector<512x8xf32>
    %61 = arith.select %59, %57, %60 : vector<512x8xi1>, vector<512x8xf32>
    %62 = arith.addf %45, %61 : vector<512x8xf32>
    %cst_60 = arith.constant dense<0.000000e+00> : vector<8xf32>
    %63 = vector.multi_reduction <add>, %62, %cst_60 [0] : vector<512x8xf32> to vector<8xf32>
    %64 = vector.shape_cast %63 : vector<8xf32> to vector<1x8xf32>
    %cst_61 = arith.constant 0.001953125 : f32
    %65 = vector.broadcast %cst_61 : f32 to vector<1x8xf32>
    %66 = arith.mulf %64, %65 : vector<1x8xf32>
    %67 = vector.broadcast %66 : vector<1x8xf32> to vector<512x8xf32>
    %68 = arith.subf %62, %67 : vector<512x8xf32>
    %69 = arith.mulf %68, %68 : vector<512x8xf32>
    %cst_62 = arith.constant dense<0.000000e+00> : vector<8xf32>
    %70 = vector.multi_reduction <add>, %69, %cst_62 [0] : vector<512x8xf32> to vector<8xf32>
    %71 = vector.shape_cast %70 : vector<8xf32> to vector<1x8xf32>
    %cst_63 = arith.constant 0.001953125 : f32
    %72 = vector.broadcast %cst_63 : f32 to vector<1x8xf32>
    %73 = arith.mulf %71, %72 : vector<1x8xf32>
    %cst_64 = arith.constant 9.99999974E-6 : f32
    %74 = vector.broadcast %cst_64 : f32 to vector<1x8xf32>
    %75 = arith.addf %73, %74 : vector<1x8xf32>
    %76 = math.rsqrt %75 : vector<1x8xf32>
    %c0_65 = arith.constant 0 : index
    %c0_66 = arith.constant 0 : index
    %c0_67 = arith.constant 0 : index
    %77 = vector.load %arg3[%c0_65, %c0_66, %c0_67] : memref<1x1x8xf32, #tpu.memory_space<vmem>>, vector<1x1x8xf32>
    %78 = vector.shape_cast %77 : vector<1x1x8xf32> to vector<1x8xf32>
    %79 = arith.mulf %76, %78 : vector<1x8xf32>
    %80 = vector.broadcast %79 : vector<1x8xf32> to vector<512x8xf32>
    %81 = arith.mulf %68, %80 : vector<512x8xf32>
    %c0_68 = arith.constant 0 : index
    %c0_69 = arith.constant 0 : index
    %c0_70 = arith.constant 0 : index
    %82 = vector.load %arg4[%c0_68, %c0_69, %c0_70] : memref<1x1x8xf32, #tpu.memory_space<vmem>>, vector<1x1x8xf32>
    %83 = vector.shape_cast %82 : vector<1x1x8xf32> to vector<1x8xf32>
    %84 = vector.broadcast %83 : vector<1x8xf32> to vector<512x8xf32>
    %85 = arith.addf %81, %84 : vector<512x8xf32>
    %cst_71 = arith.constant 0.000000e+00 : f32
    %86 = vector.broadcast %cst_71 : f32 to vector<512x8xf32>
    %87 = arith.maximumf %85, %86 : vector<512x8xf32>
    %88 = arith.truncf %87 : vector<512x8xf32> to vector<512x8xbf16>
    %c0_72 = arith.constant 0 : index
    %c0_73 = arith.constant 0 : index
    %c0_74 = arith.constant 0 : index
    %89 = vector.load %arg5[%c0_72, %c0_73, %c0_74] : memref<1x8x128xbf16, #tpu.memory_space<vmem>>, vector<1x8x128xbf16>
    %90 = vector.shape_cast %89 : vector<1x8x128xbf16> to vector<8x128xbf16>
    %cst_75 = arith.constant dense<0.000000e+00> : vector<512x128xf32>
    %91 = tpu.matmul %88, %90, %cst_75 {dimension_numbers = #tpu.dot_dimension_numbers<[1], [0], [0], [1], [0, 0, 1, 1], [], []>} : vector<512x8xbf16>, vector<8x128xbf16>, vector<512x128xf32> -> vector<512x128xf32>
    %c0_i32_76 = arith.constant 0 : i32
    %92 = arith.cmpi eq, %arg0, %c0_i32_76 : i32
    %93 = arith.extui %92 : i1 to i32
    %c0_i32_77 = arith.constant 0 : i32
    %94 = arith.cmpi ne, %93, %c0_i32_77 : i32
    scf.if %94 {
      %c0_82 = arith.constant 0 : index
      %c0_83 = arith.constant 0 : index
      %101 = vector.load %arg10[%c0_82, %c0_83] : memref<512x128xf32, #tpu.memory_space<vmem>>, vector<512x128xf32>
      tpu.vector_store %arg10[%c0_82, %c0_83], %91 {strides = array<i32>} : memref<512x128xf32, #tpu.memory_space<vmem>>, vector<512x128xf32>,
    } else {
    }
    %c0_i32_78 = arith.constant 0 : i32
    %95 = arith.cmpi sgt, %arg0, %c0_i32_78 : i32
    %96 = arith.extui %95 : i1 to i32
    %c0_i32_79 = arith.constant 0 : i32
    %97 = arith.cmpi ne, %96, %c0_i32_79 : i32
    scf.if %97 {
      %c0_82 = arith.constant 0 : index
      %c0_83 = arith.constant 0 : index
      %101 = vector.load %arg10[%c0_82, %c0_83] : memref<512x128xf32, #tpu.memory_space<vmem>>, vector<512x128xf32>
      %102 = arith.addf %101, %91 : vector<512x128xf32>
      %c0_84 = arith.constant 0 : index
      %c0_85 = arith.constant 0 : index
      %103 = vector.load %arg10[%c0_84, %c0_85] : memref<512x128xf32, #tpu.memory_space<vmem>>, vector<512x128xf32>
      tpu.vector_store %arg10[%c0_84, %c0_85], %102 {strides = array<i32>} : memref<512x128xf32, #tpu.memory_space<vmem>>, vector<512x128xf32>,
    } else {
    }
    %c1_i32_80 = arith.constant 1 : i32
    %98 = arith.cmpi eq, %arg0, %c1_i32_80 : i32
    %99 = arith.extui %98 : i1 to i32
    %c0_i32_81 = arith.constant 0 : i32
    %100 = arith.cmpi ne, %99, %c0_i32_81 : i32
    scf.if %100 {
      %c0_82 = arith.constant 0 : index
      %c0_83 = arith.constant 0 : index
      %101 = vector.load %arg10[%c0_82, %c0_83] : memref<512x128xf32, #tpu.memory_space<vmem>>, vector<512x128xf32>
      %cst_84 = arith.constant dense<0.000000e+00> : vector<128xf32>
      %102 = vector.multi_reduction <add>, %101, %cst_84 [0] : vector<512x128xf32> to vector<128xf32>
      %103 = vector.shape_cast %102 : vector<128xf32> to vector<1x128xf32>
      %cst_85 = arith.constant 0.001953125 : f32
      %104 = vector.broadcast %cst_85 : f32 to vector<1x128xf32>
      %105 = arith.mulf %103, %104 : vector<1x128xf32>
      %106 = vector.broadcast %105 : vector<1x128xf32> to vector<512x128xf32>
      %107 = arith.subf %101, %106 : vector<512x128xf32>
      %108 = arith.mulf %107, %107 : vector<512x128xf32>
      %cst_86 = arith.constant dense<0.000000e+00> : vector<128xf32>
      %109 = vector.multi_reduction <add>, %108, %cst_86 [0] : vector<512x128xf32> to vector<128xf32>
      %110 = vector.shape_cast %109 : vector<128xf32> to vector<1x128xf32>
      %cst_87 = arith.constant 0.001953125 : f32
      %111 = vector.broadcast %cst_87 : f32 to vector<1x128xf32>
      %112 = arith.mulf %110, %111 : vector<1x128xf32>
      %cst_88 = arith.constant 9.99999974E-6 : f32
      %113 = vector.broadcast %cst_88 : f32 to vector<1x128xf32>
      %114 = arith.addf %112, %113 : vector<1x128xf32>
      %115 = math.rsqrt %114 : vector<1x128xf32>
      %c0_89 = arith.constant 0 : index
      %c0_90 = arith.constant 0 : index
      %116 = vector.load %arg6[%c0_89, %c0_90] : memref<1x128xf32, #tpu.memory_space<vmem>>, vector<1x128xf32>
      %117 = arith.mulf %115, %116 : vector<1x128xf32>
      %118 = vector.broadcast %117 : vector<1x128xf32> to vector<512x128xf32>
      %119 = arith.mulf %107, %118 : vector<512x128xf32>
      %c0_91 = arith.constant 0 : index
      %c0_92 = arith.constant 0 : index
      %120 = vector.load %arg7[%c0_91, %c0_92] : memref<1x128xf32, #tpu.memory_space<vmem>>, vector<1x128xf32>
      %121 = vector.broadcast %120 : vector<1x128xf32> to vector<512x128xf32>
      %122 = arith.addf %119, %121 : vector<512x128xf32>
      %c0_93 = arith.constant 0 : index
      %c0_94 = arith.constant 0 : index
      %123 = vector.load %arg8[%c0_93, %c0_94] : memref<512x128xf32, #tpu.memory_space<vmem>>, vector<512x128xf32>
      tpu.vector_store %arg8[%c0_93, %c0_94], %122 {strides = array<i32>} : memref<512x128xf32, #tpu.memory_space<vmem>>, vector<512x128xf32>,
    } else {
    }
    return
  }
  func.func @transform_0(%arg0: i32) -> (i32, i32, i32, i32, i32) {
    %c0_i32 = arith.constant 0 : i32
    %c0_i32_0 = arith.constant 0 : i32
    %c0_i32_1 = arith.constant 0 : i32
    %c0_i32_2 = arith.constant 0 : i32
    %c0_i32_3 = arith.constant 0 : i32
    return %arg0, %c0_i32, %c0_i32_0, %c0_i32_1, %c0_i32_2 : i32, i32, i32, i32, i32
  }
  func.func @transform_1(%arg0: i32) -> (i32, i32, i32, i32) {
    %c0_i32 = arith.constant 0 : i32
    %c0_i32_0 = arith.constant 0 : i32
    %c0_i32_1 = arith.constant 0 : i32
    %c0_i32_2 = arith.constant 0 : i32
    return %arg0, %c0_i32, %c0_i32_0, %c0_i32_1 : i32, i32, i32, i32
  }
  func.func @transform_2(%arg0: i32) -> (i32, i32, i32) {
    %c0_i32 = arith.constant 0 : i32
    %c0_i32_0 = arith.constant 0 : i32
    %c0_i32_1 = arith.constant 0 : i32
    return %arg0, %c0_i32, %c0_i32_0 : i32, i32, i32
  }
  func.func @transform_3(%arg0: i32) -> (i32, i32, i32) {
    %c0_i32 = arith.constant 0 : i32
    %c0_i32_0 = arith.constant 0 : i32
    %c0_i32_1 = arith.constant 0 : i32
    return %arg0, %c0_i32, %c0_i32_0 : i32, i32, i32
  }
  func.func @transform_4(%arg0: i32) -> (i32, i32, i32) {
    %c0_i32 = arith.constant 0 : i32
    %c0_i32_0 = arith.constant 0 : i32
    %c0_i32_1 = arith.constant 0 : i32
    return %arg0, %c0_i32, %c0_i32_0 : i32, i32, i32
  }
  func.func @transform_5(%arg0: i32) -> (i32, i32) {
    %c0_i32 = arith.constant 0 : i32
    %c0_i32_0 = arith.constant 0 : i32
    %c0_i32_1 = arith.constant 0 : i32
    return %c0_i32, %c0_i32_0 : i32, i32
  }
  func.func @transform_6(%arg0: i32) -> (i32, i32) {
    %c0_i32 = arith.constant 0 : i32
    %c0_i32_0 = arith.constant 0 : i32
    %c0_i32_1 = arith.constant 0 : i32
    return %c0_i32, %c0_i32_0 : i32, i32
  }
  func.func @transform_7(%arg0: i32) -> (i32, i32) {
    %c0_i32 = arith.constant 0 : i32
    %c0_i32_0 = arith.constant 0 : i32
    %c0_i32_1 = arith.constant 0 : i32
    return %c0_i32, %c0_i32_0 : i32, i32
  }
}

</mosaic_0001>

<bundles_post_ra>
// kernel: forward_nchw.1
= control target key start
LH: loop header
LB: loop body
LE: loop exit
PB: predicated region body
PF: predicated region fallthrough
CT: control target
= control target key end

     0   :  { %s8172_s24 = smov 0   ;;  %s12214_s0 = inlined_call_operand.vmem [shape: bf16[2,2,16,16,8], index: 0, kind: input, shape index: {}]   ;;  %s12215_s1 = inlined_call_operand.vmem [shape: bf16[2,9,8,8], index: 1, kind: input, shape index: {}]   ;;  %s12216_s2 = inlined_call_operand.vmem [shape: f32[2,1,8], index: 2, kind: input, shape index: {}]   ;;  %s12217_s3 = inlined_call_operand.vmem [shape: f32[2,1,8], index: 3, kind: input, shape index: {}]   ;;  %s12218_s4 = inlined_call_operand.vmem [shape: bf16[2,8,128], index: 4, kind: input, shape index: {}]   ;;  %s12219_s5 = inlined_call_operand.vmem [shape: f32[1,128], index: 5, kind: input, shape index: {}]   ;;  %s12220_s6 = inlined_call_operand.vmem [shape: f32[1,128], index: 6, kind: input, shape index: {}]   ;;  %s12221_s7 = inlined_call_operand.vmem [shape: f32[512,128], index: 7, kind: output, shape index: {}]  }
   0x1 LB: > { %s8178_s25 = sadd.s32 4294967295, %s8129_s24   ;;  %p6285_p0 = scmp.ge.s32.totalorder %s8129_s24, 1  ;;  %s8129_s24 = sphi %s8172_s24, %s17_s24  }
   0x2   : > { %p267_p1 = scmp.lt.s32.totalorder %s8129_s24, 3 }
   0x4   : > { %p268_p2 = pnand %p6285_p0, %p267_p1 }
   0x6   : > { %271 = sbr.rel (%p268_p2) target bundleno = 1825 (0x721), region = 48 }
   0xd   : > { %p309_p3 = scmp.lt.s32.totalorder %s8178_s25, 1  ;;  %p6290_p4 = scmp.ne.s32.totalorder %s8178_s25, 0 }
   0xe   : > { %vm334_vm0 = vcmask (!%p6290_p4), 64512   ;;  %v8131_v0 = vmov (!%p6290_p4), 0  }
   0xf   : > { %s8184_s26 = scalar_select %p309_p3, %s8178_s25, 1 }
  0x10   : > { %333 = sbr.rel (%p6290_p4) target bundleno = 23 (0x17), region = 52  ;;  %335 = vst.msk [vmem:[#allocation2] sm:$0xff] (!%p6290_p4), %vm334_vm0, %v8131_v0  ;;  %336 = vst.msk [vmem:[#allocation2 + $0x90] sm:$0xff] (!%p6290_p4), %vm334_vm0, %v8131_v0 }
  0x11   : > { %s6658_s27 = sshll.u32 %s8184_s26, 8  ;;  %s8043_s28 = smul.u32 36, %s8184_s26  ;;  %338 = vst.msk [vmem:[#allocation2 + $0x88] sm:$0xff] (!%p6290_p4), %vm334_vm0, %v8131_v0  ;;  %339 = vst.msk [vmem:[#allocation2 + $0x118] sm:$0xff] (!%p6290_p4), %vm334_vm0, %v8131_v0 }
  0x12   : > { %s8191_s8 = scalar_lea.vmem %s12214_s0, %s6658_s27  ;;  %s321_s11 = scalar_lea.vmem %s12216_s2, %s8184_s26 }
  0x13   : > { %s8200_s14 = scalar_lea.vmem %s12215_s1, %s8043_s28  ;;  %s324_s17 = scalar_lea.vmem %s12217_s3, %s8184_s26 }
  0x14   : > { %s6289_s18 = sshll.u32 %s8184_s26, 2 }
  0x15   : > { %s8210_s21 = scalar_lea.vmem %s12218_s4, %s6289_s18 }
  0x17 PF: > { %v734_v1 = vld [vmem:[%s8200_s14] sm:$0xf]  ;;  %vm833_vm1 = vcmask 1043456   ;;  %v6323_v2 = vld [vmem:[%s8200_s14 + $0xc] sm:$0xf]  ;;  %vm597_vm2 = vcmask 64512  }
  0x18   : > { %8034 = vmatprep.subr.msk.bf16.mxu0 %vm833_vm1, %v734_v1  ;;  %v1223_v3 = vsel %vm833_vm1, %v734_v1, 0  ;;  %8033 = vmatprep.subr.msk.bf16.mxu1 %vm833_vm1, %v6323_v2  ;;  %v835_v4 = vsel %vm833_vm1, %v6323_v2, 0  ;;  %v8221_v5 = vld [vmem:[#allocation2] sm:$0xff]  ;;  %v6388_v6 = vld [vmem:[%s8200_s14 + $0x18] sm:$0xf]  ;;  %v8054_v8 = vld [vmem:[%s8191_s8 + $0x8] sm:$0xff]  }
  0x19   : > { %v8053_v7 = vld [vmem:[%s8191_s8] sm:$0xff]   ;;  %7056 = vmatpush3.bf16.msra.mxu0 %v1223_v3  ;;  %6990 = vmatpush3.bf16.msra.mxu1 %v835_v4  ;;  %599 = vst.msk [vmem:[#allocation2 + $0x10] sm:$0xff] %vm597_vm2, %v8054_v8  ;;  %v8055_v9 = vld [vmem:[%s8191_s8 + $0x10] sm:$0xff]   ;;  %v8056_v10 = vld [vmem:[%s8191_s8 + $0x18] sm:$0xff]   ;;  %v1613_v14 = vsel %vm833_vm1, %v6388_v6, 0 }
  0x1a   : > { %7057 = vmatprep.mubr.msk.bf16.mxu0 %vm597_vm2, %v8221_v5  ;;  %8035 = vmatprep.subr.msk.bf16.mxu0 %vm833_vm1, %v6388_v6  ;;  %598 = vst.msk [vmem:[#allocation2 + $0x8] sm:$0xff] %vm597_vm2, %v8053_v7  ;;  %600 = vst.msk [vmem:[#allocation2 + $0x18] sm:$0xff] %vm597_vm2, %v8055_v9  ;;  %v8057_v11 = vld [vmem:[%s8191_s8 + $0x20] sm:$0xff]   ;;  %v8058_v12 = vld [vmem:[%s8191_s8 + $0x28] sm:$0xff]  }
  0x1b   : > { %601 = vst.msk [vmem:[#allocation2 + $0x20] sm:$0xff] %vm597_vm2, %v8056_v10  ;;  %602 = vst.msk [vmem:[#allocation2 + $0x28] sm:$0xff] %vm597_vm2, %v8057_v11  ;;  %v8059_v13 = vld [vmem:[%s8191_s8 + $0x30] sm:$0xff]   ;;  %v8060_v15 = vld [vmem:[%s8191_s8 + $0x38] sm:$0xff]  }
  0x1c   : > { %603 = vst.msk [vmem:[#allocation2 + $0x30] sm:$0xff] %vm597_vm2, %v8058_v12  ;;  %604 = vst.msk [vmem:[#allocation2 + $0x38] sm:$0xff] %vm597_vm2, %v8059_v13  ;;  %v8061_v17 = vld [vmem:[%s8191_s8 + $0x40] sm:$0xff]   ;;  %v8062_v19 = vld [vmem:[%s8191_s8 + $0x48] sm:$0xff]  }
  0x1d   : > { %605 = vst.msk [vmem:[#allocation2 + $0x40] sm:$0xff] %vm597_vm2, %v8060_v15  ;;  %606 = vst.msk [vmem:[#allocation2 + $0x48] sm:$0xff] %vm597_vm2, %v8061_v17  ;;  %v8063_v21 = vld [vmem:[%s8191_s8 + $0x50] sm:$0xff]   ;;  %v8064_v22 = vld [vmem:[%s8191_s8 + $0x58] sm:$0xff]  }
  0x1e   : > { %607 = vst.msk [vmem:[#allocation2 + $0x50] sm:$0xff] %vm597_vm2, %v8062_v19  ;;  %608 = vst.msk [vmem:[#allocation2 + $0x58] sm:$0xff] %vm597_vm2, %v8063_v21  ;;  %v8065_v23 = vld [vmem:[%s8191_s8 + $0x60] sm:$0xff]   ;;  %v8066_v25 = vld [vmem:[%s8191_s8 + $0x68] sm:$0xff]  }
  0x1f   : > { %609 = vst.msk [vmem:[#allocation2 + $0x60] sm:$0xff] %vm597_vm2, %v8064_v22  ;;  %610 = vst.msk [vmem:[#allocation2 + $0x68] sm:$0xff] %vm597_vm2, %v8065_v23  ;;  %v8067_v27 = vld [vmem:[%s8191_s8 + $0x70] sm:$0xff]   ;;  %v8068_v28 = vld [vmem:[%s8191_s8 + $0x78] sm:$0xff]  }
  0x20   : > { %v8250_v18 = vld [vmem:[#allocation2 + $0x10] sm:$0xff]  ;;  %611 = vst.msk [vmem:[#allocation2 + $0x70] sm:$0xff] %vm597_vm2, %v8066_v25  ;;  %612 = vst.msk [vmem:[#allocation2 + $0x78] sm:$0xff] %vm597_vm2, %v8067_v27  ;;  %v8069_v29 = vld [vmem:[%s8191_s8 + $0x80] sm:$0xff]  }
  0x21   : > { %v8242_v16 = vld [vmem:[#allocation2 + $0x8] sm:$0xff]  ;;  %v8259_v20 = vld [vmem:[#allocation2 + $0x18] sm:$0xff]  ;;  %613 = vst.msk [vmem:[#allocation2 + $0x80] sm:$0xff] %vm597_vm2, %v8068_v28  ;;  %614 = vst.msk [vmem:[#allocation2 + $0x98] sm:$0xff] %vm597_vm2, %v8069_v29 }
  0x22   : > { %6991 = vmatprep.mubr.msk.bf16.mxu1 %vm597_vm2, %v8242_v16  ;;  %7058 = vmatmul.mubr.msk.bf16.vlgmr.msra.gmra.mrb[0].mxu0 %vm597_vm2, %v8242_v16  ;;  %v8269_v24 = vld [vmem:[#allocation2 + $0x20] sm:$0xff]  ;;  %v8272_v26 = vld [vmem:[#allocation2 + $0x28] sm:$0xff]  ;;  %v8071_v31 = vld [vmem:[%s8191_s8 + $0x90] sm:$0xff]  }
  0x23   : > { %7122 = vmatpush3.bf16.msra.mxu0 %v1613_v14  ;;  %6992 = vmatmul.mubr.msk.bf16.vlgmr.msra.gmra.mrb[0].mxu1 %vm597_vm2, %v8250_v18  ;;  %v8070_v30 = vld [vmem:[%s8191_s8 + $0x88] sm:$0xff]   ;;  %v8292_v32 = vld [vmem:[#allocation2 + $0x30] sm:$0xff]  ;;  %v8295_v33 = vld [vmem:[#allocation2 + $0x38] sm:$0xff]  ;;  %616 = vst.msk [vmem:[#allocation2 + $0xa8] sm:$0xff] %vm597_vm2, %v8071_v31 }
  0x24   : > { %7061 = vmatprep.mubr.msk.bf16.mxu0 %vm597_vm2, %v8250_v18  ;;  %6995 = vmatprep.mubr.msk.bf16.mxu1 %vm597_vm2, %v8259_v20  ;;  %615 = vst.msk [vmem:[#allocation2 + $0xa0] sm:$0xff] %vm597_vm2, %v8070_v30  ;;  %v8072_v34 = vld [vmem:[%s8191_s8 + $0x98] sm:$0xff]   ;;  %v8073_v35 = vld [vmem:[%s8191_s8 + $0xa0] sm:$0xff]   ;;  %v8074_v36 = vld [vmem:[%s8191_s8 + $0xa8] sm:$0xff]  }
  0x25   : > { %617 = vst.msk [vmem:[#allocation2 + $0xb0] sm:$0xff] %vm597_vm2, %v8072_v34  ;;  %618 = vst.msk [vmem:[#allocation2 + $0xb8] sm:$0xff] %vm597_vm2, %v8073_v35  ;;  %v8075_v37 = vld [vmem:[%s8191_s8 + $0xb0] sm:$0xff]   ;;  %v8076_v38 = vld [vmem:[%s8191_s8 + $0xb8] sm:$0xff]  }
  0x26   : > { %619 = vst.msk [vmem:[#allocation2 + $0xc0] sm:$0xff] %vm597_vm2, %v8074_v36  ;;  %v8314_v39 = vld [vmem:[#allocation2 + $0x40] sm:$0xff]  ;;  %620 = vst.msk [vmem:[#allocation2 + $0xc8] sm:$0xff] %vm597_vm2, %v8075_v37  ;;  %v8318_v41 = vld [vmem:[#allocation2 + $0x48] sm:$0xff] }
  0x27   : > { %v8077_v40 = vld [vmem:[%s8191_s8 + $0xc0] sm:$0xff]   ;;  %621 = vst.msk [vmem:[#allocation2 + $0xd0] sm:$0xff] %vm597_vm2, %v8076_v38  ;;  %v8078_v42 = vld [vmem:[%s8191_s8 + $0xc8] sm:$0xff]   ;;  %v8079_v43 = vld [vmem:[%s8191_s8 + $0xd0] sm:$0xff]  }
  0x28   : > { %622 = vst.msk [vmem:[#allocation2 + $0xd8] sm:$0xff] %vm597_vm2, %v8077_v40  ;;  %623 = vst.msk [vmem:[#allocation2 + $0xe0] sm:$0xff] %vm597_vm2, %v8078_v42  ;;  %v8080_v44 = vld [vmem:[%s8191_s8 + $0xd8] sm:$0xff]   ;;  %v8081_v45 = vld [vmem:[%s8191_s8 + $0xe0] sm:$0xff]  }
  0x29   : > { %624 = vst.msk [vmem:[#allocation2 + $0xe8] sm:$0xff] %vm597_vm2, %v8079_v43  ;;  %625 = vst.msk [vmem:[#allocation2 + $0xf0] sm:$0xff] %vm597_vm2, %v8080_v44  ;;  %v8082_v46 = vld [vmem:[%s8191_s8 + $0xe8] sm:$0xff]   ;;  %v8083_v47 = vld [vmem:[%s8191_s8 + $0xf0] sm:$0xff]  }
  0x2a   : > { %7062 = vmatmul.mubr.msk.bf16.gmra.mrb[4].mxu0 %vm597_vm2, %v8259_v20  ;;  %626 = vst.msk [vmem:[#allocation2 + $0xf8] sm:$0xff] %vm597_vm2, %v8081_v45  ;;  %v8340_v48 = vld [vmem:[#allocation2 + $0x50] sm:$0xff]  ;;  %627 = vst.msk [vmem:[#allocation2 + $0x100] sm:$0xff] %vm597_vm2, %v8082_v46  ;;  %v8343_v49 = vld [vmem:[#allocation2 + $0x58] sm:$0xff] }
  0x2b   : > { %6996 = vmatmul.mubr.msk.bf16.gmra.mrb[4].mxu1 %vm597_vm2, %v8269_v24  ;;  %7065 = vmatprep.mubr.msk.bf16.mxu0 %vm597_vm2, %v8269_v24  ;;  %628 = vst.msk [vmem:[#allocation2 + $0x108] sm:$0xff] %vm597_vm2, %v8083_v47  ;;  %v8084_v50 = vld [vmem:[%s8191_s8 + $0xf8] sm:$0xff]   ;;  %v6422_v51 = vld [vmem:[%s8200_s14 + $0x10] sm:$0xf]  ;;  %v8353_v53 = vld [vmem:[%s8200_s14 + $0x14] sm:$0xf] }
  0x2c   : > { %6999 = vmatprep.mubr.msk.bf16.mxu1 %vm597_vm2, %v8272_v26  ;;  %8036 = vmatprep.subr.msk.bf16.mxu1 %vm833_vm1, %v6422_v51  ;;  %v2170_v52 = vsel %vm833_vm1, %v6422_v51, 0  ;;  %629 = vst.msk [vmem:[#allocation2 + $0x110] sm:$0xff] %vm597_vm2, %v8084_v50  ;;  %v8364_v54 = vld [vmem:[#allocation2 + $0x60] sm:$0xff]  ;;  %v8366_v55 = vld [vmem:[#allocation2 + $0x68] sm:$0xff]  ;;  %v8376_v56 = vld [vmem:[#allocation2 + $0x70] sm:$0xff]  ;;  %v3180_v14 = vsel %vm833_vm1, %v8353_v53, 0 }
  0x2d   : > { %7188 = vmatpush3.bf16.msra.mxu1 %v2170_v52  ;;  %8039 = vmatprep.subr.msk.bf16.mxu0 %vm833_vm1, %v8353_v53  ;;  %v8378_v57 = vld [vmem:[#allocation2 + $0x78] sm:$0xff]  ;;  %v8388_v58 = vld [vmem:[#allocation2 + $0x80] sm:$0xff]  ;;  %v8390_v59 = vld [vmem:[#allocation2 + $0x90] sm:$0xff] }
  0x2e   : > { %12322 = vst [vmem:[#allocation4_spill] sm:$0xff] %v8388_v58  ;;  %12323 = vst [vmem:[#allocation5_spill] sm:$0xff] %v8390_v59  ;;  %v8392_v60 = vld [vmem:[#allocation2 + $0x98] sm:$0xff]  ;;  %v8402_v61 = vld [vmem:[#allocation2 + $0xa0] sm:$0xff] }
  0x2f   : > { %12324 = vst [vmem:[#allocation6_spill] sm:$0xff] %v8402_v61  ;;  %v8404_v62 = vld [vmem:[#allocation2 + $0xa8] sm:$0xff]  ;;  %v8414_v63 = vld [vmem:[#allocation2 + $0xb0] sm:$0xff]  ;;  %v8416_v0 = vld [vmem:[#allocation2 + $0xb8] sm:$0xff] }
  0x30   : > { %12325 = vst [vmem:[#allocation7_spill] sm:$0xff] %v8414_v63  ;;  %v8426_v1 = vld [vmem:[#allocation2 + $0xc0] sm:$0xff]  ;;  %v8428_v2 = vld [vmem:[#allocation2 + $0xc8] sm:$0xff]  ;;  %v8438_v3 = vld [vmem:[#allocation2 + $0xd0] sm:$0xff] }
  0x31   : > { %v8440_v4 = vld [vmem:[#allocation2 + $0xd8] sm:$0xff]  ;;  %v8450_v6 = vld [vmem:[#allocation2 + $0xe0] sm:$0xff]  ;;  %v8452_v7 = vld [vmem:[#allocation2 + $0xe8] sm:$0xff] }
  0x32   : > { %7066 = vmatmul.mubr.msk.bf16.gmra.mrb[8].mxu0 %vm597_vm2, %v8272_v26  ;;  %v8462_v8 = vld [vmem:[#allocation2 + $0xf0] sm:$0xff]  ;;  %v8464_v9 = vld [vmem:[#allocation2 + $0xf8] sm:$0xff]  ;;  %v8474_v10 = vld [vmem:[#allocation2 + $0x100] sm:$0xff] }
  0x33   : > { %7000 = vmatmul.mubr.msk.bf16.gmra.mrb[8].mxu1 %vm597_vm2, %v8292_v32  ;;  %7069 = vmatprep.mubr.msk.bf16.mxu0 %vm597_vm2, %v8292_v32  ;;  %v8476_v11 = vld [vmem:[#allocation2 + $0x108] sm:$0xff]  ;;  %v8486_v12 = vld [vmem:[#allocation2 + $0x110] sm:$0xff]  ;;  %v6421_v13 = vld [vmem:[%s8200_s14 + $0x4] sm:$0xf] }
  0x34   : > { %7003 = vmatprep.mubr.msk.bf16.mxu1 %vm597_vm2, %v8295_v33  ;;  %8037 = vmatprep.subr.msk.bf16.mxu1 %vm833_vm1, %v6421_v13  ;;  %v2462_v15 = vsel %vm833_vm1, %v6421_v13, 0  ;;  %v8504_v17 = vld [vmem:[%s8200_s14 + $0x8] sm:$0xf]  ;;  %v8662_v44 = vld [vmem:[#allocation2 + $0x118] sm:$0xff] }
  0x35   : > { %v8562_v19 = vld [vmem:[#allocation2 + $0x88] sm:$0xff]  ;;  %12327 = vst [vmem:[#allocation9_spill] sm:$0xff] %v8662_v44  ;;  %v6487_v51 = vld [vmem:[%s8200_s14 + $0x1c] sm:$0xf]  ;;  %v3472_v53 = vsel %vm833_vm1, %v8504_v17, 0 }
  0x36   : > { %12326 = vst [vmem:[#allocation8_spill] sm:$0xff] %v8562_v19 }
  0x3a   : > { %7070 = vmatmul.mubr.msk.bf16.gmra.mrb[12].mxu0 %vm597_vm2, %v8295_v33 }
  0x3b   : > { %7004 = vmatmul.mubr.msk.bf16.gmra.mrb[12].mxu1 %vm597_vm2, %v8314_v39  ;;  %7073 = vmatprep.mubr.msk.bf16.mxu0 %vm597_vm2, %v8314_v39 }
  0x3c   : > { %7007 = vmatprep.mubr.msk.bf16.mxu1 %vm597_vm2, %v8318_v41 }
  0x42   : > { %7074 = vmatmul.mubr.msk.bf16.gmra.mrb[16].mxu0 %vm597_vm2, %v8318_v41 }
  0x43   : > { %7008 = vmatmul.mubr.msk.bf16.gmra.mrb[16].mxu1 %vm597_vm2, %v8340_v48  ;;  %7077 = vmatprep.mubr.msk.bf16.mxu0 %vm597_vm2, %v8340_v48 }
  0x44   : > { %7011 = vmatprep.mubr.msk.bf16.mxu1 %vm597_vm2, %v8343_v49 }
  0x4a   : > { %7078 = vmatmul.mubr.msk.bf16.gmra.mrb[20].mxu0 %vm597_vm2, %v8343_v49 }
  0x4b   : > { %7012 = vmatmul.mubr.msk.bf16.gmra.mrb[20].mxu1 %vm597_vm2, %v8364_v54  ;;  %7081 = vmatprep.mubr.msk.bf16.mxu0 %vm597_vm2, %v8364_v54 }
  0x4c   : > { %7015 = vmatprep.mubr.msk.bf16.mxu1 %vm597_vm2, %v8366_v55 }
  0x52   : > { %7082 = vmatmul.mubr.msk.bf16.gmra.mrb[24].mxu0 %vm597_vm2, %v8366_v55 }
  0x53   : > { %7016 = vmatmul.mubr.msk.bf16.gmra.mrb[24].mxu1 %vm597_vm2, %v8376_v56  ;;  %7085 = vmatprep.mubr.msk.bf16.mxu0 %vm597_vm2, %v8376_v56 }
  0x54   : > { %7019 = vmatprep.mubr.msk.bf16.mxu1 %vm597_vm2, %v8378_v57 }
  0x5a   : > { %7086 = vmatmul.mubr.msk.bf16.gmra.mrb[28].mxu0 %vm597_vm2, %v8378_v57 }
  0x5b   : > { %7020 = vmatmul.mubr.msk.bf16.gmra.mrb[28].mxu1 %vm597_vm2, %v8388_v58  ;;  %7089 = vmatprep.mubr.msk.bf16.mxu0 %vm597_vm2, %v8390_v59 }
  0x5c   : > { %7023 = vmatprep.mubr.msk.bf16.mxu1 %vm597_vm2, %v8392_v60 }
  0x62   : > { %7090 = vmatmul.mubr.msk.bf16.gmra.mrb[32].mxu0 %vm597_vm2, %v8392_v60 }
  0x63   : > { %7024 = vmatmul.mubr.msk.bf16.gmra.mrb[32].mxu1 %vm597_vm2, %v8402_v61  ;;  %7093 = vmatprep.mubr.msk.bf16.mxu0 %vm597_vm2, %v8402_v61 }
  0x64   : > { %7027 = vmatprep.mubr.msk.bf16.mxu1 %vm597_vm2, %v8404_v62 }
  0x6a   : > { %7094 = vmatmul.mubr.msk.bf16.gmra.mrb[36].mxu0 %vm597_vm2, %v8404_v62 }
  0x6b   : > { %7028 = vmatmul.mubr.msk.bf16.gmra.mrb[36].mxu1 %vm597_vm2, %v8414_v63  ;;  %7097 = vmatprep.mubr.msk.bf16.mxu0 %vm597_vm2, %v8414_v63 }
  0x6c   : > { %7031 = vmatprep.mubr.msk.bf16.mxu1 %vm597_vm2, %v8416_v0 }
  0x72   : > { %7098 = vmatmul.mubr.msk.bf16.gmra.mrb[40].mxu0 %vm597_vm2, %v8416_v0 }
  0x73   : > { %7032 = vmatmul.mubr.msk.bf16.gmra.mrb[40].mxu1 %vm597_vm2, %v8426_v1  ;;  %7101 = vmatprep.mubr.msk.bf16.mxu0 %vm597_vm2, %v8426_v1 }
  0x74   : > { %7035 = vmatprep.mubr.msk.bf16.mxu1 %vm597_vm2, %v8428_v2 }
  0x7a   : > { %7102 = vmatmul.mubr.msk.bf16.gmra.mrb[44].mxu0 %vm597_vm2, %v8428_v2 }
  0x7b   : > { %7036 = vmatmul.mubr.msk.bf16.gmra.mrb[44].mxu1 %vm597_vm2, %v8438_v3  ;;  %7105 = vmatprep.mubr.msk.bf16.mxu0 %vm597_vm2, %v8438_v3 }
  0x7c   : > { %7039 = vmatprep.mubr.msk.bf16.mxu1 %vm597_vm2, %v8440_v4 }
  0x82   : > { %7106 = vmatmul.mubr.msk.bf16.gmra.mrb[48].mxu0 %vm597_vm2, %v8440_v4 }
  0x83   : > { %7040 = vmatmul.mubr.msk.bf16.gmra.mrb[48].mxu1 %vm597_vm2, %v8450_v6  ;;  %7109 = vmatprep.mubr.msk.bf16.mxu0 %vm597_vm2, %v8450_v6 }
  0x84   : > { %7043 = vmatprep.mubr.msk.bf16.mxu1 %vm597_vm2, %v8452_v7 }
  0x8a   : > { %7110 = vmatmul.mubr.msk.bf16.gmra.mrb[52].mxu0 %vm597_vm2, %v8452_v7 }
  0x8b   : > { %7044 = vmatmul.mubr.msk.bf16.gmra.mrb[52].mxu1 %vm597_vm2, %v8462_v8  ;;  %7113 = vmatprep.mubr.msk.bf16.mxu0 %vm597_vm2, %v8462_v8 }
  0x8c   : > { %7047 = vmatprep.mubr.msk.bf16.mxu1 %vm597_vm2, %v8464_v9 }
  0x92   : > { %7114 = vmatmul.mubr.msk.bf16.gmra.mrb[56].mxu0 %vm597_vm2, %v8464_v9 }
  0x93   : > { %7048 = vmatmul.mubr.msk.bf16.gmra.mrb[56].mxu1 %vm597_vm2, %v8474_v10  ;;  %7117 = vmatprep.mubr.msk.bf16.mxu0 %vm597_vm2, %v8474_v10 }
  0x94   : > { %7051 = vmatprep.mubr.msk.bf16.mxu1 %vm597_vm2, %v8476_v11 }
  0x9a   : > { %7118 = vmatmul.mubr.msk.bf16.gmra.mrb[60].mxu0 %vm597_vm2, %v8476_v11 }
  0x9b   : > { %7052 = vmatmul.mubr.msk.bf16.gmra.mrb[60].mxu1 %vm597_vm2, %v8486_v12  ;;  %7123 = vmatprep.mubr.msk.bf16.mxu0 %vm597_vm2, %v8250_v18 }
  0x9c   : > { %7189 = vmatprep.mubr.msk.bf16.mxu1 %vm597_vm2, %v8242_v16 }
  0xa2   : > { %7124 = vmatmul.mubr.msk.bf16.vlgmr.msra.gmra.mrb[0].mxu0 %vm597_vm2, %v8259_v20 }
  0xa3   : > { %7386 = vmatpush3.bf16.msra.mxu0 %v3180_v14  ;;  %7190 = vmatmul.mubr.msk.bf16.vlgmr.msra.gmra.mrb[64].mxu1 %vm597_vm2, %v8250_v18 }
  0xa4   : > { %7127 = vmatprep.mubr.msk.bf16.mxu0 %vm597_vm2, %v8269_v24  ;;  %7193 = vmatprep.mubr.msk.bf16.mxu1 %vm597_vm2, %v8259_v20 }
  0xa5   : > { %7254 = vmatpush3.bf16.msra.mxu1 %v2462_v15  ;;  %8040 = vmatprep.subr.msk.bf16.mxu0 %vm833_vm1, %v8504_v17  ;;  %v2756_v15 = vsel %vm833_vm1, %v6487_v51, 0 }
  0xa6   : > { %8038 = vmatprep.subr.msk.bf16.mxu1 %vm833_vm1, %v6487_v51 }
  0xaa   : > { %7128 = vmatmul.mubr.msk.bf16.gmra.mrb[4].mxu0 %vm597_vm2, %v8272_v26 }
  0xab   : > { %7194 = vmatmul.mubr.msk.bf16.gmra.mrb[68].mxu1 %vm597_vm2, %v8269_v24  ;;  %7131 = vmatprep.mubr.msk.bf16.mxu0 %vm597_vm2, %v8292_v32 }
  0xac   : > { %7197 = vmatprep.mubr.msk.bf16.mxu1 %vm597_vm2, %v8272_v26 }
  0xb2   : > { %7132 = vmatmul.mubr.msk.bf16.gmra.mrb[8].mxu0 %vm597_vm2, %v8295_v33 }
  0xb3   : > { %7198 = vmatmul.mubr.msk.bf16.gmra.mrb[72].mxu1 %vm597_vm2, %v8292_v32  ;;  %7135 = vmatprep.mubr.msk.bf16.mxu0 %vm597_vm2, %v8314_v39 }
  0xb4   : > { %7201 = vmatprep.mubr.msk.bf16.mxu1 %vm597_vm2, %v8295_v33 }
  0xba   : > { %7136 = vmatmul.mubr.msk.bf16.gmra.mrb[12].mxu0 %vm597_vm2, %v8318_v41 }
  0xbb   : > { %7202 = vmatmul.mubr.msk.bf16.gmra.mrb[76].mxu1 %vm597_vm2, %v8314_v39  ;;  %7139 = vmatprep.mubr.msk.bf16.mxu0 %vm597_vm2, %v8340_v48 }
  0xbc   : > { %7205 = vmatprep.mubr.msk.bf16.mxu1 %vm597_vm2, %v8318_v41 }
  0xc2   : > { %7140 = vmatmul.mubr.msk.bf16.gmra.mrb[16].mxu0 %vm597_vm2, %v8343_v49 }
  0xc3   : > { %7206 = vmatmul.mubr.msk.bf16.gmra.mrb[80].mxu1 %vm597_vm2, %v8340_v48  ;;  %7143 = vmatprep.mubr.msk.bf16.mxu0 %vm597_vm2, %v8364_v54 }
  0xc4   : > { %7209 = vmatprep.mubr.msk.bf16.mxu1 %vm597_vm2, %v8343_v49 }
  0xca   : > { %7144 = vmatmul.mubr.msk.bf16.gmra.mrb[20].mxu0 %vm597_vm2, %v8366_v55 }
  0xcb   : > { %7210 = vmatmul.mubr.msk.bf16.gmra.mrb[84].mxu1 %vm597_vm2, %v8364_v54  ;;  %7147 = vmatprep.mubr.msk.bf16.mxu0 %vm597_vm2, %v8376_v56 }
  0xcc   : > { %7213 = vmatprep.mubr.msk.bf16.mxu1 %vm597_vm2, %v8366_v55 }
  0xd2   : > { %7148 = vmatmul.mubr.msk.bf16.gmra.mrb[24].mxu0 %vm597_vm2, %v8378_v57 }
  0xd3   : > { %7214 = vmatmul.mubr.msk.bf16.gmra.mrb[88].mxu1 %vm597_vm2, %v8376_v56  ;;  %7151 = vmatprep.mubr.msk.bf16.mxu0 %vm597_vm2, %v8388_v58 }
  0xd4   : > { %7217 = vmatprep.mubr.msk.bf16.mxu1 %vm597_vm2, %v8378_v57 }
  0xda   : > { %7152 = vmatmul.mubr.msk.bf16.gmra.mrb[28].mxu0 %vm597_vm2, %v8562_v19 }
  0xdb   : > { %7218 = vmatmul.mubr.msk.bf16.gmra.mrb[92].mxu1 %vm597_vm2, %v8388_v58  ;;  %7155 = vmatprep.mubr.msk.bf16.mxu0 %vm597_vm2, %v8402_v61 }
  0xdc   : > { %7221 = vmatprep.mubr.msk.bf16.mxu1 %vm597_vm2, %v8392_v60 }
  0xe2   : > { %7156 = vmatmul.mubr.msk.bf16.gmra.mrb[32].mxu0 %vm597_vm2, %v8404_v62 }
  0xe3   : > { %7222 = vmatmul.mubr.msk.bf16.gmra.mrb[96].mxu1 %vm597_vm2, %v8402_v61  ;;  %7159 = vmatprep.mubr.msk.bf16.mxu0 %vm597_vm2, %v8414_v63 }
  0xe4   : > { %7225 = vmatprep.mubr.msk.bf16.mxu1 %vm597_vm2, %v8404_v62 }
  0xea   : > { %7160 = vmatmul.mubr.msk.bf16.gmra.mrb[36].mxu0 %vm597_vm2, %v8416_v0 }
  0xeb   : > { %7226 = vmatmul.mubr.msk.bf16.gmra.mrb[100].mxu1 %vm597_vm2, %v8414_v63  ;;  %7163 = vmatprep.mubr.msk.bf16.mxu0 %vm597_vm2, %v8426_v1 }
  0xec   : > { %7229 = vmatprep.mubr.msk.bf16.mxu1 %vm597_vm2, %v8416_v0 }
  0xf2   : > { %7164 = vmatmul.mubr.msk.bf16.gmra.mrb[40].mxu0 %vm597_vm2, %v8428_v2 }
  0xf3   : > { %7230 = vmatmul.mubr.msk.bf16.gmra.mrb[104].mxu1 %vm597_vm2, %v8426_v1  ;;  %7167 = vmatprep.mubr.msk.bf16.mxu0 %vm597_vm2, %v8438_v3 }
  0xf4   : > { %7233 = vmatprep.mubr.msk.bf16.mxu1 %vm597_vm2, %v8428_v2 }
  0xf6   : > { %v8596_v21 = vpop.f32.mrb[0].mxu1 }
  0xf7   : > { %v8598_v22 = vpop.f32.mrb[1].mxu1 }
  0xf8   : > { %v8600_v23 = vpop.f32.mrb[2].mxu1 }
  0xf9   : > { %v8602_v25 = vpop.f32.mrb[3].mxu1 }
  0xfa   : > { %7168 = vmatmul.mubr.msk.bf16.gmra.mrb[44].mxu0 %vm597_vm2, %v8440_v4 }
  0xfb   : > { %7234 = vmatmul.mubr.msk.bf16.gmra.mrb[108].mxu1 %vm597_vm2, %v8438_v3  ;;  %7171 = vmatprep.mubr.msk.bf16.mxu0 %vm597_vm2, %v8450_v6 }
  0xfc   : > { %7237 = vmatprep.mubr.msk.bf16.mxu1 %vm597_vm2, %v8440_v4 }
  0xfe   : > { %v8612_v27 = vpop.f32.mrb[4].mxu1 }
  0xff   : > { %v8614_v28 = vpop.f32.mrb[5].mxu1 }
 0x100   : > { %v8616_v29 = vpop.f32.mrb[6].mxu1 }
 0x101   : > { %v8618_v30 = vpop.f32.mrb[7].mxu1 }
 0x102   : > { %7172 = vmatmul.mubr.msk.bf16.gmra.mrb[48].mxu0 %vm597_vm2, %v8452_v7 }
 0x103   : > { %7238 = vmatmul.mubr.msk.bf16.gmra.mrb[112].mxu1 %vm597_vm2, %v8450_v6  ;;  %7175 = vmatprep.mubr.msk.bf16.mxu0 %vm597_vm2, %v8462_v8 }
 0x104   : > { %7241 = vmatprep.mubr.msk.bf16.mxu1 %vm597_vm2, %v8452_v7 }
 0x106   : > { %v8628_v31 = vpop.f32.mrb[8].mxu1 }
 0x107   : > { %v8630_v34 = vpop.f32.mrb[9].mxu1 }
 0x108   : > { %v8632_v35 = vpop.f32.mrb[10].mxu1 }
 0x109   : > { %v8634_v36 = vpop.f32.mrb[11].mxu1 }
 0x10a   : > { %7176 = vmatmul.mubr.msk.bf16.gmra.mrb[52].mxu0 %vm597_vm2, %v8464_v9 }
 0x10b   : > { %7242 = vmatmul.mubr.msk.bf16.gmra.mrb[116].mxu1 %vm597_vm2, %v8462_v8  ;;  %7179 = vmatprep.mubr.msk.bf16.mxu0 %vm597_vm2, %v8474_v10 }
 0x10c   : > { %7245 = vmatprep.mubr.msk.bf16.mxu1 %vm597_vm2, %v8464_v9 }
 0x10e   : > { %v8644_v37 = vpop.f32.mrb[12].mxu1 }
 0x10f   : > { %v8646_v38 = vpop.f32.mrb[13].mxu1 }
 0x110   : > { %v8648_v40 = vpop.f32.mrb[14].mxu1 }
 0x111   : > { %v8650_v42 = vpop.f32.mrb[15].mxu1 }
 0x112   : > { %7180 = vmatmul.mubr.msk.bf16.gmra.mrb[56].mxu0 %vm597_vm2, %v8476_v11 }
 0x113   : > { %7246 = vmatmul.mubr.msk.bf16.gmra.mrb[120].mxu1 %vm597_vm2, %v8474_v10  ;;  %7183 = vmatprep.mubr.msk.bf16.mxu0 %vm597_vm2, %v8486_v12 }
 0x114   : > { %7249 = vmatprep.mubr.msk.bf16.mxu1 %vm597_vm2, %v8476_v11 }
 0x116   : > { %v8660_v43 = vpop.f32.mrb[16].mxu1 }
 0x117   : > { %v8664_v45 = vpop.f32.mrb[17].mxu1 }
 0x118   : > { %v8666_v46 = vpop.f32.mrb[18].mxu1 }
 0x119   : > { %v8668_v47 = vpop.f32.mrb[19].mxu1 }
 0x11a   : > { %7184 = vmatmul.mubr.msk.bf16.gmra.mrb[60].mxu0 %vm597_vm2, %v8662_v44 }
 0x11b   : > { %7250 = vmatmul.mubr.msk.bf16.gmra.mrb[124].mxu1 %vm597_vm2, %v8486_v12  ;;  %7387 = vmatprep.mubr.msk.bf16.mxu0 %vm597_vm2, %v8242_v16 }
 0x11c   : > { %7255 = vmatprep.mubr.msk.bf16.mxu1 %vm597_vm2, %v8221_v5  ;;  %v8696_v5 = vld [vmem:[%s8200_s14 + $0x20] sm:$0xf] }
 0x11e   : > { %v8678_v50 = vpop.f32.mrb[20].mxu1 }
 0x11f   : > { %v8681_v52 = vpop.f32.mrb[21].mxu1 }
 0x120   : > { %v8686_v13 = vpop.f32.mrb[22].mxu1 }
 0x121   : > { %v8688_v14 = vpop.f32.mrb[23].mxu1 }
 0x122   : > { %7388 = vmatmul.mubr.msk.bf16.vlgmr.msra.gmra.mrb[64].mxu0 %vm597_vm2, %v8250_v18 }
 0x123   : > { %7452 = vmatpush3.bf16.msra.mxu0 %v3472_v53  ;;  %7256 = vmatmul.mubr.msk.bf16.vlgmr.msra.gmra.mrb[64].mxu1 %vm597_vm2, %v8242_v16 }
 0x124   : > { %7391 = vmatprep.mubr.msk.bf16.mxu0 %vm597_vm2, %v8259_v20  ;;  %7259 = vmatprep.mubr.msk.bf16.mxu1 %vm597_vm2, %v8250_v18 }
 0x125   : > { %7320 = vmatpush3.bf16.msra.mxu1 %v2756_v15  ;;  %8041 = vmatprep.subr.msk.bf16.mxu0 %vm833_vm1, %v8696_v5 }
 0x126   : > { %v8704_v17 = vpop.f32.mrb[24].mxu1 }
 0x127   : > { %v8706_v44 = vpop.f32.mrb[25].mxu1 }
 0x128   : > { %12328 = vst [vmem:[#allocation10_spill] sm:$0xff] %v8706_v44  ;;  %v8708_v51 = vpop.f32.mrb[26].mxu1 }
 0x129   : > { %12329 = vst [vmem:[#allocation11_spill] sm:$0xff] %v8708_v51  ;;  %v8710_v53 = vpop.f32.mrb[27].mxu1 }
 0x12a   : > { %12330 = vst [vmem:[#allocation12_spill] sm:$0xff] %v8710_v53  ;;  %7392 = vmatmul.mubr.msk.bf16.gmra.mrb[68].mxu0 %vm597_vm2, %v8269_v24 }
 0x12b   : > { %7260 = vmatmul.mubr.msk.bf16.gmra.mrb[68].mxu1 %vm597_vm2, %v8259_v20  ;;  %7395 = vmatprep.mubr.msk.bf16.mxu0 %vm597_vm2, %v8272_v26 }
 0x12c   : > { %7263 = vmatprep.mubr.msk.bf16.mxu1 %vm597_vm2, %v8269_v24 }
 0x12e   : > { %v8720_v15 = vpop.f32.mrb[28].mxu1 }
 0x12f   : > { %12331 = vst [vmem:[#allocation13_spill] sm:$0xff] %v8720_v15  ;;  %v8722_v19 = vpop.f32.mrb[29].mxu1 }
 0x130   : > { %12332 = vst [vmem:[#allocation14_spill] sm:$0xff] %v8722_v19  ;;  %v8724_v44 = vpop.f32.mrb[30].mxu1 }
 0x131   : > { %12333 = vst [vmem:[#allocation15_spill] sm:$0xff] %v8724_v44  ;;  %v8726_v51 = vpop.f32.mrb[31].mxu1 }
 0x132   : > { %12334 = vst [vmem:[#allocation16_spill] sm:$0xff] %v8726_v51  ;;  %7396 = vmatmul.mubr.msk.bf16.gmra.mrb[72].mxu0 %vm597_vm2, %v8292_v32 }
 0x133   : > { %7264 = vmatmul.mubr.msk.bf16.gmra.mrb[72].mxu1 %vm597_vm2, %v8272_v26  ;;  %7399 = vmatprep.mubr.msk.bf16.mxu0 %vm597_vm2, %v8295_v33 }
 0x134   : > { %7267 = vmatprep.mubr.msk.bf16.mxu1 %vm597_vm2, %v8292_v32 }
 0x136   : > { %v8736_v53 = vpop.f32.mrb[32].mxu1 }
 0x137   : > { %12335 = vst [vmem:[#allocation17_spill] sm:$0xff] %v8736_v53  ;;  %v8738_v15 = vpop.f32.mrb[33].mxu1 }
 0x138   : > { %12336 = vst [vmem:[#allocation18_spill] sm:$0xff] %v8738_v15  ;;  %v8740_v19 = vpop.f32.mrb[34].mxu1 }
 0x139   : > { %12337 = vst [vmem:[#allocation19_spill] sm:$0xff] %v8740_v19  ;;  %v8742_v44 = vpop.f32.mrb[35].mxu1 }
 0x13a   : > { %12338 = vst [vmem:[#allocation20_spill] sm:$0xff] %v8742_v44  ;;  %7400 = vmatmul.mubr.msk.bf16.gmra.mrb[76].mxu0 %vm597_vm2, %v8314_v39 }
 0x13b   : > { %7268 = vmatmul.mubr.msk.bf16.gmra.mrb[76].mxu1 %vm597_vm2, %v8295_v33  ;;  %7403 = vmatprep.mubr.msk.bf16.mxu0 %vm597_vm2, %v8318_v41 }
 0x13c   : > { %7271 = vmatprep.mubr.msk.bf16.mxu1 %vm597_vm2, %v8314_v39 }
 0x13e   : > { %v8752_v51 = vpop.f32.mrb[36].mxu1 }
 0x13f   : > { %12339 = vst [vmem:[#allocation21_spill] sm:$0xff] %v8752_v51  ;;  %v8754_v53 = vpop.f32.mrb[37].mxu1 }
 0x140   : > { %12340 = vst [vmem:[#allocation22_spill] sm:$0xff] %v8754_v53  ;;  %v8756_v15 = vpop.f32.mrb[38].mxu1 }
 0x141   : > { %12341 = vst [vmem:[#allocation23_spill] sm:$0xff] %v8756_v15  ;;  %v8758_v19 = vpop.f32.mrb[39].mxu1 }
 0x142   : > { %12342 = vst [vmem:[#allocation24_spill] sm:$0xff] %v8758_v19  ;;  %7404 = vmatmul.mubr.msk.bf16.gmra.mrb[80].mxu0 %vm597_vm2, %v8340_v48 }
 0x143   : > { %7272 = vmatmul.mubr.msk.bf16.gmra.mrb[80].mxu1 %vm597_vm2, %v8318_v41  ;;  %7407 = vmatprep.mubr.msk.bf16.mxu0 %vm597_vm2, %v8343_v49 }
 0x144   : > { %7275 = vmatprep.mubr.msk.bf16.mxu1 %vm597_vm2, %v8340_v48 }
 0x146   : > { %v8768_v44 = vpop.f32.mrb[40].mxu1 }
 0x147   : > { %12343 = vst [vmem:[#allocation25_spill] sm:$0xff] %v8768_v44  ;;  %v8770_v51 = vpop.f32.mrb[41].mxu1 }
 0x148   : > { %12344 = vst [vmem:[#allocation26_spill] sm:$0xff] %v8770_v51  ;;  %v8772_v53 = vpop.f32.mrb[42].mxu1 }
 0x149   : > { %12345 = vst [vmem:[#allocation27_spill] sm:$0xff] %v8772_v53  ;;  %v8774_v15 = vpop.f32.mrb[43].mxu1 }
 0x14a   : > { %12346 = vst [vmem:[#allocation28_spill] sm:$0xff] %v8774_v15  ;;  %7408 = vmatmul.mubr.msk.bf16.gmra.mrb[84].mxu0 %vm597_vm2, %v8364_v54 }
 0x14b   : > { %7276 = vmatmul.mubr.msk.bf16.gmra.mrb[84].mxu1 %vm597_vm2, %v8343_v49  ;;  %7411 = vmatprep.mubr.msk.bf16.mxu0 %vm597_vm2, %v8366_v55 }
 0x14c   : > { %7279 = vmatprep.mubr.msk.bf16.mxu1 %vm597_vm2, %v8364_v54 }
 0x14e   : > { %v8784_v19 = vpop.f32.mrb[44].mxu1 }
 0x14f   : > { %12347 = vst [vmem:[#allocation29_spill] sm:$0xff] %v8784_v19  ;;  %v8786_v44 = vpop.f32.mrb[45].mxu1 }
 0x150   : > { %12348 = vst [vmem:[#allocation30_spill] sm:$0xff] %v8786_v44  ;;  %v8788_v51 = vpop.f32.mrb[46].mxu1 }
 0x151   : > { %12349 = vst [vmem:[#allocation31_spill] sm:$0xff] %v8788_v51  ;;  %v8790_v53 = vpop.f32.mrb[47].mxu1 }
 0x152   : > { %12350 = vst [vmem:[#allocation32_spill] sm:$0xff] %v8790_v53  ;;  %7412 = vmatmul.mubr.msk.bf16.gmra.mrb[88].mxu0 %vm597_vm2, %v8376_v56 }
 0x153   : > { %7280 = vmatmul.mubr.msk.bf16.gmra.mrb[88].mxu1 %vm597_vm2, %v8366_v55  ;;  %7415 = vmatprep.mubr.msk.bf16.mxu0 %vm597_vm2, %v8378_v57 }
 0x154   : > { %7283 = vmatprep.mubr.msk.bf16.mxu1 %vm597_vm2, %v8376_v56 }
 0x156   : > { %v8800_v15 = vpop.f32.mrb[48].mxu1 }
 0x157   : > { %12351 = vst [vmem:[#allocation33_spill] sm:$0xff] %v8800_v15  ;;  %v8802_v19 = vpop.f32.mrb[49].mxu1 }
 0x158   : > { %12352 = vst [vmem:[#allocation34_spill] sm:$0xff] %v8802_v19  ;;  %v8804_v44 = vpop.f32.mrb[50].mxu1 }
 0x159   : > { %12353 = vst [vmem:[#allocation35_spill] sm:$0xff] %v8804_v44  ;;  %v8806_v51 = vpop.f32.mrb[51].mxu1 }
 0x15a   : > { %12354 = vst [vmem:[#allocation36_spill] sm:$0xff] %v8806_v51  ;;  %7416 = vmatmul.mubr.msk.bf16.gmra.mrb[92].mxu0 %vm597_vm2, %v8388_v58 }
 0x15b   : > { %7284 = vmatmul.mubr.msk.bf16.gmra.mrb[92].mxu1 %vm597_vm2, %v8378_v57  ;;  %7419 = vmatprep.mubr.msk.bf16.mxu0 %vm597_vm2, %v8392_v60 }
 0x15c   : > { %7287 = vmatprep.mubr.msk.bf16.mxu1 %vm597_vm2, %v8390_v59 }
 0x15e   : > { %v8816_v53 = vpop.f32.mrb[52].mxu1 }
 0x15f   : > { %12355 = vst [vmem:[#allocation37_spill] sm:$0xff] %v8816_v53  ;;  %v8818_v15 = vpop.f32.mrb[53].mxu1 }
 0x160   : > { %12356 = vst [vmem:[#allocation38_spill] sm:$0xff] %v8818_v15  ;;  %v8820_v19 = vpop.f32.mrb[54].mxu1 }
 0x161   : > { %12357 = vst [vmem:[#allocation39_spill] sm:$0xff] %v8820_v19  ;;  %v8822_v44 = vpop.f32.mrb[55].mxu1 }
 0x162   : > { %12358 = vst [vmem:[#allocation40_spill] sm:$0xff] %v8822_v44  ;;  %7420 = vmatmul.mubr.msk.bf16.gmra.mrb[96].mxu0 %vm597_vm2, %v8402_v61 }
 0x163   : > { %7288 = vmatmul.mubr.msk.bf16.gmra.mrb[96].mxu1 %vm597_vm2, %v8392_v60  ;;  %7423 = vmatprep.mubr.msk.bf16.mxu0 %vm597_vm2, %v8404_v62 }
 0x164   : > { %7291 = vmatprep.mubr.msk.bf16.mxu1 %vm597_vm2, %v8402_v61 }
 0x166   : > { %v8832_v59 = vpop.f32.mrb[56].mxu1 }
 0x167   : > { %12359 = vst [vmem:[#allocation41_spill] sm:$0xff] %v8832_v59  ;;  %v8834_v53 = vpop.f32.mrb[57].mxu1 }
 0x168   : > { %12360 = vst [vmem:[#allocation42_spill] sm:$0xff] %v8834_v53  ;;  %v8836_v15 = vpop.f32.mrb[58].mxu1 }
 0x169   : > { %12361 = vst [vmem:[#allocation43_spill] sm:$0xff] %v8836_v15  ;;  %v8838_v19 = vpop.f32.mrb[59].mxu1 }
 0x16a   : > { %12362 = vst [vmem:[#allocation44_spill] sm:$0xff] %v8838_v19  ;;  %7424 = vmatmul.mubr.msk.bf16.gmra.mrb[100].mxu0 %vm597_vm2, %v8414_v63  ;;  %v630_v19 = vlaneseq }
 0x16b   : > { %7292 = vmatmul.mubr.msk.bf16.gmra.mrb[100].mxu1 %vm597_vm2, %v8404_v62  ;;  %7427 = vmatprep.mubr.msk.bf16.mxu0 %vm597_vm2, %v8416_v0 }
 0x16c   : > { %7295 = vmatprep.mubr.msk.bf16.mxu1 %vm597_vm2, %v8414_v63 }
 0x16e   : > { %v8848_v60 = vpop.f32.mrb[60].mxu1 }
 0x16f   : > { %12363 = vst [vmem:[#allocation45_spill] sm:$0xff] %v8848_v60  ;;  %v8850_v59 = vpop.f32.mrb[61].mxu1  ;;  %v8864_v60 = vshrl.u32 %v630_v19, 7 }
 0x170   : > { %12364 = vst [vmem:[#allocation46_spill] sm:$0xff] %v8850_v59  ;;  %v8852_v53 = vpop.f32.mrb[62].mxu1 }
 0x171   : > { %12365 = vst [vmem:[#allocation47_spill] sm:$0xff] %v8852_v53  ;;  %v8854_v15 = vpop.f32.mrb[63].mxu1  ;;  %12367 = vst [vmem:[#allocation49_spill] sm:$0xff] %v8864_v60  ;;  %vm2032_vm3 = vcmp.lt.s32.totalorder %v8864_v60, 1  ;;  %vm633_vm4 = vcmp.ge.s32.totalorder %v8864_v60, 1  ;;  %vm4185_vm5 = vcmp.lt.s32.totalorder %v8864_v60, 7 }
 0x172   : > { %12366 = vst [vmem:[#allocation48_spill] sm:$0xff] %v8854_v15  ;;  %7428 = vmatmul.mubr.msk.bf16.gmra.mrb[104].mxu0 %vm597_vm2, %v8426_v1 }
 0x173   : > { %7296 = vmatmul.mubr.msk.bf16.gmra.mrb[104].mxu1 %vm597_vm2, %v8416_v0  ;;  %7431 = vmatprep.mubr.msk.bf16.mxu0 %vm597_vm2, %v8428_v2 }
 0x174   : > { %7299 = vmatprep.mubr.msk.bf16.mxu1 %vm597_vm2, %v8426_v1 }
 0x175   : > { %v7125_v62 = vpop.f32.mrb[0].mxu0 }
 0x176   : > { %v7649_v53 = vadd.f32 %v7125_v62, %v8596_v21  ;;  %v1649_v59 = vpop.f32.mrb[1].mxu0 }
 0x177   : > { %v8868_v15 = vadd.f32 %v1649_v59, %v8598_v22  ;;  %v7126_v63 = vpop.f32.mrb[2].mxu0 }
 0x178   : > { %v7651_v44 = vadd.f32 %v7126_v63, %v8600_v23  ;;  %v1652_v61 = vpop.f32.mrb[3].mxu0  ;;  %v1970_v51 = vrot.slane %v7649_v53, 7 }
 0x179   : > { %v7652_v0 = vadd.f32 %v1652_v61, %v8602_v25  ;;  %v12228_v1 = vrot.slane %v8868_v15, 7 }
 0x17a   : > { %v1971_v58 = vrot.slane %v7651_v44, 7  ;;  %7432 = vmatmul.mubr.msk.bf16.gmra.mrb[108].mxu0 %vm597_vm2, %v8438_v3 }
 0x17b   : > { %v1969_v19 = vrot.slane %v7652_v0, 7  ;;  %7300 = vmatmul.mubr.msk.bf16.gmra.mrb[108].mxu1 %vm597_vm2, %v8428_v2  ;;  %7435 = vmatprep.mubr.msk.bf16.mxu0 %vm597_vm2, %v8440_v4 }
 0x17c   : > { %7303 = vmatprep.mubr.msk.bf16.mxu1 %vm597_vm2, %v8438_v3  ;;  %v8884_v59 = vsel %vm2032_vm3, %v1970_v51, %v1971_v58 }
 0x17d   : > { %12368 = vst [vmem:[#allocation50_spill] sm:$0xff] %v8884_v59  ;;  %v7129_v61 = vpop.f32.mrb[4].mxu0  ;;  %v8888_v63 = vsel %vm2032_vm3, %v1969_v19, %v1970_v51  ;;  %v8894_v2 = vsel %vm2032_vm3, %v12228_v1, %v1969_v19 }
 0x17e   : > { %v7653_v21 = vadd.f32 %v7129_v61, %v8612_v27  ;;  %v1665_v22 = vpop.f32.mrb[5].mxu0 }
 0x17f   : > { %v7654_v3 = vadd.f32 %v1665_v22, %v8614_v28  ;;  %v7130_v23 = vpop.f32.mrb[6].mxu0 }
 0x180   : > { %v7655_v25 = vadd.f32 %v7130_v23, %v8616_v29  ;;  %v1668_v44 = vpop.f32.mrb[7].mxu0  ;;  %v1974_v51 = vrot.slane %v7653_v21, 7 }
 0x181   : > { %v1972_v53 = vrot.slane %v7654_v3, 7  ;;  %v7656_v62 = vadd.f32 %v1668_v44, %v8618_v30 }
 0x182   : > { %v1975_v0 = vrot.slane %v7655_v25, 7  ;;  %7436 = vmatmul.mubr.msk.bf16.gmra.mrb[112].mxu0 %vm597_vm2, %v8450_v6 }
 0x183   : > { %v1973_v59 = vrot.slane %v7656_v62, 7  ;;  %7304 = vmatmul.mubr.msk.bf16.gmra.mrb[112].mxu1 %vm597_vm2, %v8440_v4  ;;  %7439 = vmatprep.mubr.msk.bf16.mxu0 %vm597_vm2, %v8452_v7  ;;  %v8908_v27 = vsel %vm2032_vm3, %v1971_v58, %v1972_v53 }
 0x184   : > { %7307 = vmatprep.mubr.msk.bf16.mxu1 %vm597_vm2, %v8450_v6  ;;  %v8914_v28 = vsel %vm2032_vm3, %v1974_v51, %v1975_v0 }
 0x185   : > { %v7133_v29 = vpop.f32.mrb[8].mxu0  ;;  %v8918_v30 = vsel %vm2032_vm3, %v1973_v59, %v1974_v51  ;;  %v8922_v4 = vsel %vm2032_vm3, %v1972_v53, %v1973_v59 }
 0x186   : > { %v7657_v19 = vadd.f32 %v7133_v29, %v8628_v31  ;;  %v1681_v58 = vpop.f32.mrb[9].mxu0 }
 0x187   : > { %v7658_v61 = vadd.f32 %v1681_v58, %v8630_v34  ;;  %v7134_v21 = vpop.f32.mrb[10].mxu0 }
 0x188   : > { %v7659_v6 = vadd.f32 %v7134_v21, %v8632_v35  ;;  %v1684_v22 = vpop.f32.mrb[11].mxu0  ;;  %v1978_v25 = vrot.slane %v7657_v19, 7 }
 0x189   : > { %v1976_v3 = vrot.slane %v7658_v61, 7  ;;  %v7660_v23 = vadd.f32 %v1684_v22, %v8634_v36 }
 0x18a   : > { %v1979_v44 = vrot.slane %v7659_v6, 7  ;;  %7440 = vmatmul.mubr.msk.bf16.gmra.mrb[116].mxu0 %vm597_vm2, %v8462_v8 }
 0x18b   : > { %v1977_v62 = vrot.slane %v7660_v23, 7  ;;  %7308 = vmatmul.mubr.msk.bf16.gmra.mrb[116].mxu1 %vm597_vm2, %v8452_v7  ;;  %7443 = vmatprep.mubr.msk.bf16.mxu0 %vm597_vm2, %v8464_v9  ;;  %v8936_v31 = vsel %vm2032_vm3, %v1975_v0, %v1976_v3 }
 0x18c   : > { %7311 = vmatprep.mubr.msk.bf16.mxu1 %vm597_vm2, %v8462_v8  ;;  %v8942_v34 = vsel %vm2032_vm3, %v1978_v25, %v1979_v44 }
 0x18d   : > { %v7137_v35 = vpop.f32.mrb[12].mxu0  ;;  %v8946_v36 = vsel %vm2032_vm3, %v1977_v62, %v1978_v25  ;;  %v8950_v7 = vsel %vm2032_vm3, %v1976_v3, %v1977_v62 }
 0x18e   : > { %v7661_v59 = vadd.f32 %v7137_v35, %v8644_v37  ;;  %v1697_v53 = vpop.f32.mrb[13].mxu0 }
 0x18f   : > { %v7662_v51 = vadd.f32 %v1697_v53, %v8646_v38  ;;  %v7138_v0 = vpop.f32.mrb[14].mxu0 }
 0x190   : > { %v7663_v8 = vadd.f32 %v7138_v0, %v8648_v40  ;;  %v1700_v29 = vpop.f32.mrb[15].mxu0  ;;  %v1982_v61 = vrot.slane %v7661_v59, 7 }
 0x191   : > { %v1980_v19 = vrot.slane %v7662_v51, 7  ;;  %v7664_v58 = vadd.f32 %v1700_v29, %v8650_v42 }
 0x192   : > { %v1983_v21 = vrot.slane %v7663_v8, 7  ;;  %7444 = vmatmul.mubr.msk.bf16.gmra.mrb[120].mxu0 %vm597_vm2, %v8474_v10 }
 0x193   : > { %v1981_v6 = vrot.slane %v7664_v58, 7  ;;  %7312 = vmatmul.mubr.msk.bf16.gmra.mrb[120].mxu1 %vm597_vm2, %v8464_v9  ;;  %7447 = vmatprep.mubr.msk.bf16.mxu0 %vm597_vm2, %v8476_v11  ;;  %v8964_v37 = vsel %vm2032_vm3, %v1979_v44, %v1980_v19 }
 0x194   : > { %7315 = vmatprep.mubr.msk.bf16.mxu1 %vm597_vm2, %v8474_v10  ;;  %v8970_v38 = vsel %vm2032_vm3, %v1982_v61, %v1983_v21 }
 0x195   : > { %v7141_v40 = vpop.f32.mrb[16].mxu0  ;;  %v8974_v42 = vsel %vm2032_vm3, %v1981_v6, %v1982_v61  ;;  %v8978_v9 = vsel %vm2032_vm3, %v1980_v19, %v1981_v6 }
 0x196   : > { %v7665_v22 = vadd.f32 %v7141_v40, %v8660_v43  ;;  %v1713_v3 = vpop.f32.mrb[17].mxu0  ;;  %v8087_v43 = vld [vmem:[#allocation2] sm:$0xff] }
 0x197   : > { %v7666_v23 = vadd.f32 %v1713_v3, %v8664_v45  ;;  %v7142_v25 = vpop.f32.mrb[18].mxu0 }
 0x198   : > { %v7667_v10 = vadd.f32 %v7142_v25, %v8666_v46  ;;  %v1716_v44 = vpop.f32.mrb[19].mxu0  ;;  %v1986_v59 = vrot.slane %v7665_v22, 7 }
 0x199   : > { %v1984_v62 = vrot.slane %v7666_v23, 7  ;;  %v7668_v35 = vadd.f32 %v1716_v44, %v8668_v47 }
 0x19a   : > { %v1987_v53 = vrot.slane %v7667_v10, 7  ;;  %7448 = vmatmul.mubr.msk.bf16.gmra.mrb[124].mxu0 %vm597_vm2, %v8486_v12 }
 0x19b   : > { %v1985_v51 = vrot.slane %v7668_v35, 7  ;;  %7316 = vmatmul.mubr.msk.bf16.gmra.mrb[124].mxu1 %vm597_vm2, %v8476_v11  ;;  %7453 = vmatprep.mubr.msk.bf16.mxu0 %vm597_vm2, %v8087_v43  ;;  %v8991_v45 = vsel %vm2032_vm3, %v1983_v21, %v1984_v62  ;;  %v3766_v21 = vsel %vm833_vm1, %v8696_v5, 0 }
 0x19c   : > { %7321 = vmatprep.mubr.msk.bf16.mxu1 %vm597_vm2, %v8250_v18  ;;  %v8997_v46 = vsel %vm2032_vm3, %v1986_v59, %v1987_v53 }
 0x19d   : > { %v7145_v47 = vpop.f32.mrb[20].mxu0  ;;  %v9001_v12 = vsel %vm2032_vm3, %v1985_v51, %v1986_v59  ;;  %v9005_v11 = vsel %vm2032_vm3, %v1984_v62, %v1985_v51  ;;  %v12370_v62 = vld [vmem:[#allocation11_spill] sm:$0xff]  ;;  %v12371_v51 = vld [vmem:[#allocation12_spill] sm:$0xff] }
 0x19e   : > { %v7669_v0 = vadd.f32 %v7145_v47, %v8678_v50  ;;  %v1729_v8 = vpop.f32.mrb[21].mxu0 }
 0x19f   : > { %v7670_v29 = vadd.f32 %v1729_v8, %v8681_v52  ;;  %v7146_v19 = vpop.f32.mrb[22].mxu0 }
 0x1a0   : > { %v7671_v58 = vadd.f32 %v7146_v19, %v8686_v13  ;;  %v1732_v61 = vpop.f32.mrb[23].mxu0  ;;  %v1990_v22 = vrot.slane %v7669_v0, 7 }
 0x1a1   : > { %v1988_v6 = vrot.slane %v7670_v29, 7  ;;  %v7672_v40 = vadd.f32 %v1732_v61, %v8688_v14 }
 0x1a2   : > { %v1991_v3 = vrot.slane %v7671_v58, 7  ;;  %7454 = vmatmul.mubr.msk.bf16.vlgmr.msra.gmra.mrb[64].mxu0 %vm597_vm2, %v8242_v16 }
 0x1a3   : > { %v1989_v23 = vrot.slane %v7672_v40, 7  ;;  %7518 = vmatpush3.bf16.msra.mxu0 %v3766_v21  ;;  %7322 = vmatmul.mubr.msk.bf16.vlgmr.msra.gmra.mrb[64].mxu1 %vm597_vm2, %v8259_v20  ;;  %v9019_v50 = vsel %vm2032_vm3, %v1987_v53, %v1988_v6  ;;  %v12373_v21 = vld [vmem:[#allocation14_spill] sm:$0xff] }
 0x1a4   : > { %7457 = vmatprep.mubr.msk.bf16.mxu0 %vm597_vm2, %v8250_v18  ;;  %7325 = vmatprep.mubr.msk.bf16.mxu1 %vm597_vm2, %v8269_v24  ;;  %v9027_v52 = vsel %vm2032_vm3, %v1990_v22, %v1991_v3  ;;  %v12369_v18 = vld [vmem:[#allocation10_spill] sm:$0xff] }
 0x1a5   : > { %v7149_v16 = vpop.f32.mrb[24].mxu0  ;;  %v9031_v13 = vsel %vm2032_vm3, %v1989_v23, %v1990_v22  ;;  %v9035_v14 = vsel %vm2032_vm3, %v1988_v6, %v1989_v23  ;;  %v12374_v22 = vld [vmem:[#allocation15_spill] sm:$0xff] }
 0x1a6   : > { %v7673_v5 = vadd.f32 %v7149_v16, %v8704_v17  ;;  %v1745_v25 = vpop.f32.mrb[25].mxu0 }
 0x1a7   : > { %v7674_v10 = vadd.f32 %v1745_v25, %v12369_v18  ;;  %v7150_v44 = vpop.f32.mrb[26].mxu0 }
 0x1a8   : > { %v7675_v35 = vadd.f32 %v7150_v44, %v12370_v62  ;;  %v1748_v59 = vpop.f32.mrb[27].mxu0  ;;  %v1994_v47 = vrot.slane %v7673_v5, 7  ;;  %v12375_v5 = vld [vmem:[#allocation16_spill] sm:$0xff]  ;;  %v9069_v44 = vld [vmem:[#allocation2 + $0x28] sm:$0xff] }
 0x1a9   : > { %v1992_v53 = vrot.slane %v7674_v10, 7  ;;  %v7676_v43 = vadd.f32 %v1748_v59, %v12371_v51 }
 0x1aa   : > { %v1995_v0 = vrot.slane %v7675_v35, 7  ;;  %7458 = vmatmul.mubr.msk.bf16.gmra.mrb[68].mxu0 %vm597_vm2, %v8259_v20 }
 0x1ab   : > { %v1993_v8 = vrot.slane %v7676_v43, 7  ;;  %7326 = vmatmul.mubr.msk.bf16.gmra.mrb[68].mxu1 %vm597_vm2, %v8272_v26  ;;  %7461 = vmatprep.mubr.msk.bf16.mxu0 %vm597_vm2, %v8269_v24  ;;  %v9049_v17 = vsel %vm2032_vm3, %v1991_v3, %v1992_v53  ;;  %v12372_v24 = vld [vmem:[#allocation13_spill] sm:$0xff] }
 0x1ac   : > { %7329 = vmatprep.mubr.msk.bf16.mxu1 %vm597_vm2, %v8292_v32  ;;  %v9055_v29 = vsel %vm2032_vm3, %v1994_v47, %v1995_v0 }
 0x1ad   : > { %v7153_v19 = vpop.f32.mrb[28].mxu0  ;;  %v9059_v20 = vsel %vm2032_vm3, %v1993_v8, %v1994_v47  ;;  %v9063_v26 = vsel %vm2032_vm3, %v1992_v53, %v1993_v8  ;;  %v12377_v8 = vld [vmem:[#allocation18_spill] sm:$0xff] }
 0x1ae   : > { %v7677_v58 = vadd.f32 %v7153_v19, %v12372_v24  ;;  %v1761_v61 = vpop.f32.mrb[29].mxu0 }
 0x1af   : > { %v7678_v6 = vadd.f32 %v1761_v61, %v12373_v21  ;;  %v7154_v40 = vpop.f32.mrb[30].mxu0 }
 0x1b0   : > { %v7679_v3 = vadd.f32 %v7154_v40, %v12374_v22  ;;  %v1764_v23 = vpop.f32.mrb[31].mxu0  ;;  %v1998_v18 = vrot.slane %v7677_v58, 7  ;;  %v12378_v58 = vld [vmem:[#allocation19_spill] sm:$0xff]  ;;  %v12379_v40 = vld [vmem:[#allocation20_spill] sm:$0xff] }
 0x1b1   : > { %v1996_v16 = vrot.slane %v7678_v6, 7  ;;  %v7680_v25 = vadd.f32 %v1764_v23, %v12375_v5 }
 0x1b2   : > { %v1999_v10 = vrot.slane %v7679_v3, 7  ;;  %7462 = vmatmul.mubr.msk.bf16.gmra.mrb[72].mxu0 %vm597_vm2, %v9069_v44 }
 0x1b3   : > { %v1997_v62 = vrot.slane %v7680_v25, 7  ;;  %7330 = vmatmul.mubr.msk.bf16.gmra.mrb[72].mxu1 %vm597_vm2, %v8295_v33  ;;  %7465 = vmatprep.mubr.msk.bf16.mxu0 %vm597_vm2, %v8292_v32  ;;  %v9079_v35 = vsel %vm2032_vm3, %v1995_v0, %v1996_v16  ;;  %v12376_v32 = vld [vmem:[#allocation17_spill] sm:$0xff] }
 0x1b4   : > { %7333 = vmatprep.mubr.msk.bf16.mxu1 %vm597_vm2, %v8314_v39  ;;  %v9085_v59 = vsel %vm2032_vm3, %v1998_v18, %v1999_v10 }
 0x1b5   : > { %v7157_v53 = vpop.f32.mrb[32].mxu0  ;;  %v9089_v51 = vsel %vm2032_vm3, %v1997_v62, %v1998_v18  ;;  %v9093_v43 = vsel %vm2032_vm3, %v1996_v16, %v1997_v62 }
 0x1b6   : > { %v7681_v47 = vadd.f32 %v7157_v53, %v12376_v32  ;;  %v1777_v0 = vpop.f32.mrb[33].mxu0  ;;  %v12381_v32 = vld [vmem:[#allocation22_spill] sm:$0xff] }
 0x1b7   : > { %v7682_v19 = vadd.f32 %v1777_v0, %v12377_v8  ;;  %v7158_v24 = vpop.f32.mrb[34].mxu0  ;;  %v12382_v8 = vld [vmem:[#allocation23_spill] sm:$0xff] }
 0x1b8   : > { %v7683_v61 = vadd.f32 %v7158_v24, %v12378_v58  ;;  %v1780_v21 = vpop.f32.mrb[35].mxu0  ;;  %v2002_v3 = vrot.slane %v7681_v47, 7 }
 0x1b9   : > { %v2000_v6 = vrot.slane %v7682_v19, 7  ;;  %v7684_v22 = vadd.f32 %v1780_v21, %v12379_v40 }
 0x1ba   : > { %v2003_v23 = vrot.slane %v7683_v61, 7  ;;  %7466 = vmatmul.mubr.msk.bf16.gmra.mrb[76].mxu0 %vm597_vm2, %v8295_v33  ;;  %v12383_v61 = vld [vmem:[#allocation24_spill] sm:$0xff] }
 0x1bb   : > { %v2001_v5 = vrot.slane %v7684_v22, 7  ;;  %7334 = vmatmul.mubr.msk.bf16.gmra.mrb[76].mxu1 %vm597_vm2, %v8318_v41  ;;  %7469 = vmatprep.mubr.msk.bf16.mxu0 %vm597_vm2, %v8314_v39  ;;  %v9107_v16 = vsel %vm2032_vm3, %v1999_v10, %v2000_v6  ;;  %v12380_v39 = vld [vmem:[#allocation21_spill] sm:$0xff] }
 0x1bc   : > { %7337 = vmatprep.mubr.msk.bf16.mxu1 %vm597_vm2, %v8340_v48  ;;  %v9113_v25 = vsel %vm2032_vm3, %v2002_v3, %v2003_v23 }
 0x1bd   : > { %v7161_v18 = vpop.f32.mrb[36].mxu0  ;;  %v9117_v33 = vsel %vm2032_vm3, %v2001_v5, %v2002_v3  ;;  %v9121_v62 = vsel %vm2032_vm3, %v2000_v6, %v2001_v5 }
 0x1be   : > { %v7685_v53 = vadd.f32 %v7161_v18, %v12380_v39  ;;  %v1793_v10 = vpop.f32.mrb[37].mxu0 }
 0x1bf   : > { %v7686_v47 = vadd.f32 %v1793_v10, %v12381_v32  ;;  %v7162_v0 = vpop.f32.mrb[38].mxu0  ;;  %v12388_v10 = vld [vmem:[#allocation26_spill] sm:$0xff] }
 0x1c0   : > { %v7687_v19 = vadd.f32 %v7162_v0, %v12382_v8  ;;  %v1796_v24 = vpop.f32.mrb[39].mxu0  ;;  %v2006_v40 = vrot.slane %v7685_v53, 7  ;;  %v12389_v0 = vld [vmem:[#allocation27_spill] sm:$0xff] }
 0x1c1   : > { %v2004_v58 = vrot.slane %v7686_v47, 7  ;;  %v7688_v21 = vadd.f32 %v1796_v24, %v12383_v61  ;;  %v12390_v61 = vld [vmem:[#allocation28_spill] sm:$0xff] }
 0x1c2   : > { %v2007_v22 = vrot.slane %v7687_v19, 7  ;;  %7470 = vmatmul.mubr.msk.bf16.gmra.mrb[80].mxu0 %vm597_vm2, %v8318_v41 }
 0x1c3   : > { %v2005_v3 = vrot.slane %v7688_v21, 7  ;;  %7338 = vmatmul.mubr.msk.bf16.gmra.mrb[80].mxu1 %vm597_vm2, %v8343_v49  ;;  %7473 = vmatprep.mubr.msk.bf16.mxu0 %vm597_vm2, %v8340_v48  ;;  %v9135_v6 = vsel %vm2032_vm3, %v2003_v23, %v2004_v58  ;;  %v12387_v48 = vld [vmem:[#allocation25_spill] sm:$0xff] }
 0x1c4   : > { %12384 = vst [vmem:[#allocation10_spill] sm:$0xff] %v9135_v6  ;;  %7341 = vmatprep.mubr.msk.bf16.mxu1 %vm597_vm2, %v8364_v54  ;;  %v9141_v5 = vsel %vm2032_vm3, %v2006_v40, %v2007_v22 }
 0x1c5   : > { %12385 = vst [vmem:[#allocation11_spill] sm:$0xff] %v9141_v5  ;;  %v7165_v18 = vpop.f32.mrb[40].mxu0  ;;  %v9145_v41 = vsel %vm2032_vm3, %v2005_v3, %v2006_v40  ;;  %v9149_v39 = vsel %vm2032_vm3, %v2004_v58, %v2005_v3 }
 0x1c6   : > { %12386 = vst [vmem:[#allocation12_spill] sm:$0xff] %v9149_v39  ;;  %v7689_v53 = vadd.f32 %v7165_v18, %v12387_v48  ;;  %v1809_v23 = vpop.f32.mrb[41].mxu0 }
 0x1c7   : > { %v7690_v32 = vadd.f32 %v1809_v23, %v12388_v10  ;;  %v7166_v47 = vpop.f32.mrb[42].mxu0  ;;  %v12396_v23 = vld [vmem:[#allocation30_spill] sm:$0xff] }
 0x1c8   : > { %v7691_v8 = vadd.f32 %v7166_v47, %v12389_v0  ;;  %v1812_v19 = vpop.f32.mrb[43].mxu0  ;;  %v2010_v1 = vrot.slane %v7689_v53, 7  ;;  %v12397_v47 = vld [vmem:[#allocation31_spill] sm:$0xff] }
 0x1c9   : > { %v2008_v24 = vrot.slane %v7690_v32, 7  ;;  %v7692_v21 = vadd.f32 %v1812_v19, %v12390_v61  ;;  %v12398_v61 = vld [vmem:[#allocation32_spill] sm:$0xff] }
 0x1ca   : > { %v2011_v5 = vrot.slane %v7691_v8, 7  ;;  %7474 = vmatmul.mubr.msk.bf16.gmra.mrb[84].mxu0 %vm597_vm2, %v8343_v49 }
 0x1cb   : > { %v2009_v40 = vrot.slane %v7692_v21, 7  ;;  %7342 = vmatmul.mubr.msk.bf16.gmra.mrb[84].mxu1 %vm597_vm2, %v8366_v55  ;;  %7477 = vmatprep.mubr.msk.bf16.mxu0 %vm597_vm2, %v8364_v54  ;;  %v9163_v58 = vsel %vm2032_vm3, %v2007_v22, %v2008_v24  ;;  %v12395_v54 = vld [vmem:[#allocation29_spill] sm:$0xff] }
 0x1cc   : > { %12391 = vst [vmem:[#allocation13_spill] sm:$0xff] %v9163_v58  ;;  %7345 = vmatprep.mubr.msk.bf16.mxu1 %vm597_vm2, %v8376_v56  ;;  %v9169_v3 = vsel %vm2032_vm3, %v2010_v1, %v2011_v5 }
 0x1cd   : > { %12392 = vst [vmem:[#allocation14_spill] sm:$0xff] %v9169_v3  ;;  %v7169_v18 = vpop.f32.mrb[44].mxu0  ;;  %v9173_v49 = vsel %vm2032_vm3, %v2009_v40, %v2010_v1  ;;  %v9177_v48 = vsel %vm2032_vm3, %v2008_v24, %v2009_v40  ;;  %v12400_v40 = vld [vmem:[#allocation4_spill] sm:$0xff] }
 0x1ce   : > { %12393 = vst [vmem:[#allocation15_spill] sm:$0xff] %v9173_v49  ;;  %12394 = vst [vmem:[#allocation16_spill] sm:$0xff] %v9177_v48  ;;  %v7693_v53 = vadd.f32 %v7169_v18, %v12395_v54  ;;  %v1825_v22 = vpop.f32.mrb[45].mxu0 }
 0x1cf   : > { %v7694_v10 = vadd.f32 %v1825_v22, %v12396_v23  ;;  %v7170_v32 = vpop.f32.mrb[46].mxu0  ;;  %v12405_v23 = vld [vmem:[#allocation34_spill] sm:$0xff] }
 0x1d0   : > { %v7695_v0 = vadd.f32 %v7170_v32, %v12397_v47  ;;  %v1828_v8 = vpop.f32.mrb[47].mxu0  ;;  %v2014_v3 = vrot.slane %v7693_v53, 7  ;;  %v12406_v47 = vld [vmem:[#allocation35_spill] sm:$0xff] }
 0x1d1   : > { %v2012_v19 = vrot.slane %v7694_v10, 7  ;;  %v7696_v21 = vadd.f32 %v1828_v8, %v12398_v61 }
 0x1d2   : > { %v2015_v58 = vrot.slane %v7695_v0, 7  ;;  %7478 = vmatmul.mubr.msk.bf16.gmra.mrb[88].mxu0 %vm597_vm2, %v8366_v55 }
 0x1d3   : > { %v2013_v1 = vrot.slane %v7696_v21, 7  ;;  %7346 = vmatmul.mubr.msk.bf16.gmra.mrb[88].mxu1 %vm597_vm2, %v8378_v57  ;;  %7481 = vmatprep.mubr.msk.bf16.mxu0 %vm597_vm2, %v8376_v56  ;;  %v9191_v24 = vsel %vm2032_vm3, %v2011_v5, %v2012_v19  ;;  %v12404_v56 = vld [vmem:[#allocation33_spill] sm:$0xff]  ;;  %v12407_v21 = vld [vmem:[#allocation36_spill] sm:$0xff] }
 0x1d4   : > { %12399 = vst [vmem:[#allocation17_spill] sm:$0xff] %v9191_v24  ;;  %7349 = vmatprep.mubr.msk.bf16.mxu1 %vm597_vm2, %v12400_v40  ;;  %v9197_v18 = vsel %vm2032_vm3, %v2014_v3, %v2015_v58 }
 0x1d5   : > { %12401 = vst [vmem:[#allocation18_spill] sm:$0xff] %v9197_v18  ;;  %v7173_v54 = vpop.f32.mrb[48].mxu0  ;;  %v9201_v55 = vsel %vm2032_vm3, %v2013_v1, %v2014_v3  ;;  %v9205_v53 = vsel %vm2032_vm3, %v2012_v19, %v2013_v1  ;;  %v12408_v19 = vld [vmem:[#allocation8_spill] sm:$0xff]  ;;  %v12409_v1 = vld [vmem:[#allocation5_spill] sm:$0xff] }
 0x1d6   : > { %12402 = vst [vmem:[#allocation19_spill] sm:$0xff] %v9201_v55  ;;  %12403 = vst [vmem:[#allocation20_spill] sm:$0xff] %v9205_v53  ;;  %v7697_v22 = vadd.f32 %v7173_v54, %v12404_v56  ;;  %v1841_v5 = vpop.f32.mrb[49].mxu0  ;;  %v12411_v56 = vld [vmem:[#allocation6_spill] sm:$0xff] }
 0x1d7   : > { %v7698_v10 = vadd.f32 %v1841_v5, %v12405_v23  ;;  %v7174_v32 = vpop.f32.mrb[50].mxu0 }
 0x1d8   : > { %v7699_v0 = vadd.f32 %v7174_v32, %v12406_v47  ;;  %v1844_v8 = vpop.f32.mrb[51].mxu0  ;;  %v2018_v18 = vrot.slane %v7697_v22, 7  ;;  %v12416_v47 = vld [vmem:[#allocation38_spill] sm:$0xff] }
 0x1d9   : > { %v2016_v61 = vrot.slane %v7698_v10, 7  ;;  %v7700_v40 = vadd.f32 %v1844_v8, %v12407_v21  ;;  %v12415_v10 = vld [vmem:[#allocation37_spill] sm:$0xff]  ;;  %v12417_v21 = vld [vmem:[#allocation39_spill] sm:$0xff] }
 0x1da   : > { %v2019_v24 = vrot.slane %v7699_v0, 7  ;;  %7482 = vmatmul.mubr.msk.bf16.gmra.mrb[92].mxu0 %vm597_vm2, %v8378_v57 }
 0x1db   : > { %v2017_v3 = vrot.slane %v7700_v40, 7  ;;  %7350 = vmatmul.mubr.msk.bf16.gmra.mrb[92].mxu1 %vm597_vm2, %v12408_v19  ;;  %7485 = vmatprep.mubr.msk.bf16.mxu0 %vm597_vm2, %v12409_v1  ;;  %v9219_v54 = vsel %vm2032_vm3, %v2015_v58, %v2016_v61 }
 0x1dc   : > { %12410 = vst [vmem:[#allocation21_spill] sm:$0xff] %v9219_v54  ;;  %7353 = vmatprep.mubr.msk.bf16.mxu1 %vm597_vm2, %v12411_v56  ;;  %v9225_v22 = vsel %vm2032_vm3, %v2018_v18, %v2019_v24  ;;  %v12418_v56 = vld [vmem:[#allocation40_spill] sm:$0xff] }
 0x1dd   : > { %12412 = vst [vmem:[#allocation22_spill] sm:$0xff] %v9225_v22  ;;  %v7177_v5 = vpop.f32.mrb[52].mxu0  ;;  %v9229_v57 = vsel %vm2032_vm3, %v2017_v3, %v2018_v18  ;;  %v9233_v23 = vsel %vm2032_vm3, %v2016_v61, %v2017_v3  ;;  %v8089_v18 = vld [vmem:[#allocation2 + $0x98] sm:$0xff]  ;;  %v9240_v61 = vld [vmem:[#allocation2 + $0xa8] sm:$0xff]  ;;  %v9244_v3 = vld [vmem:[#allocation2 + $0xa0] sm:$0xff] }
 0x1de   : > { %12413 = vst [vmem:[#allocation23_spill] sm:$0xff] %v9229_v57  ;;  %12414 = vst [vmem:[#allocation24_spill] sm:$0xff] %v9233_v23  ;;  %v7701_v32 = vadd.f32 %v7177_v5, %v12415_v10  ;;  %v1857_v58 = vpop.f32.mrb[53].mxu0  ;;  %v12420_v10 = vld [vmem:[#allocation7_spill] sm:$0xff] }
 0x1df   : > { %v7702_v0 = vadd.f32 %v1857_v58, %v12416_v47  ;;  %v7178_v8 = vpop.f32.mrb[54].mxu0 }
 0x1e0   : > { %v7703_v40 = vadd.f32 %v7178_v8, %v12417_v21  ;;  %v1860_v19 = vpop.f32.mrb[55].mxu0  ;;  %v2022_v54 = vrot.slane %v7701_v32, 7  ;;  %v12425_v21 = vld [vmem:[#allocation42_spill] sm:$0xff] }
 0x1e1   : > { %v2020_v1 = vrot.slane %v7702_v0, 7  ;;  %v7704_v22 = vadd.f32 %v1860_v19, %v12418_v56  ;;  %v12424_v0 = vld [vmem:[#allocation41_spill] sm:$0xff]  ;;  %v12426_v56 = vld [vmem:[#allocation43_spill] sm:$0xff] }
 0x1e2   : > { %v2023_v53 = vrot.slane %v7703_v40, 7  ;;  %7486 = vmatmul.mubr.msk.bf16.gmra.mrb[96].mxu0 %vm597_vm2, %v8089_v18 }
 0x1e3   : > { %v2021_v57 = vrot.slane %v7704_v22, 7  ;;  %7354 = vmatmul.mubr.msk.bf16.gmra.mrb[96].mxu1 %vm597_vm2, %v9240_v61  ;;  %7489 = vmatprep.mubr.msk.bf16.mxu0 %vm597_vm2, %v9244_v3  ;;  %v9250_v5 = vsel %vm2032_vm3, %v2019_v24, %v2020_v1 }
 0x1e4   : > { %12419 = vst [vmem:[#allocation25_spill] sm:$0xff] %v9250_v5  ;;  %7357 = vmatprep.mubr.msk.bf16.mxu1 %vm597_vm2, %v12420_v10  ;;  %v9256_v22 = vsel %vm2032_vm3, %v2022_v54, %v2023_v53 }
 0x1e5   : > { %12421 = vst [vmem:[#allocation26_spill] sm:$0xff] %v9256_v22  ;;  %v7181_v32 = vpop.f32.mrb[56].mxu0  ;;  %v9260_v58 = vsel %vm2032_vm3, %v2021_v57, %v2022_v54  ;;  %v9264_v47 = vsel %vm2032_vm3, %v2020_v1, %v2021_v57  ;;  %v12427_v22 = vld [vmem:[#allocation44_spill] sm:$0xff]  ;;  %v9272_v57 = vld [vmem:[#allocation2 + $0xb8] sm:$0xff]  ;;  %v9276_v1 = vld [vmem:[#allocation2 + $0xb0] sm:$0xff] }
 0x1e6   : > { %12422 = vst [vmem:[#allocation27_spill] sm:$0xff] %v9260_v58  ;;  %12423 = vst [vmem:[#allocation28_spill] sm:$0xff] %v9264_v47  ;;  %v7705_v8 = vadd.f32 %v7181_v32, %v12424_v0  ;;  %v1873_v24 = vpop.f32.mrb[57].mxu0 }
 0x1e7   : > { %v7706_v40 = vadd.f32 %v1873_v24, %v12425_v21  ;;  %v7182_v19 = vpop.f32.mrb[58].mxu0 }
 0x1e8   : > { %v7707_v18 = vadd.f32 %v7182_v19, %v12426_v56  ;;  %v1876_v10 = vpop.f32.mrb[59].mxu0  ;;  %v2026_v55 = vrot.slane %v7705_v8, 7  ;;  %v12431_v19 = vld [vmem:[#allocation46_spill] sm:$0xff] }
 0x1e9   : > { %v2024_v5 = vrot.slane %v7706_v40, 7  ;;  %v7708_v23 = vadd.f32 %v1876_v10, %v12427_v22  ;;  %v9284_v22 = vld [vmem:[#allocation2 + $0xc0] sm:$0xff]  ;;  %v12432_v10 = vld [vmem:[#allocation47_spill] sm:$0xff] }
 0x1ea   : > { %v2027_v48 = vrot.slane %v7707_v18, 7  ;;  %7490 = vmatmul.mubr.msk.bf16.gmra.mrb[100].mxu0 %vm597_vm2, %v9240_v61 }
 0x1eb   : > { %v2025_v54 = vrot.slane %v7708_v23, 7  ;;  %7358 = vmatmul.mubr.msk.bf16.gmra.mrb[100].mxu1 %vm597_vm2, %v9272_v57  ;;  %7493 = vmatprep.mubr.msk.bf16.mxu0 %vm597_vm2, %v9276_v1  ;;  %v9282_v32 = vsel %vm2032_vm3, %v2023_v53, %v2024_v5  ;;  %v12430_v53 = vld [vmem:[#allocation45_spill] sm:$0xff] }
 0x1ec   : > { %12428 = vst [vmem:[#allocation29_spill] sm:$0xff] %v9282_v32  ;;  %7361 = vmatprep.mubr.msk.bf16.mxu1 %vm597_vm2, %v9284_v22  ;;  %v9290_v23 = vsel %vm2032_vm3, %v2026_v55, %v2027_v48 }
 0x1ed   : > { %12429 = vst [vmem:[#allocation30_spill] sm:$0xff] %v9290_v23  ;;  %v7185_v0 = vpop.f32.mrb[60].mxu0  ;;  %v9294_v8 = vsel %vm2032_vm3, %v2025_v54, %v2026_v55  ;;  %v9298_v24 = vsel %vm2032_vm3, %v2024_v5, %v2025_v54  ;;  %v12433_v23 = vld [vmem:[#allocation48_spill] sm:$0xff]  ;;  %v9306_v5 = vld [vmem:[#allocation2 + $0xc8] sm:$0xff] }
 0x1ee   : > { %v7709_v21 = vadd.f32 %v7185_v0, %v12430_v53  ;;  %v1889_v40 = vpop.f32.mrb[61].mxu0  ;;  %v9316_v0 = vld [vmem:[#allocation2 + $0xd0] sm:$0xff]  ;;  %v9364_v53 = vld [vmem:[#allocation2 + $0xf8] sm:$0xff] }
 0x1ef   : > { %v7710_v56 = vadd.f32 %v1889_v40, %v12431_v19  ;;  %v7186_v18 = vpop.f32.mrb[62].mxu0  ;;  %v9376_v40 = vld [vmem:[#allocation2 + $0x108] sm:$0xff]  ;;  %v9382_v19 = vld [vmem:[#allocation2 + $0x110] sm:$0xff] }
 0x1f0   : > { %v7711_v32 = vadd.f32 %v7186_v18, %v12432_v10  ;;  %v1892_v47 = vpop.f32.mrb[63].mxu0  ;;  %v2030_v39 = vrot.slane %v7709_v21, 7  ;;  %v9370_v21 = vld [vmem:[#allocation2 + $0x100] sm:$0xff]  ;;  %v8105_v18 = vld [vmem:[#allocation2 + $0x10] sm:$0xff]  ;;  %v8106_v10 = vld [vmem:[#allocation2 + $0x18] sm:$0xff] }
 0x1f1   : > { %v2028_v58 = vrot.slane %v7710_v56, 7  ;;  %v7712_v49 = vadd.f32 %v1892_v47, %v12433_v23  ;;  %v12434_v47 = vrot.slane %v8868_v15, 7  ;;  %v9340_v15 = vld [vmem:[#allocation2 + $0xd8] sm:$0xff]  ;;  %v12437_v56 = vld [vmem:[#allocation9_spill] sm:$0xff] }
 0x1f2   : > { %v2031_v6 = vrot.slane %v7711_v32, 7  ;;  %7494 = vmatmul.mubr.msk.bf16.gmra.mrb[104].mxu0 %vm597_vm2, %v9272_v57 }
 0x1f3   : > { %v2029_v55 = vrot.slane %v7712_v49, 7  ;;  %7362 = vmatmul.mubr.msk.bf16.gmra.mrb[104].mxu1 %vm597_vm2, %v9306_v5  ;;  %7497 = vmatprep.mubr.msk.bf16.mxu0 %vm597_vm2, %v9284_v22  ;;  %v9314_v54 = vsel %vm2032_vm3, %v2027_v48, %v2028_v58 }
 0x1f4   : > { %7365 = vmatprep.mubr.msk.bf16.mxu1 %vm597_vm2, %v9316_v0  ;;  %v9324_v49 = vsel %vm2032_vm3, %v2031_v6, %v12434_v47  ;;  %v9328_v32 = vsel %vm2032_vm3, %v2030_v39, %v2031_v6  ;;  %v9346_v6 = vld [vmem:[#allocation2 + $0xe0] sm:$0xff]  ;;  %v8108_v47 = vld [vmem:[#allocation2 + $0x30] sm:$0xff] }
 0x1f5   : > { %12435 = vst [vmem:[#allocation31_spill] sm:$0xff] %v9328_v32  ;;  %v9332_v23 = vsel %vm2032_vm3, %v2029_v55, %v2030_v39  ;;  %v9336_v48 = vsel %vm2032_vm3, %v2028_v58, %v2029_v55  ;;  %v9352_v39 = vld [vmem:[#allocation2 + $0xe8] sm:$0xff]  ;;  %v9358_v58 = vld [vmem:[#allocation2 + $0xf0] sm:$0xff]  ;;  %v8107_v55 = vld [vmem:[#allocation2 + $0x20] sm:$0xff] }
 0x1f6   : > { %12436 = vst [vmem:[#allocation32_spill] sm:$0xff] %v9336_v48  ;;  %v8109_v48 = vld [vmem:[#allocation2 + $0x38] sm:$0xff]  ;;  %v8110_v32 = vld [vmem:[#allocation2 + $0x40] sm:$0xff] }
 0x1fa   : > { %7498 = vmatmul.mubr.msk.bf16.gmra.mrb[108].mxu0 %vm597_vm2, %v9306_v5 }
 0x1fb   : > { %7366 = vmatmul.mubr.msk.bf16.gmra.mrb[108].mxu1 %vm597_vm2, %v9340_v15  ;;  %7501 = vmatprep.mubr.msk.bf16.mxu0 %vm597_vm2, %v9316_v0 }
 0x1fc   : > { %7369 = vmatprep.mubr.msk.bf16.mxu1 %vm597_vm2, %v9346_v6 }
 0x202   : > { %7502 = vmatmul.mubr.msk.bf16.gmra.mrb[112].mxu0 %vm597_vm2, %v9340_v15 }
 0x203   : > { %7370 = vmatmul.mubr.msk.bf16.gmra.mrb[112].mxu1 %vm597_vm2, %v9352_v39  ;;  %7505 = vmatprep.mubr.msk.bf16.mxu0 %vm597_vm2, %v9346_v6 }
 0x204   : > { %7373 = vmatprep.mubr.msk.bf16.mxu1 %vm597_vm2, %v9358_v58 }
 0x20a   : > { %7506 = vmatmul.mubr.msk.bf16.gmra.mrb[116].mxu0 %vm597_vm2, %v9352_v39 }
 0x20b   : > { %7374 = vmatmul.mubr.msk.bf16.gmra.mrb[116].mxu1 %vm597_vm2, %v9364_v53  ;;  %7509 = vmatprep.mubr.msk.bf16.mxu0 %vm597_vm2, %v9358_v58 }
 0x20c   : > { %7377 = vmatprep.mubr.msk.bf16.mxu1 %vm597_vm2, %v9370_v21 }
 0x212   : > { %7510 = vmatmul.mubr.msk.bf16.gmra.mrb[120].mxu0 %vm597_vm2, %v9364_v53 }
 0x213   : > { %7378 = vmatmul.mubr.msk.bf16.gmra.mrb[120].mxu1 %vm597_vm2, %v9376_v40  ;;  %7513 = vmatprep.mubr.msk.bf16.mxu0 %vm597_vm2, %v9370_v21 }
 0x214   : > { %7381 = vmatprep.mubr.msk.bf16.mxu1 %vm597_vm2, %v9382_v19 }
 0x21a   : > { %7514 = vmatmul.mubr.msk.bf16.gmra.mrb[124].mxu0 %vm597_vm2, %v9376_v40 }
 0x21b   : > { %7382 = vmatmul.mubr.msk.bf16.gmra.mrb[124].mxu1 %vm597_vm2, %v12437_v56  ;;  %7519 = vmatprep.mubr.msk.bf16.mxu0 %vm597_vm2, %v8105_v18  ;;  %v8111_v56 = vld [vmem:[#allocation2 + $0x48] sm:$0xff]  ;;  %v8112_v18 = vld [vmem:[#allocation2 + $0x50] sm:$0xff] }
 0x222   : > { %7520 = vmatmul.mubr.msk.bf16.vlgmr.msra.gmra.mrb[64].mxu0 %vm597_vm2, %v8106_v10  ;;  %v8113_v10 = vld [vmem:[#allocation2 + $0x58] sm:$0xff] }
 0x223   : > { %7523 = vmatprep.mubr.msk.bf16.mxu0 %vm597_vm2, %v8107_v55  ;;  %v8114_v55 = vld [vmem:[#allocation2 + $0x60] sm:$0xff] }
 0x22a   : > { %7524 = vmatmul.mubr.msk.bf16.gmra.mrb[68].mxu0 %vm597_vm2, %v9069_v44  ;;  %v8115_v44 = vld [vmem:[#allocation2 + $0x68] sm:$0xff] }
 0x22b   : > { %7527 = vmatprep.mubr.msk.bf16.mxu0 %vm597_vm2, %v8108_v47  ;;  %v8116_v47 = vld [vmem:[#allocation2 + $0x70] sm:$0xff] }
 0x232   : > { %7528 = vmatmul.mubr.msk.bf16.gmra.mrb[72].mxu0 %vm597_vm2, %v8109_v48  ;;  %v8117_v48 = vld [vmem:[#allocation2 + $0x78] sm:$0xff] }
 0x233   : > { %7531 = vmatprep.mubr.msk.bf16.mxu0 %vm597_vm2, %v8110_v32  ;;  %v8118_v32 = vld [vmem:[#allocation2 + $0x80] sm:$0xff] }
 0x23a   : > { %7532 = vmatmul.mubr.msk.bf16.gmra.mrb[76].mxu0 %vm597_vm2, %v8111_v56  ;;  %v8119_v56 = vld [vmem:[#allocation2 + $0x88] sm:$0xff] }
 0x23b   : > { %7535 = vmatprep.mubr.msk.bf16.mxu0 %vm597_vm2, %v8112_v18 }
 0x242   : > { %7536 = vmatmul.mubr.msk.bf16.gmra.mrb[80].mxu0 %vm597_vm2, %v8113_v10  ;;  %v12438_v10 = vld [vmem:[#allocation50_spill] sm:$0xff] }
 0x243   : > { %7539 = vmatprep.mubr.msk.bf16.mxu0 %vm597_vm2, %v8114_v55 }
 0x24a   : > { %7540 = vmatmul.mubr.msk.bf16.gmra.mrb[84].mxu0 %vm597_vm2, %v8115_v44 }
 0x24b   : > { %7543 = vmatprep.mubr.msk.bf16.mxu0 %vm597_vm2, %v8116_v47 }
 0x252   : > { %7544 = vmatmul.mubr.msk.bf16.gmra.mrb[88].mxu0 %vm597_vm2, %v8117_v48  ;;  %v2105_v48 = vsel %vm633_vm4, %v8908_v27, 0.0  ;;  %v2111_v27 = vsel %vm633_vm4, %v8946_v36, 0.0 }
 0x253   : > { %7547 = vmatprep.mubr.msk.bf16.mxu0 %vm597_vm2, %v8118_v32 }
 0x25a   : > { %7548 = vmatmul.mubr.msk.bf16.gmra.mrb[92].mxu0 %vm597_vm2, %v8119_v56 }
 0x25b   : > { %7551 = vmatprep.mubr.msk.bf16.mxu0 %vm597_vm2, %v9244_v3 }
 0x262   : > { %7552 = vmatmul.mubr.msk.bf16.gmra.mrb[96].mxu0 %vm597_vm2, %v9240_v61  ;;  %v2103_v61 = vsel %vm633_vm4, %v8888_v63, 0.0  ;;  %v2107_v63 = vsel %vm633_vm4, %v8918_v30, 0.0 }
 0x263   : > { %7555 = vmatprep.mubr.msk.bf16.mxu0 %vm597_vm2, %v9276_v1 }
 0x26a   : > { %7556 = vmatmul.mubr.msk.bf16.gmra.mrb[100].mxu0 %vm597_vm2, %v9272_v57  ;;  %v2101_v57 = vsel %vm633_vm4, %v9324_v49, 0.0 }
 0x26b   : > { %7559 = vmatprep.mubr.msk.bf16.mxu0 %vm597_vm2, %v9284_v22 }
 0x272   : > { %7560 = vmatmul.mubr.msk.bf16.gmra.mrb[104].mxu0 %vm597_vm2, %v9306_v5 }
 0x273   : > { %7563 = vmatprep.mubr.msk.bf16.mxu0 %vm597_vm2, %v9316_v0 }
 0x276   : > { %v7323_v3 = vpop.f32.mrb[64].mxu1 }
 0x277   : > { %v9425_v1 = vadd.f32 %v7323_v3, %v2103_v61  ;;  %v2792_v22 = vpop.f32.mrb[65].mxu1 }
 0x278   : > { %v9430_v18 = vadd.f32 %v2792_v22, %v2101_v57  ;;  %v7324_v5 = vpop.f32.mrb[66].mxu1 }
 0x279   : > { %v9433_v55 = vadd.f32 %v7324_v5, %v12438_v10  ;;  %v2795_v44 = vpop.f32.mrb[67].mxu1 }
 0x27a   : > { %v9436_v0 = vadd.f32 %v2795_v44, %v8894_v2  ;;  %7564 = vmatmul.mubr.msk.bf16.gmra.mrb[108].mxu0 %vm597_vm2, %v9340_v15 }
 0x27b   : > { %7567 = vmatprep.mubr.msk.bf16.mxu0 %vm597_vm2, %v9346_v6 }
 0x27e   : > { %v7327_v49 = vpop.f32.mrb[68].mxu1 }
 0x27f   : > { %v9445_v47 = vadd.f32 %v7327_v49, %v2107_v63  ;;  %v2808_v32 = vpop.f32.mrb[69].mxu1 }
 0x280   : > { %v9450_v2 = vadd.f32 %v2808_v32, %v2105_v48  ;;  %v7328_v56 = vpop.f32.mrb[70].mxu1 }
 0x281   : > { %v9453_v15 = vadd.f32 %v7328_v56, %v8914_v28  ;;  %v2811_v61 = vpop.f32.mrb[71].mxu1  ;;  %v2109_v28 = vsel %vm633_vm4, %v8936_v31, 0.0  ;;  %v2115_v31 = vsel %vm633_vm4, %v8974_v42, 0.0 }
 0x282   : > { %v9456_v6 = vadd.f32 %v2811_v61, %v8922_v4  ;;  %7568 = vmatmul.mubr.msk.bf16.gmra.mrb[112].mxu0 %vm597_vm2, %v9352_v39 }
 0x283   : > { %7571 = vmatprep.mubr.msk.bf16.mxu0 %vm597_vm2, %v9358_v58 }
 0x286   : > { %v7331_v30 = vpop.f32.mrb[72].mxu1 }
 0x287   : > { %v9465_v3 = vadd.f32 %v7331_v30, %v2111_v27  ;;  %v2824_v57 = vpop.f32.mrb[73].mxu1  ;;  %v8120_v27 = vld [vmem:[#allocation2 + $0x118] sm:$0xff] }
 0x288   : > { %v9470_v4 = vadd.f32 %v2824_v57, %v2109_v28  ;;  %v7332_v22 = vpop.f32.mrb[74].mxu1  ;;  %v2121_v28 = vsel %vm633_vm4, %v9019_v50, 0.0  ;;  %v2125_v50 = vsel %vm633_vm4, %v9049_v17, 0.0  ;;  %v2129_v17 = vsel %vm633_vm4, %v9079_v35, 0.0 }
 0x289   : > { %v9473_v39 = vadd.f32 %v7332_v22, %v8942_v34  ;;  %v2827_v5 = vpop.f32.mrb[75].mxu1  ;;  %v2113_v34 = vsel %vm633_vm4, %v8964_v37, 0.0  ;;  %v2119_v37 = vsel %vm633_vm4, %v9001_v12, 0.0  ;;  %v2123_v12 = vsel %vm633_vm4, %v9031_v13, 0.0 }
 0x28a   : > { %v9476_v58 = vadd.f32 %v2827_v5, %v8950_v7  ;;  %7572 = vmatmul.mubr.msk.bf16.gmra.mrb[116].mxu0 %vm597_vm2, %v9364_v53  ;;  %v2127_v13 = vsel %vm633_vm4, %v9059_v20, 0.0  ;;  %v2131_v20 = vsel %vm633_vm4, %v9089_v51, 0.0  ;;  %v2135_v51 = vsel %vm633_vm4, %v9117_v33, 0.0 }
 0x28b   : > { %7575 = vmatprep.mubr.msk.bf16.mxu0 %vm597_vm2, %v9370_v21  ;;  %v2133_v35 = vsel %vm633_vm4, %v9107_v16, 0.0  ;;  %v2139_v33 = vsel %vm633_vm4, %v9145_v41, 0.0 }
 0x28e   : > { %v7335_v36 = vpop.f32.mrb[76].mxu1 }
 0x28f   : > { %v9485_v10 = vadd.f32 %v7335_v36, %v2115_v31  ;;  %v2840_v44 = vpop.f32.mrb[77].mxu1 }
 0x290   : > { %v9490_v7 = vadd.f32 %v2840_v44, %v2113_v34  ;;  %v7336_v63 = vpop.f32.mrb[78].mxu1 }
 0x291   : > { %v9493_v53 = vadd.f32 %v7336_v63, %v8970_v38  ;;  %v2843_v49 = vpop.f32.mrb[79].mxu1  ;;  %v2117_v38 = vsel %vm633_vm4, %v8991_v45, 0.0 }
 0x292   : > { %v9496_v21 = vadd.f32 %v2843_v49, %v8978_v9  ;;  %7576 = vmatmul.mubr.msk.bf16.gmra.mrb[120].mxu0 %vm597_vm2, %v9376_v40 }
 0x293   : > { %7579 = vmatprep.mubr.msk.bf16.mxu0 %vm597_vm2, %v9382_v19 }
 0x296   : > { %v7339_v42 = vpop.f32.mrb[80].mxu1 }
 0x297   : > { %v9505_v48 = vadd.f32 %v7339_v42, %v2119_v37  ;;  %v2856_v32 = vpop.f32.mrb[81].mxu1 }
 0x298   : > { %v9510_v9 = vadd.f32 %v2856_v32, %v2117_v38  ;;  %v7340_v56 = vpop.f32.mrb[82].mxu1 }
 0x299   : > { %v9513_v40 = vadd.f32 %v7340_v56, %v8997_v46  ;;  %v2859_v61 = vpop.f32.mrb[83].mxu1 }
 0x29a   : > { %v9516_v19 = vadd.f32 %v2859_v61, %v9005_v11  ;;  %7580 = vmatmul.mubr.msk.bf16.gmra.mrb[124].mxu0 %vm597_vm2, %v8120_v27 }
 0x29e   : > { %v7343_v30 = vpop.f32.mrb[84].mxu1 }
 0x29f   : > { %v9522_v45 = vadd.f32 %v7343_v30, %v2123_v12  ;;  %v2872_v46 = vpop.f32.mrb[85].mxu1 }
 0x2a0   : > { %v9527_v57 = vadd.f32 %v2872_v46, %v2121_v28  ;;  %v7344_v22 = vpop.f32.mrb[86].mxu1 }
 0x2a1   : > { %v9530_v11 = vadd.f32 %v7344_v22, %v9027_v52  ;;  %v2875_v5 = vpop.f32.mrb[87].mxu1 }
 0x2a2   : > { %v9533_v31 = vadd.f32 %v2875_v5, %v9035_v14 }
 0x2a6   : > { %v7347_v36 = vpop.f32.mrb[88].mxu1 }
 0x2a7   : > { %v9538_v34 = vadd.f32 %v7347_v36, %v2127_v13  ;;  %v2888_v44 = vpop.f32.mrb[89].mxu1 }
 0x2a8   : > { %v9543_v63 = vadd.f32 %v2888_v44, %v2125_v50  ;;  %v7348_v52 = vpop.f32.mrb[90].mxu1  ;;  %v12439_v50 = vld [vmem:[#allocation10_spill] sm:$0xff] }
 0x2a9   : > { %v9546_v49 = vadd.f32 %v7348_v52, %v9055_v29  ;;  %v2891_v14 = vpop.f32.mrb[91].mxu1  ;;  %v2137_v16 = vsel %vm633_vm4, %v12439_v50, 0.0  ;;  %v12445_v50 = vld [vmem:[#allocation16_spill] sm:$0xff] }
 0x2aa   : > { %v9549_v37 = vadd.f32 %v2891_v14, %v9063_v26  ;;  %v12440_v14 = vld [vmem:[#allocation11_spill] sm:$0xff] }
 0x2ae   : > { %v7351_v42 = vpop.f32.mrb[92].mxu1 }
 0x2af   : > { %v9554_v38 = vadd.f32 %v7351_v42, %v2131_v20  ;;  %v2904_v32 = vpop.f32.mrb[93].mxu1  ;;  %v12441_v42 = vld [vmem:[#allocation12_spill] sm:$0xff] }
 0x2b0   : > { %v9559_v56 = vadd.f32 %v2904_v32, %v2129_v17  ;;  %v7352_v29 = vpop.f32.mrb[94].mxu1  ;;  %v12442_v32 = vld [vmem:[#allocation15_spill] sm:$0xff] }
 0x2b1   : > { %v9562_v61 = vadd.f32 %v7352_v29, %v9085_v59  ;;  %v2907_v26 = vpop.f32.mrb[95].mxu1  ;;  %v2143_v41 = vsel %vm633_vm4, %v12442_v32, 0.0 }
 0x2b2   : > { %v9565_v27 = vadd.f32 %v2907_v26, %v9093_v43 }
 0x2b6   : > { %v7355_v12 = vpop.f32.mrb[96].mxu1 }
 0x2b7   : > { %v9570_v30 = vadd.f32 %v7355_v12, %v2135_v51  ;;  %v2920_v28 = vpop.f32.mrb[97].mxu1  ;;  %v12443_v51 = vld [vmem:[#allocation13_spill] sm:$0xff] }
 0x2b8   : > { %v9575_v46 = vadd.f32 %v2920_v28, %v2133_v35  ;;  %v7356_v59 = vpop.f32.mrb[98].mxu1  ;;  %v2141_v12 = vsel %vm633_vm4, %v12443_v51, 0.0 }
 0x2b9   : > { %v9578_v22 = vadd.f32 %v7356_v59, %v9113_v25  ;;  %v2923_v43 = vpop.f32.mrb[99].mxu1 }
 0x2ba   : > { %v9581_v5 = vadd.f32 %v2923_v43, %v9121_v62  ;;  %v12444_v43 = vld [vmem:[#allocation14_spill] sm:$0xff] }
 0x2be   : > { %v7359_v13 = vpop.f32.mrb[100].mxu1 }
 0x2bf   : > { %v9586_v36 = vadd.f32 %v7359_v13, %v2139_v33  ;;  %v2936_v44 = vpop.f32.mrb[101].mxu1 }
 0x2c0   : > { %v9591_v52 = vadd.f32 %v2936_v44, %v2137_v16  ;;  %v7360_v25 = vpop.f32.mrb[102].mxu1  ;;  %v12446_v44 = vld [vmem:[#allocation19_spill] sm:$0xff] }
 0x2c1   : > { %v9594_v20 = vadd.f32 %v7360_v25, %v12440_v14  ;;  %v2939_v62 = vpop.f32.mrb[103].mxu1  ;;  %v2147_v25 = vsel %vm633_vm4, %v12446_v44, 0.0 }
 0x2c2   : > { %v9597_v17 = vadd.f32 %v2939_v62, %v12441_v42  ;;  %v12448_v42 = vld [vmem:[#allocation17_spill] sm:$0xff] }
 0x2c3   : > { %v2145_v32 = vsel %vm633_vm4, %v12448_v42, 0.0 }
 0x2c6   : > { %v7363_v29 = vpop.f32.mrb[104].mxu1 }
 0x2c7   : > { %v9602_v26 = vadd.f32 %v7363_v29, %v2143_v41  ;;  %v2952_v35 = vpop.f32.mrb[105].mxu1 }
 0x2c8   : > { %v9607_v28 = vadd.f32 %v2952_v35, %v2141_v12  ;;  %v7364_v59 = vpop.f32.mrb[106].mxu1  ;;  %v12450_v12 = vld [vmem:[#allocation18_spill] sm:$0xff] }
 0x2c9   : > { %v9610_v33 = vadd.f32 %v7364_v59, %v12444_v43  ;;  %v2955_v13 = vpop.f32.mrb[107].mxu1  ;;  %v12452_v43 = vld [vmem:[#allocation20_spill] sm:$0xff] }
 0x2ca   : > { %v9613_v16 = vadd.f32 %v2955_v13, %v12445_v50  ;;  %v12454_v50 = vld [vmem:[#allocation23_spill] sm:$0xff] }
 0x2cb   : > { %v2151_v44 = vsel %vm633_vm4, %v12454_v50, 0.0 }
 0x2ce   : > { %v7367_v14 = vpop.f32.mrb[108].mxu1 }
 0x2cf   : > { %v9618_v62 = vadd.f32 %v7367_v14, %v2147_v25  ;;  %v2968_v41 = vpop.f32.mrb[109].mxu1 }
 0x2d0   : > { %v9623_v29 = vadd.f32 %v2968_v41, %v2145_v32  ;;  %v7368_v51 = vpop.f32.mrb[110].mxu1 }
 0x2d1   : > { %12447 = vst [vmem:[#allocation4_spill] sm:$0xff] %v9618_v62  ;;  %v9626_v35 = vadd.f32 %v7368_v51, %v12450_v12  ;;  %v2971_v59 = vpop.f32.mrb[111].mxu1  ;;  %v12456_v62 = vld [vmem:[#allocation21_spill] sm:$0xff]  ;;  %v12457_v12 = vld [vmem:[#allocation22_spill] sm:$0xff] }
 0x2d2   : > { %12449 = vst [vmem:[#allocation33_spill] sm:$0xff] %v9623_v29  ;;  %v9629_v13 = vadd.f32 %v2971_v59, %v12452_v43  ;;  %v2149_v42 = vsel %vm633_vm4, %v12456_v62, 0.0  ;;  %v12459_v43 = vld [vmem:[#allocation24_spill] sm:$0xff]  ;;  %v12461_v29 = vld [vmem:[#allocation27_spill] sm:$0xff] }
 0x2d3   : > { %12451 = vst [vmem:[#allocation34_spill] sm:$0xff] %v9626_v35  ;;  %v2155_v50 = vsel %vm633_vm4, %v12461_v29, 0.0  ;;  %v2159_v29 = vsel %vm633_vm4, %v9294_v8, 0.0  ;;  %v2163_v8 = vsel %vm633_vm4, %v9332_v23, 0.0  ;;  %v9696_v23 = vadd.s32 8, %v8864_v60 }
 0x2d4   : > { %12453 = vst [vmem:[#allocation35_spill] sm:$0xff] %v9629_v13 }
 0x2d5   : > { %vm636_vm6 = vcmp.le.s32.totalorder %v9696_v23, 14 }
 0x2d6   : > { %v7371_v25 = vpop.f32.mrb[112].mxu1 }
 0x2d7   : > { %v9634_v14 = vadd.f32 %v7371_v25, %v2151_v44  ;;  %v2984_v32 = vpop.f32.mrb[113].mxu1 }
 0x2d8   : > { %v9639_v41 = vadd.f32 %v2984_v32, %v2149_v42  ;;  %v7372_v51 = vpop.f32.mrb[114].mxu1 }
 0x2d9   : > { %12455 = vst [vmem:[#allocation36_spill] sm:$0xff] %v9634_v14  ;;  %v9642_v35 = vadd.f32 %v7372_v51, %v12457_v12  ;;  %v2987_v59 = vpop.f32.mrb[115].mxu1  ;;  %v12463_v14 = vld [vmem:[#allocation25_spill] sm:$0xff]  ;;  %v12464_v12 = vld [vmem:[#allocation26_spill] sm:$0xff] }
 0x2da   : > { %v9645_v13 = vadd.f32 %v2987_v59, %v12459_v43  ;;  %v2153_v62 = vsel %vm633_vm4, %v12463_v14, 0.0  ;;  %v12466_v43 = vld [vmem:[#allocation28_spill] sm:$0xff] }
 0x2db   : > { %12458 = vst [vmem:[#allocation8_spill] sm:$0xff] %v9642_v35 }
 0x2dc   : > { %12460 = vst [vmem:[#allocation5_spill] sm:$0xff] %v9645_v13 }
 0x2de   : > { %v7375_v44 = vpop.f32.mrb[116].mxu1 }
 0x2df   : > { %v9650_v25 = vadd.f32 %v7375_v44, %v2155_v50  ;;  %v3000_v42 = vpop.f32.mrb[117].mxu1 }
 0x2e0   : > { %v9655_v32 = vadd.f32 %v3000_v42, %v2153_v62  ;;  %v7376_v51 = vpop.f32.mrb[118].mxu1 }
 0x2e1   : > { %12462 = vst [vmem:[#allocation6_spill] sm:$0xff] %v9650_v25  ;;  %v9658_v35 = vadd.f32 %v7376_v51, %v12464_v12  ;;  %v3003_v59 = vpop.f32.mrb[119].mxu1  ;;  %v12468_v25 = vld [vmem:[#allocation29_spill] sm:$0xff]  ;;  %v12470_v12 = vld [vmem:[#allocation30_spill] sm:$0xff] }
 0x2e2   : > { %v9661_v13 = vadd.f32 %v3003_v59, %v12466_v43  ;;  %v2157_v14 = vsel %vm633_vm4, %v12468_v25, 0.0  ;;  %v2161_v25 = vsel %vm633_vm4, %v9314_v54, 0.0 }
 0x2e3   : > { %12465 = vst [vmem:[#allocation37_spill] sm:$0xff] %v9658_v35 }
 0x2e6   : > { %v7379_v50 = vpop.f32.mrb[120].mxu1 }
 0x2e7   : > { %v9666_v44 = vadd.f32 %v7379_v50, %v2159_v29  ;;  %v3016_v62 = vpop.f32.mrb[121].mxu1 }
 0x2e8   : > { %v9671_v42 = vadd.f32 %v3016_v62, %v2157_v14  ;;  %v7380_v51 = vpop.f32.mrb[122].mxu1 }
 0x2e9   : > { %12467 = vst [vmem:[#allocation38_spill] sm:$0xff] %v9666_v44  ;;  %v9674_v35 = vadd.f32 %v7380_v51, %v12470_v12  ;;  %v3019_v59 = vpop.f32.mrb[123].mxu1  ;;  %v12475_v12 = vld [vmem:[#allocation31_spill] sm:$0xff] }
 0x2ea   : > { %12469 = vst [vmem:[#allocation39_spill] sm:$0xff] %v9671_v42  ;;  %v9677_v43 = vadd.f32 %v3019_v59, %v9298_v24  ;;  %v12477_v59 = vld [vmem:[#allocation32_spill] sm:$0xff] }
 0x2eb   : > { %12471 = vst [vmem:[#allocation40_spill] sm:$0xff] %v9674_v35 }
 0x2ec   : > { %12472 = vst [vmem:[#allocation7_spill] sm:$0xff] %v9677_v43 }
 0x2ee   : > { %v7383_v29 = vpop.f32.mrb[124].mxu1 }
 0x2ef   : > { %v9682_v50 = vadd.f32 %v7383_v29, %v2163_v8  ;;  %v3032_v14 = vpop.f32.mrb[125].mxu1 }
 0x2f0   : > { %v9687_v62 = vadd.f32 %v3032_v14, %v2161_v25  ;;  %v7384_v51 = vpop.f32.mrb[126].mxu1 }
 0x2f1   : > { %12473 = vst [vmem:[#allocation41_spill] sm:$0xff] %v9682_v50  ;;  %v9690_v35 = vadd.f32 %v7384_v51, %v12475_v12  ;;  %v3035_v24 = vpop.f32.mrb[127].mxu1 }
 0x2f2   : > { %12474 = vst [vmem:[#allocation42_spill] sm:$0xff] %v9687_v62  ;;  %v9693_v43 = vadd.f32 %v3035_v24, %v12477_v59 }
 0x2f3   : > { %12476 = vst [vmem:[#allocation43_spill] sm:$0xff] %v9690_v35 }
 0x2f4   : > { %12478 = vst [vmem:[#allocation44_spill] sm:$0xff] %v9693_v43 }
 0x2f5   : > { %v7521_v42 = vpop.f32.mrb[64].mxu0 }
 0x2f6   : > { %v9698_v8 = vpop.f32.mrb[65].mxu0  ;;  %v4123_v54 = vrot.slane %v7521_v42, 1 }
 0x2f7   : > { %12479 = vst [vmem:[#allocation45_spill] sm:$0xff] %v9698_v8  ;;  %v7522_v29 = vpop.f32.mrb[66].mxu0  ;;  %v12230_v62 = vrot.slane %v9698_v8, 1 }
 0x2f8   : > { %v4124_v25 = vrot.slane %v7522_v29, 1  ;;  %v3805_v14 = vpop.f32.mrb[67].mxu0 }
 0x2f9   : > { %v4122_v51 = vrot.slane %v3805_v14, 1 }
 0x2fa   : > { %v4246_v12 = vsel %vm4185_vm5, %v4123_v54, %v4124_v25 }
 0x2fb   : > { %v9706_v24 = vadd.f32 %v4246_v12, %v9425_v1  ;;  %v4247_v59 = vsel %vm4185_vm5, %v4122_v51, %v4123_v54  ;;  %v4248_v42 = vsel %vm4185_vm5, %v12230_v62, %v4122_v51 }
 0x2fc   : > { %v4255_v29 = vsel %vm636_vm6, %v4247_v59, 0.0  ;;  %v9717_v43 = vadd.f32 %v4248_v42, %v9430_v18 }
 0x2fd   : > { %12480 = vst [vmem:[#allocation46_spill] sm:$0xff] %v9706_v24  ;;  %v9720_v14 = vadd.f32 %v4255_v29, %v9436_v0  ;;  %v7525_v35 = vpop.f32.mrb[68].mxu0  ;;  %v4385_v0 = vsel %vm597_vm2, %v9706_v24, 0.0 }
 0x2fe   : > { %12481 = vst [vmem:[#allocation47_spill] sm:$0xff] %v9717_v43  ;;  %v4382_v1 = vsel %vm597_vm2, %v9717_v43, 0.0  ;;  %v3818_v12 = vpop.f32.mrb[69].mxu0  ;;  %v4127_v62 = vrot.slane %v7525_v35, 1 }
 0x2ff   : > { %v4383_v54 = vsel %vm597_vm2, %v9720_v14, 0.0  ;;  %v4125_v50 = vrot.slane %v3818_v12, 1  ;;  %v7526_v8 = vpop.f32.mrb[70].mxu0 }
 0x300   : > { %v4384_v51 = vadd.f32 %v4383_v54, %v4382_v1  ;;  %v4128_v44 = vrot.slane %v7526_v8, 1  ;;  %v3821_v59 = vpop.f32.mrb[71].mxu0 }
 0x301   : > { %v4245_v18 = vsel %vm4185_vm5, %v4124_v25, %v4125_v50  ;;  %v4126_v42 = vrot.slane %v3821_v59, 1 }
 0x302   : > { %v4257_v29 = vsel %vm636_vm6, %v4245_v18, 0.0  ;;  %v4242_v43 = vsel %vm4185_vm5, %v4127_v62, %v4128_v44  ;;  %v4386_v1 = vadd.f32 %v4385_v0, %v4384_v51 }
 0x303   : > { %v9735_v12 = vadd.f32 %v4257_v29, %v9433_v55  ;;  %v9738_v35 = vadd.f32 %v4242_v43, %v9445_v47  ;;  %v4243_v8 = vsel %vm4185_vm5, %v4126_v42, %v4127_v62  ;;  %v4244_v25 = vsel %vm4185_vm5, %v4125_v50, %v4126_v42 }
 0x304   : > { %v4259_v54 = vsel %vm636_vm6, %v4243_v8, 0.0  ;;  %v9747_v59 = vadd.f32 %v4244_v25, %v9450_v2 }
 0x305   : > { %v4387_v55 = vsel %vm597_vm2, %v9735_v12, 0.0  ;;  %v9752_v18 = vadd.f32 %v4259_v54, %v9456_v6  ;;  %v7529_v47 = vpop.f32.mrb[72].mxu0 }
 0x306   : > { %v4388_v43 = vadd.f32 %v4387_v55, %v4386_v1  ;;  %v4389_v62 = vsel %vm597_vm2, %v9747_v59, 0.0  ;;  %v3834_v29 = vpop.f32.mrb[73].mxu0  ;;  %v4131_v0 = vrot.slane %v7529_v47, 1  ;;  %v4393_v1 = vsel %vm597_vm2, %v9738_v35, 0.0 }
 0x307   : > { %v4129_v50 = vrot.slane %v3834_v29, 1  ;;  %v7530_v51 = vpop.f32.mrb[74].mxu0  ;;  %v4391_v2 = vsel %vm597_vm2, %v9752_v18, 0.0 }
 0x308   : > { %v4390_v42 = vadd.f32 %v4389_v62, %v4388_v43  ;;  %v4132_v8 = vrot.slane %v7530_v51, 1  ;;  %v3837_v24 = vpop.f32.mrb[75].mxu0 }
 0x309   : > { %v4241_v25 = vsel %vm4185_vm5, %v4128_v44, %v4129_v50  ;;  %v4130_v6 = vrot.slane %v3837_v24, 1 }
 0x30a   : > { %v4392_v54 = vadd.f32 %v4391_v2, %v4390_v42  ;;  %v4261_v55 = vsel %vm636_vm6, %v4241_v25, 0.0  ;;  %v4238_v43 = vsel %vm4185_vm5, %v4131_v0, %v4132_v8 }
 0x30b   : > { %v9767_v47 = vadd.f32 %v4261_v55, %v9453_v15  ;;  %v9770_v62 = vadd.f32 %v4238_v43, %v9465_v3  ;;  %v4239_v44 = vsel %vm4185_vm5, %v4130_v6, %v4131_v0  ;;  %v4240_v24 = vsel %vm4185_vm5, %v4129_v50, %v4130_v6 }
 0x30c   : > { %v4394_v29 = vadd.f32 %v4393_v1, %v4392_v54  ;;  %v4263_v51 = vsel %vm636_vm6, %v4239_v44, 0.0  ;;  %v9779_v42 = vadd.f32 %v4240_v24, %v9470_v4 }
 0x30d   : > { %v4395_v15 = vsel %vm597_vm2, %v9767_v47, 0.0  ;;  %v9784_v2 = vadd.f32 %v4263_v51, %v9476_v58  ;;  %v7533_v3 = vpop.f32.mrb[76].mxu0 }
 0x30e   : > { %v4396_v25 = vadd.f32 %v4395_v15, %v4394_v29  ;;  %v4397_v0 = vsel %vm597_vm2, %v9779_v42, 0.0  ;;  %v3850_v55 = vpop.f32.mrb[77].mxu0  ;;  %v4135_v54 = vrot.slane %v7533_v3, 1  ;;  %v4401_v29 = vsel %vm597_vm2, %v9770_v62, 0.0 }
 0x30f   : > { %v4133_v50 = vrot.slane %v3850_v55, 1  ;;  %v7534_v6 = vpop.f32.mrb[78].mxu0  ;;  %v4399_v4 = vsel %vm597_vm2, %v9784_v2, 0.0 }
 0x310   : > { %v4398_v1 = vadd.f32 %v4397_v0, %v4396_v25  ;;  %v4136_v43 = vrot.slane %v7534_v6, 1  ;;  %v3853_v44 = vpop.f32.mrb[79].mxu0 }
 0x311   : > { %v4237_v24 = vsel %vm4185_vm5, %v4132_v8, %v4133_v50  ;;  %v4134_v58 = vrot.slane %v3853_v44, 1 }
 0x312   : > { %v4400_v51 = vadd.f32 %v4399_v4, %v4398_v1  ;;  %v4265_v15 = vsel %vm636_vm6, %v4237_v24, 0.0  ;;  %v4234_v25 = vsel %vm4185_vm5, %v4135_v54, %v4136_v43 }
 0x313   : > { %v9799_v3 = vadd.f32 %v4265_v15, %v9473_v39  ;;  %v9802_v0 = vadd.f32 %v4234_v25, %v9485_v10  ;;  %v4235_v8 = vsel %vm4185_vm5, %v4134_v58, %v4135_v54  ;;  %v4236_v55 = vsel %vm4185_vm5, %v4133_v50, %v4134_v58 }
 0x314   : > { %v4402_v6 = vadd.f32 %v4401_v29, %v4400_v51  ;;  %v4267_v1 = vsel %vm636_vm6, %v4235_v8, 0.0  ;;  %v9811_v44 = vadd.f32 %v4236_v55, %v9490_v7 }
 0x315   : > { %v4403_v39 = vsel %vm597_vm2, %v9799_v3, 0.0  ;;  %v9816_v4 = vadd.f32 %v4267_v1, %v9496_v21  ;;  %v7537_v10 = vpop.f32.mrb[80].mxu0 }
 0x316   : > { %v4404_v24 = vadd.f32 %v4403_v39, %v4402_v6  ;;  %v4405_v54 = vsel %vm597_vm2, %v9811_v44, 0.0  ;;  %v3866_v15 = vpop.f32.mrb[81].mxu0  ;;  %v4139_v51 = vrot.slane %v7537_v10, 1  ;;  %v4409_v6 = vsel %vm597_vm2, %v9802_v0, 0.0 }
 0x317   : > { %v4137_v50 = vrot.slane %v3866_v15, 1  ;;  %v7538_v58 = vpop.f32.mrb[82].mxu0  ;;  %v4407_v7 = vsel %vm597_vm2, %v9816_v4, 0.0 }
 0x318   : > { %v4406_v29 = vadd.f32 %v4405_v54, %v4404_v24  ;;  %v4140_v25 = vrot.slane %v7538_v58, 1  ;;  %v3869_v8 = vpop.f32.mrb[83].mxu0 }
 0x319   : > { %v4233_v55 = vsel %vm4185_vm5, %v4136_v43, %v4137_v50  ;;  %v4138_v21 = vrot.slane %v3869_v8, 1 }
 0x31a   : > { %v4408_v1 = vadd.f32 %v4407_v7, %v4406_v29  ;;  %v4269_v39 = vsel %vm636_vm6, %v4233_v55, 0.0  ;;  %v4230_v24 = vsel %vm4185_vm5, %v4139_v51, %v4140_v25 }
 0x31b   : > { %v9831_v10 = vadd.f32 %v4269_v39, %v9493_v53  ;;  %v9834_v54 = vadd.f32 %v4230_v24, %v9505_v48  ;;  %v4231_v43 = vsel %vm4185_vm5, %v4138_v21, %v4139_v51  ;;  %v4232_v15 = vsel %vm4185_vm5, %v4137_v50, %v4138_v21 }
 0x31c   : > { %v4410_v58 = vadd.f32 %v4409_v6, %v4408_v1  ;;  %v4271_v29 = vsel %vm636_vm6, %v4231_v43, 0.0  ;;  %v9843_v8 = vadd.f32 %v4232_v15, %v9510_v9 }
 0x31d   : > { %v4411_v53 = vsel %vm597_vm2, %v9831_v10, 0.0  ;;  %v9848_v7 = vadd.f32 %v4271_v29, %v9516_v19  ;;  %v7541_v48 = vpop.f32.mrb[84].mxu0 }
 0x31e   : > { %v4412_v55 = vadd.f32 %v4411_v53, %v4410_v58  ;;  %v4413_v51 = vsel %vm597_vm2, %v9843_v8, 0.0  ;;  %v3882_v39 = vpop.f32.mrb[85].mxu0  ;;  %v4143_v1 = vrot.slane %v7541_v48, 1  ;;  %v4417_v58 = vsel %vm597_vm2, %v9834_v54, 0.0 }
 0x31f   : > { %v4141_v50 = vrot.slane %v3882_v39, 1  ;;  %v7542_v21 = vpop.f32.mrb[86].mxu0  ;;  %v4415_v9 = vsel %vm597_vm2, %v9848_v7, 0.0 }
 0x320   : > { %v4414_v6 = vadd.f32 %v4413_v51, %v4412_v55  ;;  %v4144_v24 = vrot.slane %v7542_v21, 1  ;;  %v3885_v43 = vpop.f32.mrb[87].mxu0 }
 0x321   : > { %v4229_v15 = vsel %vm4185_vm5, %v4140_v25, %v4141_v50  ;;  %v4142_v19 = vrot.slane %v3885_v43, 1 }
 0x322   : > { %v4416_v29 = vadd.f32 %v4415_v9, %v4414_v6  ;;  %v4273_v53 = vsel %vm636_vm6, %v4229_v15, 0.0  ;;  %v4226_v55 = vsel %vm4185_vm5, %v4143_v1, %v4144_v24 }
 0x323   : > { %v9863_v48 = vadd.f32 %v4273_v53, %v9513_v40  ;;  %v9866_v51 = vadd.f32 %v4226_v55, %v9522_v45  ;;  %v4227_v25 = vsel %vm4185_vm5, %v4142_v19, %v4143_v1  ;;  %v4228_v39 = vsel %vm4185_vm5, %v4141_v50, %v4142_v19 }
 0x324   : > { %v4418_v21 = vadd.f32 %v4417_v58, %v4416_v29  ;;  %v4275_v6 = vsel %vm636_vm6, %v4227_v25, 0.0  ;;  %v9875_v43 = vadd.f32 %v4228_v39, %v9527_v57 }
 0x325   : > { %v4419_v40 = vsel %vm597_vm2, %v9863_v48, 0.0  ;;  %v9880_v9 = vadd.f32 %v4275_v6, %v9533_v31  ;;  %v7545_v45 = vpop.f32.mrb[88].mxu0 }
 0x326   : > { %v4420_v15 = vadd.f32 %v4419_v40, %v4418_v21  ;;  %v4421_v1 = vsel %vm597_vm2, %v9875_v43, 0.0  ;;  %v3898_v53 = vpop.f32.mrb[89].mxu0  ;;  %v4147_v29 = vrot.slane %v7545_v45, 1  ;;  %v4425_v21 = vsel %vm597_vm2, %v9866_v51, 0.0 }
 0x327   : > { %v4145_v50 = vrot.slane %v3898_v53, 1  ;;  %v7546_v19 = vpop.f32.mrb[90].mxu0  ;;  %v4423_v57 = vsel %vm597_vm2, %v9880_v9, 0.0 }
 0x328   : > { %v4422_v58 = vadd.f32 %v4421_v1, %v4420_v15  ;;  %v4148_v55 = vrot.slane %v7546_v19, 1  ;;  %v3901_v25 = vpop.f32.mrb[91].mxu0 }
 0x329   : > { %v4225_v39 = vsel %vm4185_vm5, %v4144_v24, %v4145_v50  ;;  %v4146_v31 = vrot.slane %v3901_v25, 1 }
 0x32a   : > { %v4424_v6 = vadd.f32 %v4423_v57, %v4422_v58  ;;  %v4277_v40 = vsel %vm636_vm6, %v4225_v39, 0.0  ;;  %v4222_v15 = vsel %vm4185_vm5, %v4147_v29, %v4148_v55 }
 0x32b   : > { %v9895_v45 = vadd.f32 %v4277_v40, %v9530_v11  ;;  %v9898_v1 = vadd.f32 %v4222_v15, %v9538_v34  ;;  %v4223_v24 = vsel %vm4185_vm5, %v4146_v31, %v4147_v29  ;;  %v4224_v53 = vsel %vm4185_vm5, %v4145_v50, %v4146_v31 }
 0x32c   : > { %v4426_v19 = vadd.f32 %v4425_v21, %v4424_v6  ;;  %v4279_v58 = vsel %vm636_vm6, %v4223_v24, 0.0  ;;  %v9907_v25 = vadd.f32 %v4224_v53, %v9543_v63 }
 0x32d   : > { %v4427_v11 = vsel %vm597_vm2, %v9895_v45, 0.0  ;;  %v9912_v57 = vadd.f32 %v4279_v58, %v9549_v37  ;;  %v7549_v34 = vpop.f32.mrb[92].mxu0 }
 0x32e   : > { %v4428_v39 = vadd.f32 %v4427_v11, %v4426_v19  ;;  %v4429_v29 = vsel %vm597_vm2, %v9907_v25, 0.0  ;;  %v3914_v40 = vpop.f32.mrb[93].mxu0  ;;  %v4151_v6 = vrot.slane %v7549_v34, 1  ;;  %v4433_v19 = vsel %vm597_vm2, %v9898_v1, 0.0 }
 0x32f   : > { %v4149_v50 = vrot.slane %v3914_v40, 1  ;;  %v7550_v31 = vpop.f32.mrb[94].mxu0  ;;  %v4431_v63 = vsel %vm597_vm2, %v9912_v57, 0.0 }
 0x330   : > { %v4430_v21 = vadd.f32 %v4429_v29, %v4428_v39  ;;  %v4152_v15 = vrot.slane %v7550_v31, 1  ;;  %v3917_v24 = vpop.f32.mrb[95].mxu0 }
 0x331   : > { %v4221_v53 = vsel %vm4185_vm5, %v4148_v55, %v4149_v50  ;;  %v4150_v37 = vrot.slane %v3917_v24, 1 }
 0x332   : > { %v4432_v58 = vadd.f32 %v4431_v63, %v4430_v21  ;;  %v4281_v11 = vsel %vm636_vm6, %v4221_v53, 0.0  ;;  %v4218_v39 = vsel %vm4185_vm5, %v4151_v6, %v4152_v15 }
 0x333   : > { %v9927_v34 = vadd.f32 %v4281_v11, %v9546_v49  ;;  %v9930_v29 = vadd.f32 %v4218_v39, %v9554_v38  ;;  %v4219_v55 = vsel %vm4185_vm5, %v4150_v37, %v4151_v6  ;;  %v4220_v40 = vsel %vm4185_vm5, %v4149_v50, %v4150_v37 }
 0x334   : > { %v4434_v31 = vadd.f32 %v4433_v19, %v4432_v58  ;;  %v4283_v21 = vsel %vm636_vm6, %v4219_v55, 0.0  ;;  %v9939_v24 = vadd.f32 %v4220_v40, %v9559_v56 }
 0x335   : > { %12482 = vst [vmem:[#allocation48_spill] sm:$0xff] %v9930_v29  ;;  %v4435_v49 = vsel %vm597_vm2, %v9927_v34, 0.0  ;;  %v9944_v63 = vadd.f32 %v4283_v21, %v9565_v27  ;;  %v7553_v38 = vpop.f32.mrb[96].mxu0 }
 0x336   : > { %v4436_v53 = vadd.f32 %v4435_v49, %v4434_v31  ;;  %v4437_v6 = vsel %vm597_vm2, %v9939_v24, 0.0  ;;  %v3930_v11 = vpop.f32.mrb[97].mxu0  ;;  %v4155_v58 = vrot.slane %v7553_v38, 1  ;;  %v4441_v31 = vsel %vm597_vm2, %v9930_v29, 0.0 }
 0x337   : > { %v4153_v50 = vrot.slane %v3930_v11, 1  ;;  %v7554_v37 = vpop.f32.mrb[98].mxu0  ;;  %v4439_v56 = vsel %vm597_vm2, %v9944_v63, 0.0 }
 0x338   : > { %v4438_v19 = vadd.f32 %v4437_v6, %v4436_v53  ;;  %v4156_v39 = vrot.slane %v7554_v37, 1  ;;  %v3933_v55 = vpop.f32.mrb[99].mxu0 }
 0x339   : > { %v4217_v40 = vsel %vm4185_vm5, %v4152_v15, %v4153_v50  ;;  %v4154_v27 = vrot.slane %v3933_v55, 1 }
 0x33a   : > { %v4440_v21 = vadd.f32 %v4439_v56, %v4438_v19  ;;  %v4285_v49 = vsel %vm636_vm6, %v4217_v40, 0.0  ;;  %v4214_v53 = vsel %vm4185_vm5, %v4155_v58, %v4156_v39 }
 0x33b   : > { %v9959_v38 = vadd.f32 %v4285_v49, %v9562_v61  ;;  %v9962_v6 = vadd.f32 %v4214_v53, %v9570_v30  ;;  %v4215_v15 = vsel %vm4185_vm5, %v4154_v27, %v4155_v58  ;;  %v4216_v11 = vsel %vm4185_vm5, %v4153_v50, %v4154_v27 }
 0x33c   : > { %v4442_v37 = vadd.f32 %v4441_v31, %v4440_v21  ;;  %v4287_v19 = vsel %vm636_vm6, %v4215_v15, 0.0  ;;  %v9971_v55 = vadd.f32 %v4216_v11, %v9575_v46 }
 0x33d   : > { %12483 = vst [vmem:[#allocation9_spill] sm:$0xff] %v9959_v38  ;;  %12484 = vst [vmem:[#allocation50_spill] sm:$0xff] %v9962_v6  ;;  %v4443_v61 = vsel %vm597_vm2, %v9959_v38, 0.0  ;;  %v9976_v56 = vadd.f32 %v4287_v19, %v9581_v5  ;;  %v7557_v30 = vpop.f32.mrb[100].mxu0 }
 0x33e   : > { %12485 = vst [vmem:[#allocation10_spill] sm:$0xff] %v9971_v55  ;;  %v4444_v40 = vadd.f32 %v4443_v61, %v4442_v37  ;;  %v4445_v58 = vsel %vm597_vm2, %v9971_v55, 0.0  ;;  %v3946_v49 = vpop.f32.mrb[101].mxu0  ;;  %v4159_v21 = vrot.slane %v7557_v30, 1  ;;  %v4449_v37 = vsel %vm597_vm2, %v9962_v6, 0.0 }
 0x33f   : > { %12486 = vst [vmem:[#allocation11_spill] sm:$0xff] %v9976_v56  ;;  %v4157_v50 = vrot.slane %v3946_v49, 1  ;;  %v7558_v27 = vpop.f32.mrb[102].mxu0  ;;  %v4447_v46 = vsel %vm597_vm2, %v9976_v56, 0.0 }
 0x340   : > { %v4446_v31 = vadd.f32 %v4445_v58, %v4444_v40  ;;  %v4160_v53 = vrot.slane %v7558_v27, 1  ;;  %v3949_v15 = vpop.f32.mrb[103].mxu0 }
 0x341   : > { %v4213_v11 = vsel %vm4185_vm5, %v4156_v39, %v4157_v50  ;;  %v4158_v5 = vrot.slane %v3949_v15, 1 }
 0x342   : > { %v4448_v19 = vadd.f32 %v4447_v46, %v4446_v31  ;;  %v4289_v61 = vsel %vm636_vm6, %v4213_v11, 0.0  ;;  %v4210_v40 = vsel %vm4185_vm5, %v4159_v21, %v4160_v53 }
 0x343   : > { %v9991_v30 = vadd.f32 %v4289_v61, %v9578_v22  ;;  %v9994_v58 = vadd.f32 %v4210_v40, %v9586_v36  ;;  %v4211_v39 = vsel %vm4185_vm5, %v4158_v5, %v4159_v21  ;;  %v4212_v49 = vsel %vm4185_vm5, %v4157_v50, %v4158_v5 }
 0x344   : > { %v4450_v27 = vadd.f32 %v4449_v37, %v4448_v19  ;;  %v4291_v31 = vsel %vm636_vm6, %v4211_v39, 0.0  ;;  %v10003_v15 = vadd.f32 %v4212_v49, %v9591_v52 }
 0x345   : > { %12487 = vst [vmem:[#allocation12_spill] sm:$0xff] %v9991_v30  ;;  %12488 = vst [vmem:[#allocation15_spill] sm:$0xff] %v9994_v58  ;;  %v4451_v22 = vsel %vm597_vm2, %v9991_v30, 0.0  ;;  %v10008_v46 = vadd.f32 %v4291_v31, %v9597_v17  ;;  %v7561_v36 = vpop.f32.mrb[104].mxu0 }
 0x346   : > { %12489 = vst [vmem:[#allocation13_spill] sm:$0xff] %v10003_v15  ;;  %v4452_v11 = vadd.f32 %v4451_v22, %v4450_v27  ;;  %v4453_v21 = vsel %vm597_vm2, %v10003_v15, 0.0  ;;  %v3962_v61 = vpop.f32.mrb[105].mxu0  ;;  %v4163_v19 = vrot.slane %v7561_v36, 1  ;;  %v4457_v27 = vsel %vm597_vm2, %v9994_v58, 0.0  ;;  %v12510_v15 = vld [vmem:[#allocation7_spill] sm:$0xff] }
 0x347   : > { %12490 = vst [vmem:[#allocation14_spill] sm:$0xff] %v10008_v46  ;;  %v4161_v50 = vrot.slane %v3962_v61, 1  ;;  %v7562_v5 = vpop.f32.mrb[106].mxu0  ;;  %v4455_v52 = vsel %vm597_vm2, %v10008_v46, 0.0 }
 0x348   : > { %v4454_v37 = vadd.f32 %v4453_v21, %v4452_v11  ;;  %v4164_v40 = vrot.slane %v7562_v5, 1  ;;  %v3965_v39 = vpop.f32.mrb[107].mxu0 }
 0x349   : > { %v4209_v49 = vsel %vm4185_vm5, %v4160_v53, %v4161_v50  ;;  %v4162_v17 = vrot.slane %v3965_v39, 1 }
 0x34a   : > { %v4456_v31 = vadd.f32 %v4455_v52, %v4454_v37  ;;  %v4293_v22 = vsel %vm636_vm6, %v4209_v49, 0.0  ;;  %v4206_v11 = vsel %vm4185_vm5, %v4163_v19, %v4164_v40 }
 0x34b   : > { %v10023_v36 = vadd.f32 %v4293_v22, %v9594_v20  ;;  %v10026_v21 = vadd.f32 %v4206_v11, %v9602_v26  ;;  %v4207_v53 = vsel %vm4185_vm5, %v4162_v17, %v4163_v19  ;;  %v4208_v61 = vsel %vm4185_vm5, %v4161_v50, %v4162_v17 }
 0x34c   : > { %v4458_v5 = vadd.f32 %v4457_v27, %v4456_v31  ;;  %v4295_v37 = vsel %vm636_vm6, %v4207_v53, 0.0  ;;  %v10035_v39 = vadd.f32 %v4208_v61, %v9607_v28 }
 0x34d   : > { %12491 = vst [vmem:[#allocation16_spill] sm:$0xff] %v10023_v36  ;;  %12492 = vst [vmem:[#allocation19_spill] sm:$0xff] %v10026_v21  ;;  %v4459_v20 = vsel %vm597_vm2, %v10023_v36, 0.0  ;;  %v10040_v52 = vadd.f32 %v4295_v37, %v9613_v16  ;;  %v7565_v26 = vpop.f32.mrb[108].mxu0 }
 0x34e   : > { %12493 = vst [vmem:[#allocation17_spill] sm:$0xff] %v10035_v39  ;;  %v4460_v49 = vadd.f32 %v4459_v20, %v4458_v5  ;;  %v4461_v19 = vsel %vm597_vm2, %v10035_v39, 0.0  ;;  %v3978_v22 = vpop.f32.mrb[109].mxu0  ;;  %v4167_v31 = vrot.slane %v7565_v26, 1  ;;  %v4465_v5 = vsel %vm597_vm2, %v10026_v21, 0.0 }
 0x34f   : > { %12494 = vst [vmem:[#allocation18_spill] sm:$0xff] %v10040_v52  ;;  %v4165_v50 = vrot.slane %v3978_v22, 1  ;;  %v7566_v17 = vpop.f32.mrb[110].mxu0  ;;  %v4463_v28 = vsel %vm597_vm2, %v10040_v52, 0.0 }
 0x350   : > { %v4462_v27 = vadd.f32 %v4461_v19, %v4460_v49  ;;  %v4168_v11 = vrot.slane %v7566_v17, 1  ;;  %v3981_v53 = vpop.f32.mrb[111].mxu0  ;;  %v12496_v19 = vld [vmem:[#allocation4_spill] sm:$0xff] }
 0x351   : > { %v4205_v61 = vsel %vm4185_vm5, %v4164_v40, %v4165_v50  ;;  %v4166_v16 = vrot.slane %v3981_v53, 1 }
 0x352   : > { %v4464_v37 = vadd.f32 %v4463_v28, %v4462_v27  ;;  %v4297_v20 = vsel %vm636_vm6, %v4205_v61, 0.0  ;;  %v4202_v49 = vsel %vm4185_vm5, %v4167_v31, %v4168_v11  ;;  %v12498_v28 = vld [vmem:[#allocation33_spill] sm:$0xff] }
 0x353   : > { %v10055_v26 = vadd.f32 %v4297_v20, %v9610_v33  ;;  %v10058_v22 = vadd.f32 %v4202_v49, %v12496_v19  ;;  %v4203_v40 = vsel %vm4185_vm5, %v4166_v16, %v4167_v31  ;;  %v4204_v17 = vsel %vm4185_vm5, %v4165_v50, %v4166_v16  ;;  %v12500_v20 = vld [vmem:[#allocation35_spill] sm:$0xff] }
 0x354   : > { %v4466_v53 = vadd.f32 %v4465_v5, %v4464_v37  ;;  %v4299_v27 = vsel %vm636_vm6, %v4203_v40, 0.0  ;;  %v10067_v61 = vadd.f32 %v4204_v17, %v12498_v28 }
 0x355   : > { %12495 = vst [vmem:[#allocation20_spill] sm:$0xff] %v10055_v26  ;;  %12497 = vst [vmem:[#allocation23_spill] sm:$0xff] %v10058_v22  ;;  %v4467_v33 = vsel %vm597_vm2, %v10055_v26, 0.0  ;;  %v10072_v21 = vadd.f32 %v4299_v27, %v12500_v20  ;;  %v7569_v49 = vpop.f32.mrb[112].mxu0 }
 0x356   : > { %12499 = vst [vmem:[#allocation21_spill] sm:$0xff] %v10067_v61  ;;  %v4468_v19 = vadd.f32 %v4467_v33, %v4466_v53  ;;  %v4469_v31 = vsel %vm597_vm2, %v10067_v61, 0.0  ;;  %v3994_v52 = vpop.f32.mrb[113].mxu0  ;;  %v4171_v37 = vrot.slane %v7569_v49, 1  ;;  %v4473_v53 = vsel %vm597_vm2, %v10058_v22, 0.0  ;;  %v12502_v49 = vld [vmem:[#allocation34_spill] sm:$0xff] }
 0x357   : > { %12501 = vst [vmem:[#allocation22_spill] sm:$0xff] %v10072_v21  ;;  %v4169_v50 = vrot.slane %v3994_v52, 1  ;;  %v7570_v16 = vpop.f32.mrb[114].mxu0  ;;  %v4471_v17 = vsel %vm597_vm2, %v10072_v21, 0.0 }
 0x358   : > { %v4470_v5 = vadd.f32 %v4469_v31, %v4468_v19  ;;  %v4172_v40 = vrot.slane %v7570_v16, 1  ;;  %v3997_v39 = vpop.f32.mrb[115].mxu0  ;;  %v12503_v31 = vld [vmem:[#allocation36_spill] sm:$0xff] }
 0x359   : > { %v4201_v28 = vsel %vm4185_vm5, %v4168_v11, %v4169_v50  ;;  %v4170_v27 = vrot.slane %v3997_v39, 1 }
 0x35a   : > { %v4472_v33 = vadd.f32 %v4471_v17, %v4470_v5  ;;  %v4301_v20 = vsel %vm636_vm6, %v4201_v28, 0.0  ;;  %v4198_v52 = vsel %vm4185_vm5, %v4171_v37, %v4172_v40 }
 0x35b   : > { %v10087_v19 = vadd.f32 %v4301_v20, %v12502_v49  ;;  %v10090_v16 = vadd.f32 %v4198_v52, %v12503_v31  ;;  %v4199_v11 = vsel %vm4185_vm5, %v4170_v27, %v4171_v37  ;;  %v4200_v39 = vsel %vm4185_vm5, %v4169_v50, %v4170_v27  ;;  %v12504_v20 = vld [vmem:[#allocation5_spill] sm:$0xff] }
 0x35c   : > { %v4474_v22 = vadd.f32 %v4473_v53, %v4472_v33  ;;  %v4303_v5 = vsel %vm636_vm6, %v4199_v11, 0.0  ;;  %v10099_v17 = vadd.f32 %v4200_v39, %v9639_v41 }
 0x35d   : > { %v4475_v28 = vsel %vm597_vm2, %v10087_v19, 0.0  ;;  %v10104_v49 = vadd.f32 %v4303_v5, %v12504_v20  ;;  %v7573_v52 = vpop.f32.mrb[116].mxu0 }
 0x35e   : > { %v4476_v31 = vadd.f32 %v4475_v28, %v4474_v22  ;;  %v4477_v37 = vsel %vm597_vm2, %v10099_v17, 0.0  ;;  %v4010_v21 = vpop.f32.mrb[117].mxu0  ;;  %v4175_v33 = vrot.slane %v7573_v52, 1  ;;  %v4481_v22 = vsel %vm597_vm2, %v10090_v16, 0.0  ;;  %v12505_v52 = vld [vmem:[#allocation8_spill] sm:$0xff] }
 0x35f   : > { %v4173_v50 = vrot.slane %v4010_v21, 1  ;;  %v7574_v27 = vpop.f32.mrb[118].mxu0  ;;  %v4479_v41 = vsel %vm597_vm2, %v10104_v49, 0.0 }
 0x360   : > { %v4478_v53 = vadd.f32 %v4477_v37, %v4476_v31  ;;  %v4176_v11 = vrot.slane %v7574_v27, 1  ;;  %v4013_v61 = vpop.f32.mrb[119].mxu0  ;;  %v12506_v37 = vld [vmem:[#allocation6_spill] sm:$0xff] }
 0x361   : > { %v4197_v39 = vsel %vm4185_vm5, %v4172_v40, %v4173_v50  ;;  %v4174_v5 = vrot.slane %v4013_v61, 1 }
 0x362   : > { %v4480_v28 = vadd.f32 %v4479_v41, %v4478_v53  ;;  %v4305_v20 = vsel %vm636_vm6, %v4197_v39, 0.0  ;;  %v4194_v21 = vsel %vm4185_vm5, %v4175_v33, %v4176_v11 }
 0x363   : > { %v10119_v31 = vadd.f32 %v4305_v20, %v12505_v52  ;;  %v10122_v27 = vadd.f32 %v4194_v21, %v12506_v37  ;;  %v4195_v40 = vsel %vm4185_vm5, %v4174_v5, %v4175_v33  ;;  %v4196_v61 = vsel %vm4185_vm5, %v4173_v50, %v4174_v5 }
 0x364   : > { %v4482_v26 = vadd.f32 %v4481_v22, %v4480_v28  ;;  %v4307_v53 = vsel %vm636_vm6, %v4195_v40, 0.0  ;;  %v10131_v41 = vadd.f32 %v4196_v61, %v9655_v32 }
 0x365   : > { %v4483_v39 = vsel %vm597_vm2, %v10119_v31, 0.0  ;;  %v10136_v20 = vadd.f32 %v4307_v53, %v9661_v13  ;;  %v7577_v21 = vpop.f32.mrb[120].mxu0 }
 0x366   : > { %v4484_v52 = vadd.f32 %v4483_v39, %v4482_v26  ;;  %v4485_v33 = vsel %vm597_vm2, %v10131_v41, 0.0  ;;  %v4026_v37 = vpop.f32.mrb[121].mxu0  ;;  %v4179_v28 = vrot.slane %v7577_v21, 1  ;;  %v4489_v26 = vsel %vm597_vm2, %v10122_v27, 0.0  ;;  %v12507_v21 = vld [vmem:[#allocation37_spill] sm:$0xff] }
 0x367   : > { %v4177_v50 = vrot.slane %v4026_v37, 1  ;;  %v7578_v5 = vpop.f32.mrb[122].mxu0  ;;  %v4487_v32 = vsel %vm597_vm2, %v10136_v20, 0.0  ;;  %v12508_v37 = vld [vmem:[#allocation38_spill] sm:$0xff] }
 0x368   : > { %v4486_v22 = vadd.f32 %v4485_v33, %v4484_v52  ;;  %v4180_v40 = vrot.slane %v7578_v5, 1  ;;  %v4029_v36 = vpop.f32.mrb[123].mxu0 }
 0x369   : > { %v4193_v61 = vsel %vm4185_vm5, %v4176_v11, %v4177_v50  ;;  %v4178_v13 = vrot.slane %v4029_v36, 1 }
 0x36a   : > { %v4488_v53 = vadd.f32 %v4487_v32, %v4486_v22  ;;  %v4309_v39 = vsel %vm636_vm6, %v4193_v61, 0.0  ;;  %v4190_v52 = vsel %vm4185_vm5, %v4179_v28, %v4180_v40  ;;  %v12509_v32 = vld [vmem:[#allocation39_spill] sm:$0xff] }
 0x36b   : > { %v4373_v33 = vadd.f32 %v4309_v39, %v12507_v21  ;;  %v10152_v5 = vadd.f32 %v4190_v52, %v12508_v37  ;;  %v4191_v58 = vsel %vm4185_vm5, %v4178_v13, %v4179_v28  ;;  %v4192_v36 = vsel %vm4185_vm5, %v4177_v50, %v4178_v13 }
 0x36c   : > { %v4490_v11 = vadd.f32 %v4489_v26, %v4488_v53  ;;  %v4311_v22 = vsel %vm636_vm6, %v4191_v58, 0.0  ;;  %v4374_v61 = vadd.f32 %v4192_v36, %v12509_v32 }
 0x36d   : > { %v4491_v46 = vsel %vm597_vm2, %v4373_v33, 0.0  ;;  %v4375_v30 = vadd.f32 %v4311_v22, %v12510_v15  ;;  %v7581_v39 = vpop.f32.mrb[124].mxu0  ;;  %v4497_v58 = vsel %vm597_vm2, %v10152_v5, 0.0  ;;  %v12511_v22 = vld [vmem:[#allocation45_spill] sm:$0xff] }
 0x36e   : > { %v4492_v21 = vadd.f32 %v4491_v46, %v4490_v11  ;;  %v4493_v52 = vsel %vm597_vm2, %v4374_v61, 0.0  ;;  %v4042_v37 = vpop.f32.mrb[125].mxu0  ;;  %v4183_v55 = vrot.slane %v7581_v39, 1  ;;  %v12512_v32 = vrot.slane %v12511_v22, 1 }
 0x36f   : > { %v4181_v6 = vrot.slane %v4042_v37, 1  ;;  %v7582_v28 = vpop.f32.mrb[126].mxu0  ;;  %v4495_v26 = vsel %vm597_vm2, %v4375_v30, 0.0 }
 0x370   : > { %v4494_v56 = vadd.f32 %v4493_v52, %v4492_v21  ;;  %v4184_v50 = vrot.slane %v7582_v28, 1  ;;  %v4045_v13 = vpop.f32.mrb[127].mxu0  ;;  %v12513_v21 = vld [vmem:[#allocation40_spill] sm:$0xff]  ;;  %v12514_v28 = vld [vmem:[#allocation41_spill] sm:$0xff] }
 0x371   : > { %v4189_v53 = vsel %vm4185_vm5, %v4180_v40, %v4181_v6  ;;  %v4182_v15 = vrot.slane %v4045_v13, 1 }
 0x372   : > { %v4496_v36 = vadd.f32 %v4495_v26, %v4494_v56  ;;  %v4313_v46 = vsel %vm636_vm6, %v4189_v53, 0.0  ;;  %v4186_v11 = vsel %vm4185_vm5, %v4183_v55, %v4184_v50  ;;  %v4249_v39 = vsel %vm4185_vm5, %v4184_v50, %v12512_v32  ;;  %v12515_v26 = vld [vmem:[#allocation43_spill] sm:$0xff] }
 0x373   : > { %v4377_v52 = vadd.f32 %v4313_v46, %v12513_v21  ;;  %v4317_v37 = vsel %vm636_vm6, %v4249_v39, 0.0  ;;  %v4380_v40 = vadd.f32 %v4186_v11, %v12514_v28  ;;  %v4187_v56 = vsel %vm4185_vm5, %v4182_v15, %v4183_v55  ;;  %v12516_v46 = vld [vmem:[#allocation42_spill] sm:$0xff]  ;;  %v12517_v21 = vld [vmem:[#allocation44_spill] sm:$0xff] }
 0x374   : > { %v4498_v13 = vadd.f32 %v4497_v58, %v4496_v36  ;;  %v4381_v53 = vadd.f32 %v4317_v37, %v12515_v26  ;;  %v4188_v38 = vsel %vm4185_vm5, %v4181_v6, %v4182_v15  ;;  %v4315_v22 = vsel %vm636_vm6, %v4187_v56, 0.0 }
 0x375   : > { %v4499_v50 = vsel %vm597_vm2, %v4377_v52, 0.0  ;;  %v4378_v32 = vadd.f32 %v4188_v38, %v12516_v46  ;;  %v4379_v39 = vadd.f32 %v4315_v22, %v12517_v21  ;;  %v4505_v36 = vsel %vm597_vm2, %v4380_v40, 0.0 }
 0x376   : > { %v4500_v29 = vadd.f32 %v4499_v50, %v4498_v13  ;;  %v4507_v6 = vsel %vm597_vm2, %v4381_v53, 0.0 }
 0x377   : > { %v4501_v11 = vsel %vm597_vm2, %v4378_v32, 0.0  ;;  %v4503_v55 = vsel %vm597_vm2, %v4379_v39, 0.0 }
 0x378   : > { %v4502_v28 = vadd.f32 %v4501_v11, %v4500_v29 }
 0x37a   : > { %v4504_v58 = vadd.f32 %v4503_v55, %v4502_v28 }
 0x37c   : > { %v4506_v37 = vadd.f32 %v4505_v36, %v4504_v58 }
 0x37e   : > { %v4508_v23 = vadd.f32 %v4507_v6, %v4506_v37 }
 0x380   : > { %v4509_v15 = vrot.slane %v4508_v23, 4 }
 0x382   : > { %v4510_v56 = vadd.f32 %v4509_v15, %v4508_v23 }
 0x384   : > { %v4511_v26 = vrot.slane %v4510_v56, 2 }
 0x386   : > { %v4512_v60 = vadd.f32 %v4511_v26, %v4510_v56 }
 0x388   : > { %v4513_v38 = vrot.slane %v4512_v60, 1 }
 0x38a   : > { %v4514_v46 = vadd.f32 %v4513_v38, %v4512_v60 }
 0x38c   : > { %v10195_v22 = vmul.f32 0.001953125, %v4514_v46 }
 0x38e   : > { %v10199_v29 = vsub.f32 %v10087_v19, %v10195_v22  ;;  %v10203_v13 = vsub.f32 %v10099_v17, %v10195_v22  ;;  %v10207_v50 = vsub.f32 %v10104_v49, %v10195_v22  ;;  %v10211_v21 = vsub.f32 %v10090_v16, %v10195_v22 }
 0x38f   : > { %v10215_v60 = vsub.f32 %v10119_v31, %v10195_v22  ;;  %v10219_v19 = vsub.f32 %v10131_v41, %v10195_v22  ;;  %v10223_v17 = vsub.f32 %v10136_v20, %v10195_v22  ;;  %v10227_v49 = vsub.f32 %v10122_v27, %v10195_v22 }
 0x390   : > { %v10230_v11 = vsub.f32 %v4373_v33, %v10195_v22  ;;  %v10233_v16 = vsub.f32 %v4374_v61, %v10195_v22  ;;  %v10236_v31 = vsub.f32 %v4375_v30, %v10195_v22  ;;  %v10240_v41 = vsub.f32 %v10152_v5, %v10195_v22  ;;  %v12522_v30 = vld [vmem:[#allocation47_spill] sm:$0xff] }
 0x391   : > { %v10243_v20 = vsub.f32 %v4377_v52, %v10195_v22  ;;  %v10246_v28 = vsub.f32 %v4378_v32, %v10195_v22  ;;  %v10249_v27 = vsub.f32 %v4379_v39, %v10195_v22  ;;  %v10252_v33 = vsub.f32 %v4380_v40, %v10195_v22  ;;  %v12523_v52 = vld [vmem:[#allocation46_spill] sm:$0xff] }
 0x392   : > { %12518 = vst [vmem:[#allocation24_spill] sm:$0xff] %v10240_v41  ;;  %v10255_v61 = vsub.f32 %v4381_v53, %v10195_v22  ;;  %v10259_v55 = vsub.f32 %v12522_v30, %v10195_v22  ;;  %v10263_v5 = vsub.f32 %v9720_v14, %v10195_v22  ;;  %v10267_v32 = vsub.f32 %v12523_v52, %v10195_v22 }
 0x393   : > { %12519 = vst [vmem:[#allocation27_spill] sm:$0xff] %v10243_v20  ;;  %12520 = vst [vmem:[#allocation25_spill] sm:$0xff] %v10252_v33  ;;  %v10271_v39 = vsub.f32 %v9735_v12, %v10195_v22  ;;  %v10279_v58 = vsub.f32 %v9747_v59, %v10195_v22  ;;  %v10285_v36 = vsub.f32 %v9752_v18, %v10195_v22 }
 0x394   : > { %12521 = vst [vmem:[#allocation26_spill] sm:$0xff] %v10255_v61  ;;  %v4580_v40 = vmul.f32 %v10259_v55, %v10259_v55  ;;  %v4581_v53 = vmul.f32 %v10263_v5, %v10263_v5  ;;  %v4582_v14 = vmul.f32 %v10267_v32, %v10267_v32  ;;  %v10293_v15 = vsub.f32 %v9738_v35, %v10195_v22 }
 0x395   : > { %v4583_v12 = vmul.f32 %v10271_v39, %v10271_v39  ;;  %v4584_v59 = vmul.f32 %v10279_v58, %v10279_v58  ;;  %v10300_v18 = vsub.f32 %v9767_v47, %v10195_v22  ;;  %v4585_v38 = vmul.f32 %v10285_v36, %v10285_v36 }
 0x396   : > { %v4644_v37 = vsel %vm597_vm2, %v4580_v40, 0.0  ;;  %v4645_v6 = vsel %vm597_vm2, %v4581_v53, 0.0  ;;  %v4647_v56 = vsel %vm597_vm2, %v4582_v14, 0.0  ;;  %v10307_v35 = vsub.f32 %v9779_v42, %v10195_v22 }
 0x397   : > { %v4646_v23 = vadd.f32 %v4645_v6, %v4644_v37  ;;  %v4649_v46 = vsel %vm597_vm2, %v4583_v12, 0.0  ;;  %v4586_v52 = vmul.f32 %v10293_v15, %v10293_v15  ;;  %v4651_v40 = vsel %vm597_vm2, %v4584_v59, 0.0 }
 0x398   : > { %v10314_v47 = vsub.f32 %v9784_v2, %v10195_v22  ;;  %v4587_v14 = vmul.f32 %v10300_v18, %v10300_v18  ;;  %v4653_v12 = vsel %vm597_vm2, %v4585_v38, 0.0  ;;  %v10321_v42 = vsub.f32 %v9770_v62, %v10195_v22 }
 0x399   : > { %v4648_v26 = vadd.f32 %v4647_v56, %v4646_v23  ;;  %v4588_v6 = vmul.f32 %v10307_v35, %v10307_v35  ;;  %v4655_v23 = vsel %vm597_vm2, %v4586_v52, 0.0  ;;  %v10328_v2 = vsub.f32 %v9799_v3, %v10195_v22 }
 0x39a   : > { %v4589_v56 = vmul.f32 %v10314_v47, %v10314_v47  ;;  %v10335_v62 = vsub.f32 %v9811_v44, %v10195_v22  ;;  %v10342_v3 = vsub.f32 %v9816_v4, %v10195_v22  ;;  %v10349_v44 = vsub.f32 %v9802_v0, %v10195_v22 }
 0x39b   : > { %v4650_v30 = vadd.f32 %v4649_v46, %v4648_v26  ;;  %v4657_v26 = vsel %vm597_vm2, %v4587_v14, 0.0  ;;  %v4590_v46 = vmul.f32 %v10321_v42, %v10321_v42  ;;  %v10356_v4 = vsub.f32 %v9831_v10, %v10195_v22 }
 0x39c   : > { %v10363_v0 = vsub.f32 %v9843_v8, %v10195_v22  ;;  %v10370_v10 = vsub.f32 %v9848_v7, %v10195_v22  ;;  %v10377_v8 = vsub.f32 %v9834_v54, %v10195_v22  ;;  %v10384_v7 = vsub.f32 %v9863_v48, %v10195_v22 }
 0x39d   : > { %v4652_v53 = vadd.f32 %v4651_v40, %v4650_v30  ;;  %v4659_v30 = vsel %vm597_vm2, %v4588_v6, 0.0  ;;  %v4591_v40 = vmul.f32 %v10328_v2, %v10328_v2  ;;  %v10391_v54 = vsub.f32 %v9875_v43, %v10195_v22 }
 0x39e   : > { %v10398_v48 = vsub.f32 %v9880_v9, %v10195_v22  ;;  %v10405_v43 = vsub.f32 %v9866_v51, %v10195_v22  ;;  %v10412_v9 = vsub.f32 %v9895_v45, %v10195_v22  ;;  %v10419_v51 = vsub.f32 %v9907_v25, %v10195_v22 }
 0x39f   : > { %v4654_v37 = vadd.f32 %v4653_v12, %v4652_v53  ;;  %v4661_v53 = vsel %vm597_vm2, %v4589_v56, 0.0  ;;  %v4592_v12 = vmul.f32 %v10335_v62, %v10335_v62  ;;  %v10426_v45 = vsub.f32 %v9912_v57, %v10195_v22 }
 0x3a0   : > { %v10433_v25 = vsub.f32 %v9898_v1, %v10195_v22  ;;  %v10440_v57 = vsub.f32 %v9927_v34, %v10195_v22  ;;  %v10447_v1 = vsub.f32 %v9939_v24, %v10195_v22  ;;  %v10454_v34 = vsub.f32 %v9944_v63, %v10195_v22 }
 0x3a1   : > { %v4656_v59 = vadd.f32 %v4655_v23, %v4654_v37  ;;  %v4663_v37 = vsel %vm597_vm2, %v4590_v46, 0.0  ;;  %v4593_v23 = vmul.f32 %v10342_v3, %v10342_v3 }
 0x3a2   : > { %12524 = vst [vmem:[#allocation28_spill] sm:$0xff] %v10433_v25  ;;  %12525 = vst [vmem:[#allocation29_spill] sm:$0xff] %v10440_v57 }
 0x3a3   : > { %v4658_v38 = vadd.f32 %v4657_v26, %v4656_v59  ;;  %v4665_v59 = vsel %vm597_vm2, %v4591_v40, 0.0  ;;  %v4594_v26 = vmul.f32 %v10349_v44, %v10349_v44  ;;  %12526 = vst [vmem:[#allocation30_spill] sm:$0xff] %v10447_v1  ;;  %12527 = vst [vmem:[#allocation31_spill] sm:$0xff] %v10454_v34 }
 0x3a5   : > { %v4660_v52 = vadd.f32 %v4659_v30, %v4658_v38  ;;  %v4667_v38 = vsel %vm597_vm2, %v4592_v12, 0.0  ;;  %v4595_v30 = vmul.f32 %v10356_v4, %v10356_v4 }
 0x3a7   : > { %v4662_v14 = vadd.f32 %v4661_v53, %v4660_v52  ;;  %v4669_v52 = vsel %vm597_vm2, %v4593_v23, 0.0  ;;  %v4596_v53 = vmul.f32 %v10363_v0, %v10363_v0 }
 0x3a9   : > { %v4664_v6 = vadd.f32 %v4663_v37, %v4662_v14  ;;  %v4671_v14 = vsel %vm597_vm2, %v4594_v26, 0.0  ;;  %v4597_v37 = vmul.f32 %v10370_v10, %v10370_v10 }
 0x3ab   : > { %v4666_v56 = vadd.f32 %v4665_v59, %v4664_v6  ;;  %v4673_v6 = vsel %vm597_vm2, %v4595_v30, 0.0  ;;  %v4598_v59 = vmul.f32 %v10377_v8, %v10377_v8 }
 0x3ad   : > { %v4668_v46 = vadd.f32 %v4667_v38, %v4666_v56  ;;  %v4675_v56 = vsel %vm597_vm2, %v4596_v53, 0.0  ;;  %v4599_v38 = vmul.f32 %v10384_v7, %v10384_v7 }
 0x3af   : > { %v4670_v40 = vadd.f32 %v4669_v52, %v4668_v46  ;;  %v4677_v46 = vsel %vm597_vm2, %v4597_v37, 0.0  ;;  %v4600_v52 = vmul.f32 %v10391_v54, %v10391_v54 }
 0x3b1   : > { %v4672_v12 = vadd.f32 %v4671_v14, %v4670_v40  ;;  %v4679_v40 = vsel %vm597_vm2, %v4598_v59, 0.0  ;;  %v4601_v14 = vmul.f32 %v10398_v48, %v10398_v48 }
 0x3b3   : > { %v4674_v23 = vadd.f32 %v4673_v6, %v4672_v12  ;;  %v4681_v12 = vsel %vm597_vm2, %v4599_v38, 0.0  ;;  %v4602_v6 = vmul.f32 %v10405_v43, %v10405_v43 }
 0x3b5   : > { %v4676_v26 = vadd.f32 %v4675_v56, %v4674_v23  ;;  %v4683_v23 = vsel %vm597_vm2, %v4600_v52, 0.0  ;;  %v4603_v56 = vmul.f32 %v10412_v9, %v10412_v9 }
 0x3b7   : > { %v4678_v30 = vadd.f32 %v4677_v46, %v4676_v26  ;;  %v4685_v26 = vsel %vm597_vm2, %v4601_v14, 0.0  ;;  %v4604_v46 = vmul.f32 %v10419_v51, %v10419_v51 }
 0x3b9   : > { %v4680_v53 = vadd.f32 %v4679_v40, %v4678_v30  ;;  %v4687_v30 = vsel %vm597_vm2, %v4602_v6, 0.0  ;;  %v4605_v40 = vmul.f32 %v10426_v45, %v10426_v45 }
 0x3bb   : > { %v4682_v37 = vadd.f32 %v4681_v12, %v4680_v53  ;;  %v4689_v53 = vsel %vm597_vm2, %v4603_v56, 0.0  ;;  %v4606_v12 = vmul.f32 %v10433_v25, %v10433_v25 }
 0x3bd   : > { %v4684_v59 = vadd.f32 %v4683_v23, %v4682_v37  ;;  %v4691_v37 = vsel %vm597_vm2, %v4604_v46, 0.0  ;;  %v4607_v23 = vmul.f32 %v10440_v57, %v10440_v57  ;;  %v4695_v46 = vsel %vm597_vm2, %v4606_v12, 0.0 }
 0x3bf   : > { %v4686_v38 = vadd.f32 %v4685_v26, %v4684_v59  ;;  %v4693_v59 = vsel %vm597_vm2, %v4605_v40, 0.0  ;;  %v12528_v26 = vld [vmem:[#allocation48_spill] sm:$0xff]  ;;  %v4609_v40 = vmul.f32 %v10454_v34, %v10454_v34 }
 0x3c0   : > { %v10461_v24 = vsub.f32 %v12528_v26, %v10195_v22 }
 0x3c1   : > { %v4688_v52 = vadd.f32 %v4687_v30, %v4686_v38  ;;  %v4608_v38 = vmul.f32 %v10447_v1, %v10447_v1  ;;  %v5017_v30 = vld [vmem:[%s8210_s21] sm:$0xf] }
 0x3c2   : > { %12529 = vst [vmem:[#allocation32_spill] sm:$0xff] %v10461_v24  ;;  %8042 = vmatprep.subr.msk.bf16.mxu1 %vm833_vm1, %v5017_v30  ;;  %v5115_v63 = vsel %vm833_vm1, %v5017_v30, 0  ;;  %v12534_v30 = vld [vmem:[#allocation11_spill] sm:$0xff] }
 0x3c3   : > { %v4690_v14 = vadd.f32 %v4689_v53, %v4688_v52  ;;  %v12530_v53 = vld [vmem:[#allocation9_spill] sm:$0xff]  ;;  %7584 = vmatpush3.bf16.msra.mxu1 %v5115_v63  ;;  %v4699_v26 = vsel %vm597_vm2, %v4608_v38, 0.0  ;;  %v12536_v63 = vld [vmem:[#allocation50_spill] sm:$0xff] }
 0x3c5   : > { %v4692_v6 = vadd.f32 %v4691_v37, %v4690_v14  ;;  %v10471_v14 = vsub.f32 %v12530_v53, %v10195_v22  ;;  %v4697_v37 = vsel %vm597_vm2, %v4607_v23, 0.0  ;;  %v10485_v53 = vsub.f32 %v12534_v30, %v10195_v22 }
 0x3c6   : > { %v4701_v23 = vsel %vm597_vm2, %v4609_v40, 0.0 }
 0x3c7   : > { %v4694_v56 = vadd.f32 %v4693_v59, %v4692_v6  ;;  %12531 = vst [vmem:[#allocation4_spill] sm:$0xff] %v10471_v14  ;;  %v12532_v59 = vld [vmem:[#allocation10_spill] sm:$0xff]  ;;  %12535 = vst [vmem:[#allocation35_spill] sm:$0xff] %v10485_v53  ;;  %v4611_v34 = vmul.f32 %v10471_v14, %v10471_v14  ;;  %v4613_v14 = vmul.f32 %v10485_v53, %v10485_v53 }
 0x3c8   : > { %v10478_v12 = vsub.f32 %v12532_v59, %v10195_v22 }
 0x3c9   : > { %v4696_v52 = vadd.f32 %v4695_v46, %v4694_v56  ;;  %v4610_v56 = vmul.f32 %v10461_v24, %v10461_v24  ;;  %v4705_v40 = vsel %vm597_vm2, %v4611_v34, 0.0  ;;  %v4709_v34 = vsel %vm597_vm2, %v4613_v14, 0.0 }
 0x3ca   : > { %12533 = vst [vmem:[#allocation33_spill] sm:$0xff] %v10478_v12  ;;  %v4612_v59 = vmul.f32 %v10478_v12, %v10478_v12 }
 0x3cb   : > { %v4698_v6 = vadd.f32 %v4697_v37, %v4696_v52  ;;  %v10492_v37 = vsub.f32 %v12536_v63, %v10195_v22  ;;  %v4703_v38 = vsel %vm597_vm2, %v4610_v56, 0.0 }
 0x3cc   : > { %v4707_v56 = vsel %vm597_vm2, %v4612_v59, 0.0 }
 0x3cd   : > { %v4700_v46 = vadd.f32 %v4699_v26, %v4698_v6  ;;  %v12537_v26 = vld [vmem:[#allocation12_spill] sm:$0xff]  ;;  %v4614_v12 = vmul.f32 %v10492_v37, %v10492_v37 }
 0x3ce   : > { %v10499_v30 = vsub.f32 %v12537_v26, %v10195_v22 }
 0x3cf   : > { %v4702_v52 = vadd.f32 %v4701_v23, %v4700_v46  ;;  %v12538_v23 = vld [vmem:[#allocation13_spill] sm:$0xff]  ;;  %v4711_v59 = vsel %vm597_vm2, %v4614_v12, 0.0 }
 0x3d0   : > { %v10506_v63 = vsub.f32 %v12538_v23, %v10195_v22  ;;  %v4615_v53 = vmul.f32 %v10499_v30, %v10499_v30 }
 0x3d1   : > { %v4704_v6 = vadd.f32 %v4703_v38, %v4702_v52  ;;  %v12539_v38 = vld [vmem:[#allocation14_spill] sm:$0xff] }
 0x3d2   : > { %v10513_v26 = vsub.f32 %v12539_v38, %v10195_v22  ;;  %v4616_v24 = vmul.f32 %v10506_v63, %v10506_v63  ;;  %v4713_v14 = vsel %vm597_vm2, %v4615_v53, 0.0 }
 0x3d3   : > { %v4706_v46 = vadd.f32 %v4705_v40, %v4704_v6  ;;  %v12541_v40 = vld [vmem:[#allocation15_spill] sm:$0xff] }
 0x3d4   : > { %12540 = vst [vmem:[#allocation34_spill] sm:$0xff] %v10513_v26  ;;  %v10520_v23 = vsub.f32 %v12541_v40, %v10195_v22  ;;  %v4617_v1 = vmul.f32 %v10513_v26, %v10513_v26  ;;  %v4715_v12 = vsel %vm597_vm2, %v4616_v24, 0.0 }
 0x3d5   : > { %v4708_v52 = vadd.f32 %v4707_v56, %v4706_v46  ;;  %v12543_v56 = vld [vmem:[#allocation16_spill] sm:$0xff] }
 0x3d6   : > { %12542 = vst [vmem:[#allocation36_spill] sm:$0xff] %v10520_v23  ;;  %v10527_v38 = vsub.f32 %v12543_v56, %v10195_v22  ;;  %v4618_v57 = vmul.f32 %v10520_v23, %v10520_v23  ;;  %v4717_v53 = vsel %vm597_vm2, %v4617_v1, 0.0 }
 0x3d7   : > { %v4710_v6 = vadd.f32 %v4709_v34, %v4708_v52  ;;  %v12545_v34 = vld [vmem:[#allocation17_spill] sm:$0xff] }
 0x3d8   : > { %12544 = vst [vmem:[#allocation5_spill] sm:$0xff] %v10527_v38  ;;  %v10534_v40 = vsub.f32 %v12545_v34, %v10195_v22  ;;  %v4619_v25 = vmul.f32 %v10527_v38, %v10527_v38  ;;  %v4719_v24 = vsel %vm597_vm2, %v4618_v57, 0.0 }
 0x3d9   : > { %v4712_v46 = vadd.f32 %v4711_v59, %v4710_v6  ;;  %v12547_v59 = vld [vmem:[#allocation18_spill] sm:$0xff] }
 0x3da   : > { %12546 = vst [vmem:[#allocation8_spill] sm:$0xff] %v10534_v40  ;;  %v10541_v56 = vsub.f32 %v12547_v59, %v10195_v22  ;;  %v4620_v23 = vmul.f32 %v10534_v40, %v10534_v40  ;;  %v4721_v1 = vsel %vm597_vm2, %v4619_v25, 0.0 }
 0x3db   : > { %v4714_v52 = vadd.f32 %v4713_v14, %v4712_v46  ;;  %v12549_v14 = vld [vmem:[#allocation19_spill] sm:$0xff] }
 0x3dc   : > { %12548 = vst [vmem:[#allocation6_spill] sm:$0xff] %v10541_v56  ;;  %v10548_v34 = vsub.f32 %v12549_v14, %v10195_v22  ;;  %v4621_v38 = vmul.f32 %v10541_v56, %v10541_v56  ;;  %v4723_v57 = vsel %vm597_vm2, %v4620_v23, 0.0 }
 0x3dd   : > { %v4716_v6 = vadd.f32 %v4715_v12, %v4714_v52  ;;  %v12551_v12 = vld [vmem:[#allocation20_spill] sm:$0xff] }
 0x3de   : > { %12550 = vst [vmem:[#allocation37_spill] sm:$0xff] %v10548_v34  ;;  %v10555_v59 = vsub.f32 %v12551_v12, %v10195_v22  ;;  %v4622_v40 = vmul.f32 %v10548_v34, %v10548_v34  ;;  %v4725_v25 = vsel %vm597_vm2, %v4621_v38, 0.0 }
 0x3df   : > { %v4718_v46 = vadd.f32 %v4717_v53, %v4716_v6  ;;  %v12552_v53 = vld [vmem:[#allocation21_spill] sm:$0xff] }
 0x3e0   : > { %v10562_v14 = vsub.f32 %v12552_v53, %v10195_v22  ;;  %v4623_v56 = vmul.f32 %v10555_v59, %v10555_v59  ;;  %v4727_v23 = vsel %vm597_vm2, %v4622_v40, 0.0  ;;  %v4628_v40 = vmul.f32 %v10203_v13, %v10203_v13 }
 0x3e1   : > { %v4720_v52 = vadd.f32 %v4719_v24, %v4718_v46  ;;  %v12554_v24 = vld [vmem:[#allocation22_spill] sm:$0xff] }
 0x3e2   : > { %12553 = vst [vmem:[#allocation38_spill] sm:$0xff] %v10562_v14  ;;  %v10569_v12 = vsub.f32 %v12554_v24, %v10195_v22  ;;  %v4624_v34 = vmul.f32 %v10562_v14, %v10562_v14  ;;  %v4729_v24 = vsel %vm597_vm2, %v4623_v56, 0.0  ;;  %v4629_v56 = vmul.f32 %v10207_v50, %v10207_v50 }
 0x3e3   : > { %v4722_v6 = vadd.f32 %v4721_v1, %v4720_v52  ;;  %v12555_v1 = vld [vmem:[#allocation23_spill] sm:$0xff] }
 0x3e4   : > { %v10576_v53 = vsub.f32 %v12555_v1, %v10195_v22  ;;  %v4627_v22 = vmul.f32 %v10199_v29, %v10199_v29 }
 0x3e5   : > { %v4724_v46 = vadd.f32 %v4723_v57, %v4722_v6  ;;  %v4625_v57 = vmul.f32 %v10569_v12, %v10569_v12 }
 0x3e6   : > { %v4626_v38 = vmul.f32 %v10576_v53, %v10576_v53 }
 0x3e7   : > { %v4726_v52 = vadd.f32 %v4725_v25, %v4724_v46  ;;  %v4731_v46 = vsel %vm597_vm2, %v4624_v34, 0.0  ;;  %v4733_v1 = vsel %vm597_vm2, %v4625_v57, 0.0  ;;  %v4739_v34 = vsel %vm597_vm2, %v4628_v40, 0.0 }
 0x3e8   : > { %v4631_v57 = vmul.f32 %v10215_v60, %v10215_v60  ;;  %v4634_v40 = vmul.f32 %v10227_v49, %v10227_v49 }
 0x3e9   : > { %v4728_v6 = vadd.f32 %v4727_v23, %v4726_v52  ;;  %v4735_v52 = vsel %vm597_vm2, %v4626_v38, 0.0 }
 0x3eb   : > { %v4730_v26 = vadd.f32 %v4729_v24, %v4728_v6  ;;  %v4737_v6 = vsel %vm597_vm2, %v4627_v22, 0.0  ;;  %v4633_v22 = vmul.f32 %v10223_v17, %v10223_v17 }
 0x3ed   : > { %v4732_v25 = vadd.f32 %v4731_v46, %v4730_v26  ;;  %v4630_v26 = vmul.f32 %v10211_v21, %v10211_v21 }
 0x3ef   : > { %v4734_v14 = vadd.f32 %v4733_v1, %v4732_v25  ;;  %v4741_v25 = vsel %vm597_vm2, %v4629_v56, 0.0  ;;  %v4743_v38 = vsel %vm597_vm2, %v4630_v26, 0.0  ;;  %v4635_v56 = vmul.f32 %v10230_v11, %v10230_v11 }
 0x3f0   : > { %v4636_v26 = vmul.f32 %v10233_v16, %v10233_v16 }
 0x3f1   : > { %v4736_v23 = vadd.f32 %v4735_v52, %v4734_v14  ;;  %v4632_v14 = vmul.f32 %v10219_v19, %v10219_v19 }
 0x3f3   : > { %v4738_v24 = vadd.f32 %v4737_v6, %v4736_v23  ;;  %v4745_v23 = vsel %vm597_vm2, %v4631_v57, 0.0  ;;  %v4637_v57 = vmul.f32 %v10236_v31, %v10236_v31 }
 0x3f5   : > { %v4740_v46 = vadd.f32 %v4739_v34, %v4738_v24  ;;  %v4747_v24 = vsel %vm597_vm2, %v4632_v14, 0.0  ;;  %v4638_v14 = vmul.f32 %v10240_v41, %v10240_v41 }
 0x3f7   : > { %v4742_v1 = vadd.f32 %v4741_v25, %v4740_v46  ;;  %v4749_v46 = vsel %vm597_vm2, %v4633_v22, 0.0  ;;  %v4639_v22 = vmul.f32 %v10243_v20, %v10243_v20 }
 0x3f9   : > { %v4744_v52 = vadd.f32 %v4743_v38, %v4742_v1  ;;  %v4751_v1 = vsel %vm597_vm2, %v4634_v40, 0.0  ;;  %v4640_v40 = vmul.f32 %v10246_v28, %v10246_v28 }
 0x3fb   : > { %v4746_v6 = vadd.f32 %v4745_v23, %v4744_v52  ;;  %v4753_v52 = vsel %vm597_vm2, %v4635_v56, 0.0  ;;  %v4641_v56 = vmul.f32 %v10249_v27, %v10249_v27 }
 0x3fd   : > { %v4748_v34 = vadd.f32 %v4747_v24, %v4746_v6  ;;  %v4755_v6 = vsel %vm597_vm2, %v4636_v26, 0.0  ;;  %v4642_v26 = vmul.f32 %v10252_v33, %v10252_v33 }
 0x3ff   : > { %v4750_v25 = vadd.f32 %v4749_v46, %v4748_v34  ;;  %v4757_v34 = vsel %vm597_vm2, %v4637_v57, 0.0  ;;  %v4643_v57 = vmul.f32 %v10255_v61, %v10255_v61 }
 0x401   : > { %v4752_v38 = vadd.f32 %v4751_v1, %v4750_v25  ;;  %v4759_v25 = vsel %vm597_vm2, %v4638_v14, 0.0 }
 0x403   : > { %v4754_v23 = vadd.f32 %v4753_v52, %v4752_v38  ;;  %v4761_v38 = vsel %vm597_vm2, %v4639_v22, 0.0 }
 0x405   : > { %v4756_v24 = vadd.f32 %v4755_v6, %v4754_v23  ;;  %v4763_v23 = vsel %vm597_vm2, %v4640_v40, 0.0 }
 0x407   : > { %v4758_v46 = vadd.f32 %v4757_v34, %v4756_v24  ;;  %v4765_v24 = vsel %vm597_vm2, %v4641_v56, 0.0  ;;  %v4767_v34 = vsel %vm597_vm2, %v4642_v26, 0.0  ;;  %v4780_v56 = vld [vmem:[%s321_s11] sm:$0x1] }
 0x409   : > { %v4760_v1 = vadd.f32 %v4759_v25, %v4758_v46  ;;  %v4769_v25 = vsel %vm597_vm2, %v4643_v57, 0.0 }
 0x40b   : > { %v4762_v52 = vadd.f32 %v4761_v38, %v4760_v1 }
 0x40d   : > { %v4764_v6 = vadd.f32 %v4763_v23, %v4762_v52 }
 0x40f   : > { %v4766_v14 = vadd.f32 %v4765_v24, %v4764_v6  ;;  %v12556_v6 = vld [vmem:[#allocation49_spill] sm:$0xff] }
 0x410   : > { %v12271_v24 = vsub.s32 0, %v12556_v6 }
 0x411   : > { %v4768_v46 = vadd.f32 %v4767_v34, %v4766_v14 }
 0x413   : > { %v4770_v22 = vadd.f32 %v4769_v25, %v4768_v46 }
 0x415   : > { %v4771_v1 = vrot.slane %v4770_v22, 4 }
 0x417   : > { %v4772_v38 = vadd.f32 %v4771_v1, %v4770_v22 }
 0x419   : > { %v4773_v20 = vrot.slane %v4772_v38, 2 }
 0x41b   : > { %v4774_v33 = vadd.f32 %v4773_v20, %v4772_v38 }
 0x41d   : > { %v4775_v41 = vrot.slane %v4774_v33, 1 }
 0x41f   : > { %v4776_v40 = vadd.f32 %v4775_v41, %v4774_v33 }
 0x421   : > { %v4777_v52 = vmul.f32 0.001953125, %v4776_v40 }
 0x423   : > { %v4778_v23 = vadd.f32 1e-05, %v4777_v52 }
 0x425   : > { %8085 = vrsqrt.f32 %v4778_v23  ;;  %v12557_v23 = vld [vmem:[#allocation34_spill] sm:$0xff] }
 0x42f   : > { %v8086_v61 = vpop.eup %8085 }
 0x430   : > { %v4781_v26 = vmul.f32 %v8086_v61, %v4780_v56 }
 0x432   : > { %v10648_v57 = vrot.slane %v4781_v26, %v12271_v24  ;;  %v12558_v26 = vld [vmem:[#allocation36_spill] sm:$0xff] }
 0x434   : > { %v10652_v20 = vmul.f32 %v10648_v57, %v10246_v28  ;;  %v10656_v41 = vmul.f32 %v10648_v57, %v10249_v27  ;;  %v4786_v33 = vmul.f32 %v10648_v57, %v10259_v55  ;;  %v4787_v61 = vmul.f32 %v10648_v57, %v10263_v5 }
 0x435   : > { %v4788_v14 = vmul.f32 %v10648_v57, %v10267_v32  ;;  %v4789_v34 = vmul.f32 %v10648_v57, %v10271_v39  ;;  %v4790_v28 = vmul.f32 %v10648_v57, %v10279_v58  ;;  %v4791_v27 = vmul.f32 %v10648_v57, %v10285_v36 }
 0x436   : > { %v4792_v46 = vmul.f32 %v10648_v57, %v10293_v15  ;;  %v4793_v55 = vmul.f32 %v10648_v57, %v10300_v18  ;;  %v4794_v5 = vmul.f32 %v10648_v57, %v10307_v35  ;;  %v4795_v32 = vmul.f32 %v10648_v57, %v10314_v47  ;;  %v10693_v35 = vld [vmem:[%s324_s17] ss:$0 sm:$0xff] }
 0x437   : > { %v4796_v39 = vmul.f32 %v10648_v57, %v10321_v42  ;;  %v4797_v58 = vmul.f32 %v10648_v57, %v10328_v2  ;;  %v4798_v36 = vmul.f32 %v10648_v57, %v10335_v62  ;;  %v4799_v15 = vmul.f32 %v10648_v57, %v10342_v3 }
 0x438   : > { %v4800_v18 = vmul.f32 %v10648_v57, %v10349_v44  ;;  %v4801_v47 = vmul.f32 %v10648_v57, %v10356_v4  ;;  %v4802_v42 = vmul.f32 %v10648_v57, %v10363_v0  ;;  %v4803_v2 = vmul.f32 %v10648_v57, %v10370_v10 }
 0x439   : > { %v10703_v62 = vmul.f32 %v10648_v57, %v10377_v8  ;;  %v10707_v3 = vmul.f32 %v10648_v57, %v10384_v7  ;;  %v10711_v44 = vmul.f32 %v10648_v57, %v10391_v54  ;;  %v10715_v4 = vmul.f32 %v10648_v57, %v10398_v48 }
 0x43a   : > { %v10719_v0 = vmul.f32 %v10648_v57, %v10405_v43  ;;  %v10723_v10 = vmul.f32 %v10648_v57, %v10412_v9  ;;  %v10727_v8 = vmul.f32 %v10648_v57, %v10419_v51  ;;  %v10731_v7 = vmul.f32 %v10648_v57, %v10426_v45 }
 0x43b   : > { %v10735_v54 = vmul.f32 %v10648_v57, %v10492_v37  ;;  %v4859_v48 = vadd.f32 %v10693_v35, %v4788_v14  ;;  %v4860_v43 = vadd.f32 %v10693_v35, %v4789_v34  ;;  %v4857_v25 = vadd.f32 %v10693_v35, %v4786_v33  ;;  %v12560_v14 = vld [vmem:[#allocation8_spill] sm:$0xff] }
 0x43c   : > { %v4858_v9 = vadd.f32 %v10693_v35, %v4787_v61  ;;  %v10743_v51 = vmul.f32 %v10648_v57, %v10499_v30  ;;  %v10747_v45 = vmul.f32 %v10648_v57, %v10506_v63  ;;  %v4861_v22 = vadd.f32 %v10693_v35, %v4790_v28  ;;  %v12559_v63 = vld [vmem:[#allocation5_spill] sm:$0xff] }
 0x43d   : > { %v4862_v37 = vadd.f32 %v10693_v35, %v4791_v27  ;;  %v4923_v1 = vmax.f32 %v4859_v48, 0.0  ;;  %v4924_v38 = vmax.f32 %v4860_v43, 0.0  ;;  %v4921_v40 = vmax.f32 %v4857_v25, 0.0  ;;  %v12561_v48 = vld [vmem:[#allocation6_spill] sm:$0xff]  ;;  %v12562_v25 = vld [vmem:[#allocation37_spill] sm:$0xff] }
 0x43e   : > { %v4922_v52 = vmax.f32 %v4858_v9, 0.0  ;;  %v10753_v56 = vmul.f32 %v10648_v57, %v12557_v23  ;;  %v10757_v30 = vmul.f32 %v10648_v57, %v12558_v26  ;;  %v4925_v6 = vmax.f32 %v4861_v22, 0.0 }
 0x43f   : > { %v4926_v33 = vmax.f32 %v4862_v37, 0.0  ;;  %v10761_v61 = vmul.f32 %v10648_v57, %v12559_v63  ;;  %v10765_v34 = vmul.f32 %v10648_v57, %v12560_v14  ;;  %v4986_v28 = vpack.c.bf16 %v4924_v38, %v4923_v1 }
 0x440   : > { %v4985_v27 = vpack.c.bf16 %v4922_v52, %v4921_v40  ;;  %v10769_v43 = vmul.f32 %v10648_v57, %v12561_v48  ;;  %v10773_v9 = vmul.f32 %v10648_v57, %v12562_v25  ;;  %v4863_v22 = vadd.f32 %v10693_v35, %v4792_v46  ;;  %v12563_v52 = vld [vmem:[#allocation38_spill] sm:$0xff] }
 0x441   : > { %v4864_v37 = vadd.f32 %v10693_v35, %v4793_v55  ;;  %v10779_v23 = vmul.f32 %v10648_v57, %v10555_v59  ;;  %v4987_v1 = vpack.c.bf16 %v4926_v33, %v4925_v6  ;;  %v4865_v38 = vadd.f32 %v10693_v35, %v4794_v5 }
 0x442   : > { %7585 = vmatprep.mubr.msk.bf16.mxu1 %vm597_vm2, %v4985_v27  ;;  %v4866_v40 = vadd.f32 %v10693_v35, %v4795_v32  ;;  %v10786_v26 = vmul.f32 %v10648_v57, %v12563_v52  ;;  %v10790_v46 = vmul.f32 %v10648_v57, %v10569_v12  ;;  %v10794_v55 = vmul.f32 %v10648_v57, %v10576_v53  ;;  %v12564_v52 = vld [vmem:[#allocation24_spill] sm:$0xff] }
 0x443   : > { %v10798_v59 = vmul.f32 %v10648_v57, %v10199_v29  ;;  %7586 = vmatmul.mubr.msk.bf16.vlgmr.msra.gmra.mrb[128].mxu1 %vm597_vm2, %v4986_v28  ;;  %v10803_v5 = vmul.f32 %v10648_v57, %v10203_v13  ;;  %v10807_v32 = vmul.f32 %v10648_v57, %v10207_v50  ;;  %v10811_v12 = vmul.f32 %v10648_v57, %v10211_v21 }
 0x444   : > { %v10815_v53 = vmul.f32 %v10648_v57, %v10215_v60  ;;  %7589 = vmatprep.mubr.msk.bf16.mxu1 %vm597_vm2, %v4987_v1  ;;  %v4927_v29 = vmax.f32 %v4863_v22, 0.0  ;;  %v4928_v6 = vmax.f32 %v4864_v37, 0.0  ;;  %v4867_v33 = vadd.f32 %v10693_v35, %v4796_v39 }
 0x445   : > { %v4868_v13 = vadd.f32 %v10693_v35, %v4797_v58  ;;  %v4929_v63 = vmax.f32 %v4865_v38, 0.0  ;;  %v4930_v14 = vmax.f32 %v4866_v40, 0.0  ;;  %v4869_v50 = vadd.f32 %v10693_v35, %v4798_v36 }
 0x446   : > { %v4870_v28 = vadd.f32 %v10693_v35, %v4799_v15  ;;  %v4871_v21 = vadd.f32 %v10693_v35, %v4800_v18  ;;  %v4872_v27 = vadd.f32 %v10693_v35, %v4801_v47  ;;  %v4873_v60 = vadd.f32 %v10693_v35, %v4802_v42 }
 0x447   : > { %v4874_v48 = vadd.f32 %v10693_v35, %v4803_v2  ;;  %v10828_v25 = vmul.f32 %v10648_v57, %v10219_v19  ;;  %v10832_v39 = vmul.f32 %v10648_v57, %v10223_v17  ;;  %v10836_v58 = vmul.f32 %v10648_v57, %v10227_v49 }
 0x448   : > { %v10840_v36 = vmul.f32 %v10648_v57, %v10230_v11  ;;  %v4988_v15 = vpack.c.bf16 %v4928_v6, %v4927_v29  ;;  %v4931_v18 = vmax.f32 %v4867_v33, 0.0  ;;  %v4875_v47 = vadd.f32 %v10693_v35, %v10703_v62 }
 0x449   : > { %v4876_v19 = vadd.f32 %v10693_v35, %v10707_v3  ;;  %v4989_v42 = vpack.c.bf16 %v4930_v14, %v4929_v63  ;;  %v4932_v2 = vmax.f32 %v4868_v13, 0.0  ;;  %v4933_v17 = vmax.f32 %v4869_v50, 0.0  ;;  %v12566_v13 = vld [vmem:[#allocation25_spill] sm:$0xff] }
 0x44a   : > { %v4934_v22 = vmax.f32 %v4870_v28, 0.0  ;;  %v4935_v49 = vmax.f32 %v4871_v21, 0.0  ;;  %v4936_v37 = vmax.f32 %v4872_v27, 0.0  ;;  %v4937_v1 = vmax.f32 %v4873_v60, 0.0 }
 0x44b   : > { %7590 = vmatmul.mubr.msk.bf16.gmra.mrb[132].mxu1 %vm597_vm2, %v4988_v15  ;;  %v4938_v38 = vmax.f32 %v4874_v48, 0.0  ;;  %v10849_v11 = vmul.f32 %v10648_v57, %v10233_v16  ;;  %v10853_v62 = vmul.f32 %v10648_v57, %v10236_v31  ;;  %v10858_v3 = vadd.f32 %v10693_v35, %v10711_v44  ;;  %v12565_v16 = vld [vmem:[#allocation27_spill] sm:$0xff]  ;;  %v12567_v44 = vld [vmem:[#allocation26_spill] sm:$0xff] }
 0x44c   : > { %7593 = vmatprep.mubr.msk.bf16.mxu1 %vm597_vm2, %v4989_v42  ;;  %v10862_v40 = vadd.f32 %v10693_v35, %v10715_v4  ;;  %v10866_v29 = vmul.f32 %v10648_v57, %v12564_v52  ;;  %v10870_v6 = vmul.f32 %v10648_v57, %v12565_v16  ;;  %v4939_v31 = vmax.f32 %v4875_v47, 0.0 }
 0x44d   : > { %v4940_v33 = vmax.f32 %v4876_v19, 0.0  ;;  %v10874_v63 = vmul.f32 %v10648_v57, %v12566_v13  ;;  %v10878_v14 = vmul.f32 %v10648_v57, %v12567_v44  ;;  %v4990_v4 = vpack.c.bf16 %v4932_v2, %v4931_v18 }
 0x44e   : > { %v4991_v50 = vpack.c.bf16 %v4934_v22, %v4933_v17  ;;  %v4992_v28 = vpack.c.bf16 %v4936_v37, %v4935_v49  ;;  %v4993_v21 = vpack.c.bf16 %v4938_v38, %v4937_v1  ;;  %v10882_v27 = vadd.f32 %v10693_v35, %v10719_v0 }
 0x44f   : > { %v10886_v60 = vadd.f32 %v10693_v35, %v10723_v10  ;;  %v4941_v48 = vmax.f32 %v10858_v3, 0.0  ;;  %v4942_v15 = vmax.f32 %v10862_v40, 0.0  ;;  %v4891_v47 = vadd.f32 %v10693_v35, %v10735_v54 }
 0x450   : > { %v4892_v18 = vadd.f32 %v10693_v35, %v10743_v51  ;;  %v10894_v19 = vpack.c.bf16 %v4940_v33, %v4939_v31  ;;  %v10898_v0 = vadd.f32 %v10693_v35, %v10727_v8  ;;  %v4893_v10 = vadd.f32 %v10693_v35, %v10747_v45 }
 0x451   : > { %v4894_v42 = vadd.f32 %v10693_v35, %v10753_v56  ;;  %v4955_v2 = vmax.f32 %v4891_v47, 0.0  ;;  %v4895_v54 = vadd.f32 %v10693_v35, %v10757_v30  ;;  %v4896_v51 = vadd.f32 %v10693_v35, %v10761_v61 }
 0x452   : > { %v4956_v17 = vmax.f32 %v4892_v18, 0.0  ;;  %v10911_v8 = vadd.f32 %v10693_v35, %v10731_v7  ;;  %v4957_v22 = vmax.f32 %v4893_v10, 0.0  ;;  %v4897_v45 = vadd.f32 %v10693_v35, %v10765_v34 }
 0x453   : > { %7594 = vmatmul.mubr.msk.bf16.gmra.mrb[136].mxu1 %vm597_vm2, %v4990_v4  ;;  %v4958_v49 = vmax.f32 %v4894_v42, 0.0  ;;  %v4959_v37 = vmax.f32 %v4895_v54, 0.0  ;;  %v4960_v30 = vmax.f32 %v4896_v51, 0.0  ;;  %v4898_v61 = vadd.f32 %v10693_v35, %v10769_v43 }
 0x454   : > { %7597 = vmatprep.mubr.msk.bf16.mxu1 %vm597_vm2, %v4991_v50  ;;  %v10916_v56 = vpack.c.bf16 %v4956_v17, %v4955_v2  ;;  %v4961_v38 = vmax.f32 %v4897_v45, 0.0  ;;  %v4899_v7 = vadd.f32 %v10693_v35, %v10773_v9  ;;  %v4900_v52 = vadd.f32 %v10693_v35, %v10779_v23 }
 0x455   : > { %v10920_v1 = vpack.c.bf16 %v4958_v49, %v4957_v22  ;;  %v10926_v16 = vpack.c.bf16 %v4960_v30, %v4959_v37  ;;  %v4962_v34 = vmax.f32 %v4898_v61, 0.0  ;;  %v4901_v31 = vadd.f32 %v10693_v35, %v10786_v26 }
 0x456   : > { %v4902_v33 = vadd.f32 %v10693_v35, %v10790_v46  ;;  %v4963_v13 = vmax.f32 %v4899_v7, 0.0  ;;  %v4964_v43 = vmax.f32 %v4900_v52, 0.0  ;;  %v4903_v44 = vadd.f32 %v10693_v35, %v10794_v55 }
 0x457   : > { %v4904_v9 = vadd.f32 %v10693_v35, %v10798_v59  ;;  %v10936_v4 = vpack.c.bf16 %v4962_v34, %v4961_v38  ;;  %v4965_v23 = vmax.f32 %v4901_v31, 0.0  ;;  %v4905_v47 = vadd.f32 %v10693_v35, %v10803_v5 }
 0x458   : > { %v4966_v50 = vmax.f32 %v4902_v33, 0.0  ;;  %v10940_v18 = vpack.c.bf16 %v4964_v43, %v4963_v13  ;;  %v4967_v26 = vmax.f32 %v4903_v44, 0.0  ;;  %v4906_v46 = vadd.f32 %v10693_v35, %v10807_v32 }
 0x459   : > { %v4968_v10 = vmax.f32 %v4904_v9, 0.0  ;;  %v4969_v55 = vmax.f32 %v4905_v47, 0.0  ;;  %v4907_v59 = vadd.f32 %v10693_v35, %v10811_v12  ;;  %v4908_v2 = vadd.f32 %v10693_v35, %v10815_v53  ;;  %v12570_v47 = vld [vmem:[#allocation30_spill] sm:$0xff] }
 0x45a   : > { %v10944_v42 = vpack.c.bf16 %v4966_v50, %v4965_v23  ;;  %v4970_v5 = vmax.f32 %v4906_v46, 0.0  ;;  %v4909_v54 = vadd.f32 %v10693_v35, %v10828_v25  ;;  %v4910_v32 = vadd.f32 %v10693_v35, %v10832_v39  ;;  %v12568_v23 = vld [vmem:[#allocation28_spill] sm:$0xff]  ;;  %v12569_v50 = vld [vmem:[#allocation29_spill] sm:$0xff] }
 0x45b   : > { %7598 = vmatmul.mubr.msk.bf16.gmra.mrb[140].mxu1 %vm597_vm2, %v4992_v28  ;;  %v10951_v17 = vpack.c.bf16 %v4968_v10, %v4967_v26  ;;  %v4971_v51 = vmax.f32 %v4907_v59, 0.0  ;;  %v4972_v22 = vmax.f32 %v4908_v2, 0.0  ;;  %v4911_v12 = vadd.f32 %v10693_v35, %v10836_v58  ;;  %v12571_v26 = vld [vmem:[#allocation31_spill] sm:$0xff] }
 0x45c   : > { %7601 = vmatprep.mubr.msk.bf16.mxu1 %vm597_vm2, %v4993_v21  ;;  %v4912_v53 = vadd.f32 %v10693_v35, %v10840_v36  ;;  %v10962_v28 = vpack.c.bf16 %v4970_v5, %v4969_v55  ;;  %v4973_v49 = vmax.f32 %v4909_v54, 0.0  ;;  %v4974_v45 = vmax.f32 %v4910_v32, 0.0  ;;  %v12572_v32 = vld [vmem:[#allocation32_spill] sm:$0xff] }
 0x45d   : > { %v4913_v25 = vadd.f32 %v10693_v35, %v10849_v11  ;;  %v10966_v37 = vpack.c.bf16 %v4972_v22, %v4971_v51  ;;  %v4975_v39 = vmax.f32 %v4911_v12, 0.0  ;;  %v4914_v21 = vadd.f32 %v10693_v35, %v10853_v62 }
 0x45e   : > { %v4976_v30 = vmax.f32 %v4912_v53, 0.0  ;;  %v10970_v61 = vpack.c.bf16 %v4974_v45, %v4973_v49  ;;  %v4915_v36 = vadd.f32 %v10693_v35, %v10866_v29  ;;  %v4916_v38 = vadd.f32 %v10693_v35, %v10870_v6  ;;  %v12574_v53 = vld [vmem:[#allocation33_spill] sm:$0xff]  ;;  %v12575_v45 = vld [vmem:[#allocation35_spill] sm:$0xff] }
 0x45f   : > { %v4977_v58 = vmax.f32 %v4913_v25, 0.0  ;;  %v4978_v52 = vmax.f32 %v4914_v21, 0.0  ;;  %v4917_v11 = vadd.f32 %v10693_v35, %v10652_v20  ;;  %v4918_v34 = vadd.f32 %v10693_v35, %v10656_v41 }
 0x460   : > { %v10976_v7 = vpack.c.bf16 %v4976_v30, %v4975_v39  ;;  %v4979_v31 = vmax.f32 %v4915_v36, 0.0  ;;  %v4980_v62 = vmax.f32 %v4916_v38, 0.0  ;;  %v4919_v33 = vadd.f32 %v10693_v35, %v10874_v63 }
 0x461   : > { %v4920_v29 = vadd.f32 %v10693_v35, %v10878_v14  ;;  %v4995_v6 = vpack.c.bf16 %v4942_v15, %v4941_v48  ;;  %v5013_v13 = vpack.c.bf16 %v4978_v52, %v4977_v58  ;;  %v4981_v43 = vmax.f32 %v4917_v11, 0.0 }
 0x462   : > { %v4982_v44 = vmax.f32 %v4918_v34, 0.0  ;;  %v5014_v20 = vpack.c.bf16 %v4980_v62, %v4979_v31  ;;  %v4983_v41 = vmax.f32 %v4919_v33, 0.0  ;;  %v4812_v63 = vmul.f32 %v10648_v57, %v12568_v23 }
 0x463   : > { %7602 = vmatmul.mubr.msk.bf16.gmra.mrb[144].mxu1 %vm597_vm2, %v10894_v19  ;;  %v4984_v9 = vmax.f32 %v4920_v29, 0.0  ;;  %v4813_v3 = vmul.f32 %v10648_v57, %v12569_v50  ;;  %v4943_v40 = vmax.f32 %v10882_v27, 0.0  ;;  %v4944_v48 = vmax.f32 %v10886_v60, 0.0 }
 0x464   : > { %7605 = vmatprep.mubr.msk.bf16.mxu1 %vm597_vm2, %v4995_v6  ;;  %v5015_v14 = vpack.c.bf16 %v4982_v44, %v4981_v43  ;;  %v4814_v19 = vmul.f32 %v10648_v57, %v12570_v47  ;;  %v4815_v10 = vmul.f32 %v10648_v57, %v12571_v26  ;;  %v4945_v46 = vmax.f32 %v10898_v0, 0.0  ;;  %v12573_v0 = vld [vmem:[#allocation4_spill] sm:$0xff] }
 0x465   : > { %v5016_v15 = vpack.c.bf16 %v4984_v9, %v4983_v41  ;;  %v4946_v55 = vmax.f32 %v10911_v8, 0.0  ;;  %v4996_v59 = vpack.c.bf16 %v4944_v48, %v4943_v40  ;;  %v4883_v2 = vadd.f32 %v10693_v35, %v4812_v63 }
 0x466   : > { %v4884_v5 = vadd.f32 %v10693_v35, %v4813_v3  ;;  %v4885_v27 = vadd.f32 %v10693_v35, %v4814_v19  ;;  %v4886_v60 = vadd.f32 %v10693_v35, %v4815_v10  ;;  %v4816_v51 = vmul.f32 %v10648_v57, %v12572_v32 }
 0x467   : > { %v4997_v54 = vpack.c.bf16 %v4946_v55, %v4945_v46  ;;  %v4817_v8 = vmul.f32 %v10648_v57, %v12573_v0  ;;  %v4947_v22 = vmax.f32 %v4883_v2, 0.0  ;;  %v4818_v49 = vmul.f32 %v10648_v57, %v12574_v53 }
 0x468   : > { %v4948_v12 = vmax.f32 %v4884_v5, 0.0  ;;  %v4819_v25 = vmul.f32 %v10648_v57, %v12575_v45  ;;  %v4949_v39 = vmax.f32 %v4885_v27, 0.0  ;;  %v4950_v30 = vmax.f32 %v4886_v60, 0.0 }
 0x469   : > { %v4887_v58 = vadd.f32 %v10693_v35, %v4816_v51  ;;  %v4888_v36 = vadd.f32 %v10693_v35, %v4817_v8  ;;  %v4889_v52 = vadd.f32 %v10693_v35, %v4818_v49 }
 0x46a   : > { %v4998_v21 = vpack.c.bf16 %v4948_v12, %v4947_v22  ;;  %v4999_v38 = vpack.c.bf16 %v4950_v30, %v4949_v39  ;;  %v4890_v11 = vadd.f32 %v10693_v35, %v4819_v25 }
 0x46b   : > { %7606 = vmatmul.mubr.msk.bf16.gmra.mrb[148].mxu1 %vm597_vm2, %v4996_v59  ;;  %v4951_v34 = vmax.f32 %v4887_v58, 0.0  ;;  %v4952_v31 = vmax.f32 %v4888_v36, 0.0  ;;  %v4953_v62 = vmax.f32 %v4889_v52, 0.0 }
 0x46c   : > { %7609 = vmatprep.mubr.msk.bf16.mxu1 %vm597_vm2, %v4997_v54  ;;  %v4954_v57 = vmax.f32 %v4890_v11, 0.0 }
 0x46d   : > { %v5000_v33 = vpack.c.bf16 %v4952_v31, %v4951_v34 }
 0x46e   : > { %v5001_v29 = vpack.c.bf16 %v4954_v57, %v4953_v62 }
 0x473   : > { %7610 = vmatmul.mubr.msk.bf16.gmra.mrb[152].mxu1 %vm597_vm2, %v4998_v21 }
 0x474   : > { %7613 = vmatprep.mubr.msk.bf16.mxu1 %vm597_vm2, %v4999_v38 }
 0x47b   : > { %7614 = vmatmul.mubr.msk.bf16.gmra.mrb[156].mxu1 %vm597_vm2, %v5000_v33 }
 0x47c   : > { %7617 = vmatprep.mubr.msk.bf16.mxu1 %vm597_vm2, %v5001_v29 }
 0x483   : > { %7618 = vmatmul.mubr.msk.bf16.gmra.mrb[160].mxu1 %vm597_vm2, %v10916_v56 }
 0x484   : > { %7621 = vmatprep.mubr.msk.bf16.mxu1 %vm597_vm2, %v10920_v1 }
 0x48b   : > { %7622 = vmatmul.mubr.msk.bf16.gmra.mrb[164].mxu1 %vm597_vm2, %v10926_v16 }
 0x48c   : > { %7625 = vmatprep.mubr.msk.bf16.mxu1 %vm597_vm2, %v10936_v4 }
 0x493   : > { %7626 = vmatmul.mubr.msk.bf16.gmra.mrb[168].mxu1 %vm597_vm2, %v10940_v18 }
 0x494   : > { %7629 = vmatprep.mubr.msk.bf16.mxu1 %vm597_vm2, %v10944_v42 }
 0x49b   : > { %7630 = vmatmul.mubr.msk.bf16.gmra.mrb[172].mxu1 %vm597_vm2, %v10951_v17 }
 0x49c   : > { %7633 = vmatprep.mubr.msk.bf16.mxu1 %vm597_vm2, %v10962_v28 }
 0x4a3   : > { %7634 = vmatmul.mubr.msk.bf16.gmra.mrb[176].mxu1 %vm597_vm2, %v10966_v37 }
 0x4a4   : > { %7637 = vmatprep.mubr.msk.bf16.mxu1 %vm597_vm2, %v10970_v61 }
 0x4ab   : > { %7638 = vmatmul.mubr.msk.bf16.gmra.mrb[180].mxu1 %vm597_vm2, %v10976_v7 }
 0x4ac   : > { %7641 = vmatprep.mubr.msk.bf16.mxu1 %vm597_vm2, %v5013_v13 }
 0x4b3   : > { %7642 = vmatmul.mubr.msk.bf16.gmra.mrb[184].mxu1 %vm597_vm2, %v5014_v20 }
 0x4b4   : > { %7645 = vmatprep.mubr.msk.bf16.mxu1 %vm597_vm2, %v5015_v14 }
 0x4bb   : > { %7646 = vmatmul.mubr.msk.bf16.gmra.mrb[188].mxu1 %vm597_vm2, %v5016_v15 }
 0x516   : > { %v11053_v35 = vpop.f32.mrb[128].mxu1 }
 0x517   : > { %v11055_v56 = vpop.f32.mrb[129].mxu1  ;;  %5411 = vst [vmem:[#allocation3 + $0x10] sm:$0xff] (!%p6290_p4), %v11053_v35 }
 0x518   : > { %v11057_v1 = vpop.f32.mrb[130].mxu1  ;;  %5409 = vst [vmem:[#allocation3] sm:$0xff] (!%p6290_p4), %v11055_v56 }
 0x519   : > { %v11059_v16 = vpop.f32.mrb[131].mxu1  ;;  %5412 = vst [vmem:[#allocation3 + $0x18] sm:$0xff] (!%p6290_p4), %v11057_v1 }
 0x51a   : > { %5410 = vst [vmem:[#allocation3 + $0x8] sm:$0xff] (!%p6290_p4), %v11059_v16 }
 0x51e   : > { %v11061_v4 = vpop.f32.mrb[132].mxu1 }
 0x51f   : > { %v11063_v18 = vpop.f32.mrb[133].mxu1  ;;  %5415 = vst [vmem:[#allocation3 + $0x30] sm:$0xff] (!%p6290_p4), %v11061_v4 }
 0x520   : > { %v11065_v42 = vpop.f32.mrb[134].mxu1  ;;  %5413 = vst [vmem:[#allocation3 + $0x20] sm:$0xff] (!%p6290_p4), %v11063_v18 }
 0x521   : > { %v11067_v17 = vpop.f32.mrb[135].mxu1  ;;  %5416 = vst [vmem:[#allocation3 + $0x38] sm:$0xff] (!%p6290_p4), %v11065_v42 }
 0x522   : > { %5414 = vst [vmem:[#allocation3 + $0x28] sm:$0xff] (!%p6290_p4), %v11067_v17 }
 0x526   : > { %v11069_v28 = vpop.f32.mrb[136].mxu1 }
 0x527   : > { %v11071_v37 = vpop.f32.mrb[137].mxu1  ;;  %5419 = vst [vmem:[#allocation3 + $0x50] sm:$0xff] (!%p6290_p4), %v11069_v28 }
 0x528   : > { %v11073_v61 = vpop.f32.mrb[138].mxu1  ;;  %5417 = vst [vmem:[#allocation3 + $0x40] sm:$0xff] (!%p6290_p4), %v11071_v37 }
 0x529   : > { %v11075_v7 = vpop.f32.mrb[139].mxu1  ;;  %5420 = vst [vmem:[#allocation3 + $0x58] sm:$0xff] (!%p6290_p4), %v11073_v61 }
 0x52a   : > { %5418 = vst [vmem:[#allocation3 + $0x48] sm:$0xff] (!%p6290_p4), %v11075_v7 }
 0x52e   : > { %v11077_v6 = vpop.f32.mrb[140].mxu1 }
 0x52f   : > { %v11079_v13 = vpop.f32.mrb[141].mxu1  ;;  %5423 = vst [vmem:[#allocation3 + $0x70] sm:$0xff] (!%p6290_p4), %v11077_v6 }
 0x530   : > { %v11081_v43 = vpop.f32.mrb[142].mxu1  ;;  %5421 = vst [vmem:[#allocation3 + $0x60] sm:$0xff] (!%p6290_p4), %v11079_v13 }
 0x531   : > { %v11083_v44 = vpop.f32.mrb[143].mxu1  ;;  %5424 = vst [vmem:[#allocation3 + $0x78] sm:$0xff] (!%p6290_p4), %v11081_v43 }
 0x532   : > { %5422 = vst [vmem:[#allocation3 + $0x68] sm:$0xff] (!%p6290_p4), %v11083_v44 }
 0x536   : > { %v11085_v20 = vpop.f32.mrb[144].mxu1 }
 0x537   : > { %v11087_v41 = vpop.f32.mrb[145].mxu1  ;;  %5427 = vst [vmem:[#allocation3 + $0x90] sm:$0xff] (!%p6290_p4), %v11085_v20 }
 0x538   : > { %v11089_v9 = vpop.f32.mrb[146].mxu1  ;;  %5425 = vst [vmem:[#allocation3 + $0x80] sm:$0xff] (!%p6290_p4), %v11087_v41 }
 0x539   : > { %v11091_v23 = vpop.f32.mrb[147].mxu1  ;;  %5428 = vst [vmem:[#allocation3 + $0x98] sm:$0xff] (!%p6290_p4), %v11089_v9 }
 0x53a   : > { %5426 = vst [vmem:[#allocation3 + $0x88] sm:$0xff] (!%p6290_p4), %v11091_v23 }
 0x53e   : > { %v11093_v63 = vpop.f32.mrb[148].mxu1 }
 0x53f   : > { %v11095_v14 = vpop.f32.mrb[149].mxu1  ;;  %5431 = vst [vmem:[#allocation3 + $0xb0] sm:$0xff] (!%p6290_p4), %v11093_v63 }
 0x540   : > { %v11097_v50 = vpop.f32.mrb[150].mxu1  ;;  %5429 = vst [vmem:[#allocation3 + $0xa0] sm:$0xff] (!%p6290_p4), %v11095_v14 }
 0x541   : > { %v11099_v3 = vpop.f32.mrb[151].mxu1  ;;  %5432 = vst [vmem:[#allocation3 + $0xb8] sm:$0xff] (!%p6290_p4), %v11097_v50 }
 0x542   : > { %5430 = vst [vmem:[#allocation3 + $0xa8] sm:$0xff] (!%p6290_p4), %v11099_v3 }
 0x546   : > { %v11101_v40 = vpop.f32.mrb[152].mxu1 }
 0x547   : > { %v11103_v48 = vpop.f32.mrb[153].mxu1  ;;  %5435 = vst [vmem:[#allocation3 + $0xd0] sm:$0xff] (!%p6290_p4), %v11101_v40 }
 0x548   : > { %v11105_v15 = vpop.f32.mrb[154].mxu1  ;;  %5433 = vst [vmem:[#allocation3 + $0xc0] sm:$0xff] (!%p6290_p4), %v11103_v48 }
 0x549   : > { %v11107_v47 = vpop.f32.mrb[155].mxu1  ;;  %5436 = vst [vmem:[#allocation3 + $0xd8] sm:$0xff] (!%p6290_p4), %v11105_v15 }
 0x54a   : > { %5434 = vst [vmem:[#allocation3 + $0xc8] sm:$0xff] (!%p6290_p4), %v11107_v47 }
 0x54e   : > { %v11109_v19 = vpop.f32.mrb[156].mxu1 }
 0x54f   : > { %v11111_v26 = vpop.f32.mrb[157].mxu1  ;;  %5439 = vst [vmem:[#allocation3 + $0xf0] sm:$0xff] (!%p6290_p4), %v11109_v19 }
 0x550   : > { %v11113_v10 = vpop.f32.mrb[158].mxu1  ;;  %5437 = vst [vmem:[#allocation3 + $0xe0] sm:$0xff] (!%p6290_p4), %v11111_v26 }
 0x551   : > { %v11115_v46 = vpop.f32.mrb[159].mxu1  ;;  %5440 = vst [vmem:[#allocation3 + $0xf8] sm:$0xff] (!%p6290_p4), %v11113_v10 }
 0x552   : > { %5438 = vst [vmem:[#allocation3 + $0xe8] sm:$0xff] (!%p6290_p4), %v11115_v46 }
 0x556   : > { %v11117_v55 = vpop.f32.mrb[160].mxu1 }
 0x557   : > { %v11119_v59 = vpop.f32.mrb[161].mxu1  ;;  %5443 = vst [vmem:[#allocation3 + $0x110] sm:$0xff] (!%p6290_p4), %v11117_v55 }
 0x558   : > { %v11121_v2 = vpop.f32.mrb[162].mxu1  ;;  %5441 = vst [vmem:[#allocation3 + $0x100] sm:$0xff] (!%p6290_p4), %v11119_v59 }
 0x559   : > { %v11123_v5 = vpop.f32.mrb[163].mxu1  ;;  %5444 = vst [vmem:[#allocation3 + $0x118] sm:$0xff] (!%p6290_p4), %v11121_v2 }
 0x55a   : > { %5442 = vst [vmem:[#allocation3 + $0x108] sm:$0xff] (!%p6290_p4), %v11123_v5 }
 0x55e   : > { %v11125_v54 = vpop.f32.mrb[164].mxu1 }
 0x55f   : > { %v11127_v27 = vpop.f32.mrb[165].mxu1  ;;  %5447 = vst [vmem:[#allocation3 + $0x130] sm:$0xff] (!%p6290_p4), %v11125_v54 }
 0x560   : > { %v11129_v60 = vpop.f32.mrb[166].mxu1  ;;  %5445 = vst [vmem:[#allocation3 + $0x120] sm:$0xff] (!%p6290_p4), %v11127_v27 }
 0x561   : > { %v11131_v32 = vpop.f32.mrb[167].mxu1  ;;  %5448 = vst [vmem:[#allocation3 + $0x138] sm:$0xff] (!%p6290_p4), %v11129_v60 }
 0x562   : > { %5446 = vst [vmem:[#allocation3 + $0x128] sm:$0xff] (!%p6290_p4), %v11131_v32 }
 0x566   : > { %v11133_v51 = vpop.f32.mrb[168].mxu1 }
 0x567   : > { %v11135_v0 = vpop.f32.mrb[169].mxu1  ;;  %5451 = vst [vmem:[#allocation3 + $0x150] sm:$0xff] (!%p6290_p4), %v11133_v51 }
 0x568   : > { %v11137_v8 = vpop.f32.mrb[170].mxu1  ;;  %5449 = vst [vmem:[#allocation3 + $0x140] sm:$0xff] (!%p6290_p4), %v11135_v0 }
 0x569   : > { %v11139_v22 = vpop.f32.mrb[171].mxu1  ;;  %5452 = vst [vmem:[#allocation3 + $0x158] sm:$0xff] (!%p6290_p4), %v11137_v8 }
 0x56a   : > { %5450 = vst [vmem:[#allocation3 + $0x148] sm:$0xff] (!%p6290_p4), %v11139_v22 }
 0x56e   : > { %v11141_v12 = vpop.f32.mrb[172].mxu1 }
 0x56f   : > { %v11143_v53 = vpop.f32.mrb[173].mxu1  ;;  %5455 = vst [vmem:[#allocation3 + $0x170] sm:$0xff] (!%p6290_p4), %v11141_v12 }
 0x570   : > { %v11145_v49 = vpop.f32.mrb[174].mxu1  ;;  %5453 = vst [vmem:[#allocation3 + $0x160] sm:$0xff] (!%p6290_p4), %v11143_v53 }
 0x571   : > { %v11147_v45 = vpop.f32.mrb[175].mxu1  ;;  %5456 = vst [vmem:[#allocation3 + $0x178] sm:$0xff] (!%p6290_p4), %v11145_v49 }
 0x572   : > { %5454 = vst [vmem:[#allocation3 + $0x168] sm:$0xff] (!%p6290_p4), %v11147_v45 }
 0x576   : > { %v11149_v25 = vpop.f32.mrb[176].mxu1 }
 0x577   : > { %12576 = vst [vmem:[#allocation39_spill] sm:$0xff] %v11149_v25  ;;  %v11151_v39 = vpop.f32.mrb[177].mxu1  ;;  %5459 = vst [vmem:[#allocation3 + $0x190] sm:$0xff] (!%p6290_p4), %v11149_v25 }
 0x578   : > { %v11153_v30 = vpop.f32.mrb[178].mxu1  ;;  %5457 = vst [vmem:[#allocation3 + $0x180] sm:$0xff] (!%p6290_p4), %v11151_v39 }
 0x579   : > { %12577 = vst [vmem:[#allocation7_spill] sm:$0xff] %v11153_v30  ;;  %v11155_v21 = vpop.f32.mrb[179].mxu1  ;;  %5460 = vst [vmem:[#allocation3 + $0x198] sm:$0xff] (!%p6290_p4), %v11153_v30 }
 0x57a   : > { %12578 = vst [vmem:[#allocation45_spill] sm:$0xff] %v11155_v21  ;;  %5458 = vst [vmem:[#allocation3 + $0x188] sm:$0xff] (!%p6290_p4), %v11155_v21 }
 0x57e   : > { %v11157_v58 = vpop.f32.mrb[180].mxu1 }
 0x57f   : > { %12579 = vst [vmem:[#allocation40_spill] sm:$0xff] %v11157_v58  ;;  %v11159_v36 = vpop.f32.mrb[181].mxu1  ;;  %5463 = vst [vmem:[#allocation3 + $0x1b0] sm:$0xff] (!%p6290_p4), %v11157_v58 }
 0x580   : > { %12580 = vst [vmem:[#allocation41_spill] sm:$0xff] %v11159_v36  ;;  %v11161_v38 = vpop.f32.mrb[182].mxu1  ;;  %5461 = vst [vmem:[#allocation3 + $0x1a0] sm:$0xff] (!%p6290_p4), %v11159_v36 }
 0x581   : > { %12581 = vst [vmem:[#allocation43_spill] sm:$0xff] %v11161_v38  ;;  %v11163_v52 = vpop.f32.mrb[183].mxu1  ;;  %5464 = vst [vmem:[#allocation3 + $0x1b8] sm:$0xff] (!%p6290_p4), %v11161_v38 }
 0x582   : > { %12582 = vst [vmem:[#allocation42_spill] sm:$0xff] %v11163_v52  ;;  %5462 = vst [vmem:[#allocation3 + $0x1a8] sm:$0xff] (!%p6290_p4), %v11163_v52 }
 0x586   : > { %v11165_v11 = vpop.f32.mrb[184].mxu1 }
 0x587   : > { %12583 = vst [vmem:[#allocation44_spill] sm:$0xff] %v11165_v11  ;;  %v11167_v34 = vpop.f32.mrb[185].mxu1  ;;  %5467 = vst [vmem:[#allocation3 + $0x1d0] sm:$0xff] (!%p6290_p4), %v11165_v11 }
 0x588   : > { %12584 = vst [vmem:[#allocation47_spill] sm:$0xff] %v11167_v34  ;;  %v11169_v31 = vpop.f32.mrb[186].mxu1  ;;  %5465 = vst [vmem:[#allocation3 + $0x1c0] sm:$0xff] (!%p6290_p4), %v11167_v34 }
 0x589   : > { %12585 = vst [vmem:[#allocation46_spill] sm:$0xff] %v11169_v31  ;;  %v11171_v62 = vpop.f32.mrb[187].mxu1  ;;  %5468 = vst [vmem:[#allocation3 + $0x1d8] sm:$0xff] (!%p6290_p4), %v11169_v31 }
 0x58a   : > { %12586 = vst [vmem:[#allocation48_spill] sm:$0xff] %v11171_v62  ;;  %5466 = vst [vmem:[#allocation3 + $0x1c8] sm:$0xff] (!%p6290_p4), %v11171_v62 }
 0x58c   : > { %5408 = sbr.rel (%p6290_p4) target bundleno = 1427 (0x593), region = 56 }
 0x58e   : > { %v11173_v57 = vpop.f32.mrb[188].mxu1 }
 0x58f   : > { %12587 = vst [vmem:[#allocation9_spill] sm:$0xff] %v11173_v57  ;;  %v11175_v33 = vpop.f32.mrb[189].mxu1  ;;  %5471 = vst [vmem:[#allocation3 + $0x1f0] sm:$0xff] (!%p6290_p4), %v11173_v57 }
 0x590   : > { %12588 = vst [vmem:[#allocation10_spill] sm:$0xff] %v11175_v33  ;;  %v11177_v29 = vpop.f32.mrb[190].mxu1  ;;  %5469 = vst [vmem:[#allocation3 + $0x1e0] sm:$0xff] (!%p6290_p4), %v11175_v33 }
 0x591   : > { %12589 = vst [vmem:[#allocation11_spill] sm:$0xff] %v11177_v29  ;;  %v11179_v24 = vpop.f32.mrb[191].mxu1  ;;  %5472 = vst [vmem:[#allocation3 + $0x1f8] sm:$0xff] (!%p6290_p4), %v11177_v29 }
 0x592   : > { %12590 = vst [vmem:[#allocation50_spill] sm:$0xff] %v11179_v24  ;;  %5470 = vst [vmem:[#allocation3 + $0x1e8] sm:$0xff] (!%p6290_p4), %v11179_v24 }
 0x593 PF: > { %p6653_p5 = scmp.le.s32.totalorder %s8178_s25, 0 }
 0x594   : > { %v5477_v38 = vld [vmem:[#allocation3] sm:$0xff] (!%p6653_p5)  ;;  %v5478_v34 = vld [vmem:[#allocation3 + $0x8] sm:$0xff] (!%p6653_p5)  ;;  %v5479_v58 = vld [vmem:[#allocation3 + $0x10] sm:$0xff] (!%p6653_p5) }
 0x595   : > { %5476 = sbr.rel (%p6653_p5) target bundleno = 1467 (0x5bb), region = 60  ;;  %v5541_v62 = vadd.f32 (!%p6653_p5), %v5477_v38, %v11055_v56  ;;  %v5542_v11 = vadd.f32 (!%p6653_p5), %v5478_v34, %v11059_v16  ;;  %v5543_v31 = vadd.f32 (!%p6653_p5), %v11053_v35, %v5479_v58  ;;  %v5480_v33 = vld [vmem:[#allocation3 + $0x18] sm:$0xff] (!%p6653_p5)  ;;  %v5481_v52 = vld [vmem:[#allocation3 + $0x20] sm:$0xff] (!%p6653_p5)  ;;  %v5482_v24 = vld [vmem:[#allocation3 + $0x28] sm:$0xff] (!%p6653_p5) }
 0x596   : > { %v5544_v57 = vadd.f32 (!%p6653_p5), %v11057_v1, %v5480_v33  ;;  %v5545_v29 = vadd.f32 (!%p6653_p5), %v5481_v52, %v11063_v18  ;;  %v5546_v36 = vadd.f32 (!%p6653_p5), %v5482_v24, %v11067_v17  ;;  %v5483_v30 = vld [vmem:[#allocation3 + $0x30] sm:$0xff] (!%p6653_p5)  ;;  %v5484_v25 = vld [vmem:[#allocation3 + $0x38] sm:$0xff] (!%p6653_p5)  ;;  %v5485_v21 = vld [vmem:[#allocation3 + $0x40] sm:$0xff] (!%p6653_p5) }
 0x597   : > { %5605 = vst [vmem:[#allocation3] sm:$0xff] (!%p6653_p5), %v5541_v62  ;;  %5606 = vst [vmem:[#allocation3 + $0x8] sm:$0xff] (!%p6653_p5), %v5542_v11  ;;  %v5547_v56 = vadd.f32 (!%p6653_p5), %v11061_v4, %v5483_v30  ;;  %v5548_v16 = vadd.f32 (!%p6653_p5), %v11065_v42, %v5484_v25  ;;  %v5549_v35 = vadd.f32 (!%p6653_p5), %v5485_v21, %v11071_v37  ;;  %v5486_v58 = vld [vmem:[#allocation3 + $0x48] sm:$0xff] (!%p6653_p5)  ;;  %v5487_v38 = vld [vmem:[#allocation3 + $0x50] sm:$0xff] (!%p6653_p5) }
 0x598   : > { %5607 = vst [vmem:[#allocation3 + $0x10] sm:$0xff] (!%p6653_p5), %v5543_v31  ;;  %v5488_v34 = vld [vmem:[#allocation3 + $0x58] sm:$0xff] (!%p6653_p5)  ;;  %5608 = vst [vmem:[#allocation3 + $0x18] sm:$0xff] (!%p6653_p5), %v5544_v57  ;;  %v5550_v24 = vadd.f32 (!%p6653_p5), %v5486_v58, %v11075_v7  ;;  %v5551_v1 = vadd.f32 (!%p6653_p5), %v11069_v28, %v5487_v38  ;;  %v5489_v17 = vld [vmem:[#allocation3 + $0x60] sm:$0xff] (!%p6653_p5) }
 0x599   : > { %5609 = vst [vmem:[#allocation3 + $0x20] sm:$0xff] (!%p6653_p5), %v5545_v29  ;;  %5610 = vst [vmem:[#allocation3 + $0x28] sm:$0xff] (!%p6653_p5), %v5546_v36  ;;  %v5552_v18 = vadd.f32 (!%p6653_p5), %v11073_v61, %v5488_v34  ;;  %v5490_v52 = vld [vmem:[#allocation3 + $0x68] sm:$0xff] (!%p6653_p5)  ;;  %v5491_v11 = vld [vmem:[#allocation3 + $0x70] sm:$0xff] (!%p6653_p5)  ;;  %v5553_v4 = vadd.f32 (!%p6653_p5), %v5489_v17, %v11079_v13 }
 0x59a   : > { %5611 = vst [vmem:[#allocation3 + $0x30] sm:$0xff] (!%p6653_p5), %v5547_v56  ;;  %5612 = vst [vmem:[#allocation3 + $0x38] sm:$0xff] (!%p6653_p5), %v5548_v16  ;;  %v5554_v42 = vadd.f32 (!%p6653_p5), %v5490_v52, %v11083_v44  ;;  %v5555_v37 = vadd.f32 (!%p6653_p5), %v11077_v6, %v5491_v11  ;;  %v5492_v25 = vld [vmem:[#allocation3 + $0x78] sm:$0xff] (!%p6653_p5)  ;;  %v5493_v30 = vld [vmem:[#allocation3 + $0x80] sm:$0xff] (!%p6653_p5) }
 0x59b   : > { %5613 = vst [vmem:[#allocation3 + $0x40] sm:$0xff] (!%p6653_p5), %v5549_v35  ;;  %v5494_v21 = vld [vmem:[#allocation3 + $0x88] sm:$0xff] (!%p6653_p5)  ;;  %5614 = vst [vmem:[#allocation3 + $0x48] sm:$0xff] (!%p6653_p5), %v5550_v24  ;;  %v5556_v28 = vadd.f32 (!%p6653_p5), %v11081_v43, %v5492_v25  ;;  %v5557_v61 = vadd.f32 (!%p6653_p5), %v5493_v30, %v11087_v41  ;;  %v5495_v36 = vld [vmem:[#allocation3 + $0x90] sm:$0xff] (!%p6653_p5) }
 0x59c   : > { %5615 = vst [vmem:[#allocation3 + $0x50] sm:$0xff] %v5551_v1  ;;  %5616 = vst [vmem:[#allocation3 + $0x58] sm:$0xff] %v5552_v18  ;;  %v5558_v7 = vadd.f32 %v5494_v21, %v11091_v23  ;;  %v5496_v31 = vld [vmem:[#allocation3 + $0x98] sm:$0xff]  ;;  %v5497_v62 = vld [vmem:[#allocation3 + $0xa0] sm:$0xff]  ;;  %v5559_v6 = vadd.f32 %v11085_v20, %v5495_v36 }
 0x59d   : > { %5617 = vst [vmem:[#allocation3 + $0x60] sm:$0xff] %v5553_v4  ;;  %5618 = vst [vmem:[#allocation3 + $0x68] sm:$0xff] %v5554_v42  ;;  %v5560_v13 = vadd.f32 %v11089_v9, %v5496_v31  ;;  %v5561_v44 = vadd.f32 %v5497_v62, %v11095_v14  ;;  %v5498_v57 = vld [vmem:[#allocation3 + $0xa8] sm:$0xff]  ;;  %v5499_v33 = vld [vmem:[#allocation3 + $0xb0] sm:$0xff] }
 0x59e   : > { %5619 = vst [vmem:[#allocation3 + $0x70] sm:$0xff] %v5555_v37  ;;  %v5500_v29 = vld [vmem:[#allocation3 + $0xb8] sm:$0xff]  ;;  %5620 = vst [vmem:[#allocation3 + $0x78] sm:$0xff] %v5556_v28  ;;  %v5562_v43 = vadd.f32 %v5498_v57, %v11099_v3  ;;  %v5563_v41 = vadd.f32 %v11093_v63, %v5499_v33  ;;  %v5501_v56 = vld [vmem:[#allocation3 + $0xc0] sm:$0xff] }
 0x59f   : > { %5621 = vst [vmem:[#allocation3 + $0x80] sm:$0xff] %v5557_v61  ;;  %5622 = vst [vmem:[#allocation3 + $0x88] sm:$0xff] %v5558_v7  ;;  %v5564_v23 = vadd.f32 %v11097_v50, %v5500_v29  ;;  %v5502_v16 = vld [vmem:[#allocation3 + $0xc8] sm:$0xff]  ;;  %v5503_v35 = vld [vmem:[#allocation3 + $0xd0] sm:$0xff]  ;;  %v5565_v20 = vadd.f32 %v5501_v56, %v11103_v48 }
 0x5a0   : > { %5623 = vst [vmem:[#allocation3 + $0x90] sm:$0xff] %v5559_v6  ;;  %5624 = vst [vmem:[#allocation3 + $0x98] sm:$0xff] %v5560_v13  ;;  %v5566_v9 = vadd.f32 %v5502_v16, %v11107_v47  ;;  %v5567_v14 = vadd.f32 %v11101_v40, %v5503_v35  ;;  %v5504_v58 = vld [vmem:[#allocation3 + $0xd8] sm:$0xff]  ;;  %v5505_v38 = vld [vmem:[#allocation3 + $0xe0] sm:$0xff] }
 0x5a1   : > { %5625 = vst [vmem:[#allocation3 + $0xa0] sm:$0xff] %v5561_v44  ;;  %v5506_v34 = vld [vmem:[#allocation3 + $0xe8] sm:$0xff]  ;;  %5626 = vst [vmem:[#allocation3 + $0xa8] sm:$0xff] %v5562_v43  ;;  %v5568_v63 = vadd.f32 %v11105_v15, %v5504_v58  ;;  %v5569_v50 = vadd.f32 %v5505_v38, %v11111_v26  ;;  %v5507_v24 = vld [vmem:[#allocation3 + $0xf0] sm:$0xff] }
 0x5a2   : > { %5627 = vst [vmem:[#allocation3 + $0xb0] sm:$0xff] %v5563_v41  ;;  %5628 = vst [vmem:[#allocation3 + $0xb8] sm:$0xff] %v5564_v23  ;;  %v5570_v3 = vadd.f32 %v5506_v34, %v11115_v46  ;;  %v5508_v1 = vld [vmem:[#allocation3 + $0xf8] sm:$0xff]  ;;  %v5509_v18 = vld [vmem:[#allocation3 + $0x100] sm:$0xff]  ;;  %v5571_v40 = vadd.f32 %v11109_v19, %v5507_v24 }
 0x5a3   : > { %5629 = vst [vmem:[#allocation3 + $0xc0] sm:$0xff] %v5565_v20  ;;  %5630 = vst [vmem:[#allocation3 + $0xc8] sm:$0xff] %v5566_v9  ;;  %v5572_v48 = vadd.f32 %v11113_v10, %v5508_v1  ;;  %v5573_v47 = vadd.f32 %v5509_v18, %v11119_v59  ;;  %v5510_v17 = vld [vmem:[#allocation3 + $0x108] sm:$0xff]  ;;  %v5511_v52 = vld [vmem:[#allocation3 + $0x110] sm:$0xff] }
 0x5a4   : > { %5631 = vst [vmem:[#allocation3 + $0xd0] sm:$0xff] %v5567_v14  ;;  %v5512_v11 = vld [vmem:[#allocation3 + $0x118] sm:$0xff]  ;;  %5632 = vst [vmem:[#allocation3 + $0xd8] sm:$0xff] %v5568_v63  ;;  %v5574_v15 = vadd.f32 %v5510_v17, %v11123_v5  ;;  %v5575_v26 = vadd.f32 %v11117_v55, %v5511_v52  ;;  %v5513_v4 = vld [vmem:[#allocation3 + $0x120] sm:$0xff] }
 0x5a5   : > { %5633 = vst [vmem:[#allocation3 + $0xe0] sm:$0xff] %v5569_v50  ;;  %5634 = vst [vmem:[#allocation3 + $0xe8] sm:$0xff] %v5570_v3  ;;  %v5576_v46 = vadd.f32 %v11121_v2, %v5512_v11  ;;  %v5514_v42 = vld [vmem:[#allocation3 + $0x128] sm:$0xff]  ;;  %v5515_v37 = vld [vmem:[#allocation3 + $0x130] sm:$0xff]  ;;  %v5577_v19 = vadd.f32 %v5513_v4, %v11127_v27 }
 0x5a6   : > { %5635 = vst [vmem:[#allocation3 + $0xf0] sm:$0xff] %v5571_v40  ;;  %5636 = vst [vmem:[#allocation3 + $0xf8] sm:$0xff] %v5572_v48  ;;  %v5578_v10 = vadd.f32 %v5514_v42, %v11131_v32  ;;  %v5579_v59 = vadd.f32 %v11125_v54, %v5515_v37  ;;  %v5516_v25 = vld [vmem:[#allocation3 + $0x138] sm:$0xff]  ;;  %v5517_v30 = vld [vmem:[#allocation3 + $0x140] sm:$0xff] }
 0x5a7   : > { %5637 = vst [vmem:[#allocation3 + $0x100] sm:$0xff] %v5573_v47  ;;  %v5518_v21 = vld [vmem:[#allocation3 + $0x148] sm:$0xff]  ;;  %5638 = vst [vmem:[#allocation3 + $0x108] sm:$0xff] %v5574_v15  ;;  %v5580_v55 = vadd.f32 %v11129_v60, %v5516_v25  ;;  %v5581_v2 = vadd.f32 %v5517_v30, %v11135_v0  ;;  %v5519_v28 = vld [vmem:[#allocation3 + $0x150] sm:$0xff] }
 0x5a8   : > { %5639 = vst [vmem:[#allocation3 + $0x110] sm:$0xff] %v5575_v26  ;;  %5640 = vst [vmem:[#allocation3 + $0x118] sm:$0xff] %v5576_v46  ;;  %v5582_v5 = vadd.f32 %v5518_v21, %v11139_v22  ;;  %v5520_v61 = vld [vmem:[#allocation3 + $0x158] sm:$0xff]  ;;  %v5521_v7 = vld [vmem:[#allocation3 + $0x160] sm:$0xff]  ;;  %v5583_v54 = vadd.f32 %v11133_v51, %v5519_v28 }
 0x5a9   : > { %5641 = vst [vmem:[#allocation3 + $0x120] sm:$0xff] %v5577_v19  ;;  %5642 = vst [vmem:[#allocation3 + $0x128] sm:$0xff] %v5578_v10  ;;  %v5584_v27 = vadd.f32 %v11137_v8, %v5520_v61  ;;  %v5585_v32 = vadd.f32 %v5521_v7, %v11143_v53  ;;  %v5522_v36 = vld [vmem:[#allocation3 + $0x168] sm:$0xff]  ;;  %v5523_v31 = vld [vmem:[#allocation3 + $0x170] sm:$0xff] }
 0x5aa   : > { %5643 = vst [vmem:[#allocation3 + $0x130] sm:$0xff] %v5579_v59  ;;  %v5524_v62 = vld [vmem:[#allocation3 + $0x178] sm:$0xff]  ;;  %5644 = vst [vmem:[#allocation3 + $0x138] sm:$0xff] %v5580_v55  ;;  %v5586_v60 = vadd.f32 %v5522_v36, %v11147_v45  ;;  %v5587_v0 = vadd.f32 %v11141_v12, %v5523_v31  ;;  %v5525_v6 = vld [vmem:[#allocation3 + $0x180] sm:$0xff] }
 0x5ab   : > { %5645 = vst [vmem:[#allocation3 + $0x140] sm:$0xff] %v5581_v2  ;;  %5646 = vst [vmem:[#allocation3 + $0x148] sm:$0xff] %v5582_v5  ;;  %v5588_v22 = vadd.f32 %v11145_v49, %v5524_v62  ;;  %v5526_v13 = vld [vmem:[#allocation3 + $0x188] sm:$0xff]  ;;  %v5527_v44 = vld [vmem:[#allocation3 + $0x190] sm:$0xff]  ;;  %v5589_v51 = vadd.f32 %v5525_v6, %v11151_v39 }
 0x5ac   : > { %5647 = vst [vmem:[#allocation3 + $0x150] sm:$0xff] %v5583_v54  ;;  %5648 = vst [vmem:[#allocation3 + $0x158] sm:$0xff] %v5584_v27  ;;  %v12591_v8 = vld [vmem:[#allocation45_spill] sm:$0xff]  ;;  %v12592_v57 = vld [vmem:[#allocation39_spill] sm:$0xff] }
 0x5ad   : > { %5649 = vst [vmem:[#allocation3 + $0x160] sm:$0xff] %v5585_v32  ;;  %v5590_v53 = vadd.f32 %v5526_v13, %v12591_v8  ;;  %v5591_v33 = vadd.f32 %v12592_v57, %v5527_v44  ;;  %v5528_v29 = vld [vmem:[#allocation3 + $0x198] sm:$0xff]  ;;  %v5529_v43 = vld [vmem:[#allocation3 + $0x1a0] sm:$0xff]  ;;  %v5530_v41 = vld [vmem:[#allocation3 + $0x1a8] sm:$0xff] }
 0x5ae   : > { %5650 = vst [vmem:[#allocation3 + $0x168] sm:$0xff] %v5586_v60  ;;  %5651 = vst [vmem:[#allocation3 + $0x170] sm:$0xff] %v5587_v0  ;;  %v12593_v12 = vld [vmem:[#allocation7_spill] sm:$0xff]  ;;  %v12594_v45 = vld [vmem:[#allocation41_spill] sm:$0xff] }
 0x5af   : > { %5652 = vst [vmem:[#allocation3 + $0x178] sm:$0xff] %v5588_v22  ;;  %v5592_v49 = vadd.f32 %v12593_v12, %v5528_v29  ;;  %v5593_v23 = vadd.f32 %v5529_v43, %v12594_v45  ;;  %v12595_v56 = vld [vmem:[#allocation42_spill] sm:$0xff]  ;;  %v5532_v20 = vld [vmem:[#allocation3 + $0x1b8] sm:$0xff]  ;;  %v5533_v9 = vld [vmem:[#allocation3 + $0x1c0] sm:$0xff] }
 0x5b0   : > { %v5594_v16 = vadd.f32 %v5530_v41, %v12595_v56  ;;  %v5531_v35 = vld [vmem:[#allocation3 + $0x1b0] sm:$0xff]  ;;  %5653 = vst [vmem:[#allocation3 + $0x180] sm:$0xff] %v5589_v51  ;;  %5654 = vst [vmem:[#allocation3 + $0x188] sm:$0xff] %v5590_v53  ;;  %v12596_v39 = vld [vmem:[#allocation40_spill] sm:$0xff] }
 0x5b1   : > { %5655 = vst [vmem:[#allocation3 + $0x190] sm:$0xff] %v5591_v33  ;;  %v5595_v14 = vadd.f32 %v12596_v39, %v5531_v35  ;;  %v12597_v58 = vld [vmem:[#allocation43_spill] sm:$0xff]  ;;  %v5534_v50 = vld [vmem:[#allocation3 + $0x1c8] sm:$0xff]  ;;  %v5535_v3 = vld [vmem:[#allocation3 + $0x1d0] sm:$0xff] }
 0x5b2   : > { %v5596_v38 = vadd.f32 %v12597_v58, %v5532_v20  ;;  %v12598_v34 = vld [vmem:[#allocation47_spill] sm:$0xff]  ;;  %5656 = vst [vmem:[#allocation3 + $0x198] sm:$0xff] %v5592_v49  ;;  %5657 = vst [vmem:[#allocation3 + $0x1a0] sm:$0xff] %v5593_v23  ;;  %v12599_v1 = vld [vmem:[#allocation48_spill] sm:$0xff] }
 0x5b3   : > { %v5597_v63 = vadd.f32 %v5533_v9, %v12598_v34  ;;  %v5536_v24 = vld [vmem:[#allocation3 + $0x1d8] sm:$0xff]  ;;  %5658 = vst [vmem:[#allocation3 + $0x1a8] sm:$0xff] %v5594_v16  ;;  %v5598_v18 = vadd.f32 %v5534_v50, %v12599_v1  ;;  %v12600_v40 = vld [vmem:[#allocation44_spill] sm:$0xff]  ;;  %v12601_v47 = vld [vmem:[#allocation46_spill] sm:$0xff] }
 0x5b4   : > { %v5599_v48 = vadd.f32 %v12600_v40, %v5535_v3  ;;  %v5600_v17 = vadd.f32 %v12601_v47, %v5536_v24  ;;  %v5537_v52 = vld [vmem:[#allocation3 + $0x1e0] sm:$0xff]  ;;  %v5538_v11 = vld [vmem:[#allocation3 + $0x1e8] sm:$0xff]  ;;  %v5539_v15 = vld [vmem:[#allocation3 + $0x1f0] sm:$0xff]  ;;  %5659 = vst [vmem:[#allocation3 + $0x1b0] sm:$0xff] %v5595_v14 }
 0x5b5   : > { %5660 = vst [vmem:[#allocation3 + $0x1b8] sm:$0xff] %v5596_v38  ;;  %5661 = vst [vmem:[#allocation3 + $0x1c0] sm:$0xff] %v5597_v63  ;;  %v12602_v26 = vld [vmem:[#allocation10_spill] sm:$0xff]  ;;  %v12604_v37 = vld [vmem:[#allocation9_spill] sm:$0xff] }
 0x5b6   : > { %v5601_v46 = vadd.f32 %v5537_v52, %v12602_v26  ;;  %v12603_v4 = vld [vmem:[#allocation50_spill] sm:$0xff]  ;;  %v5603_v19 = vadd.f32 %v12604_v37, %v5539_v15  ;;  %v5540_v10 = vld [vmem:[#allocation3 + $0x1f8] sm:$0xff]  ;;  %5662 = vst [vmem:[#allocation3 + $0x1c8] sm:$0xff] %v5598_v18  ;;  %5663 = vst [vmem:[#allocation3 + $0x1d0] sm:$0xff] %v5599_v48 }
 0x5b7   : > { %v5602_v42 = vadd.f32 %v5538_v11, %v12603_v4  ;;  %5664 = vst [vmem:[#allocation3 + $0x1d8] sm:$0xff] %v5600_v17  ;;  %v12605_v59 = vld [vmem:[#allocation11_spill] sm:$0xff] }
 0x5b8   : > { %v5604_v25 = vadd.f32 %v12605_v59, %v5540_v10  ;;  %5665 = vst [vmem:[#allocation3 + $0x1e0] sm:$0xff] %v5601_v46  ;;  %5667 = vst [vmem:[#allocation3 + $0x1f0] sm:$0xff] %v5603_v19 }
 0x5b9   : > { %5666 = vst [vmem:[#allocation3 + $0x1e8] sm:$0xff] %v5602_v42 }
 0x5ba   : > { %5668 = vst [vmem:[#allocation3 + $0x1f8] sm:$0xff] %v5604_v25 }
 0x5bb PF: > { %p6654_p6 = scmp.ne.s32.totalorder %s8178_s25, 1 }
 0x5bd   : > { %5672 = sbr.rel (%p6654_p6) target bundleno = 1825 (0x721), region = 64 }
 0x5c4   : > { %v11313_v30 = vld [vmem:[#allocation3] sm:$0xff]  ;;  %v11315_v21 = vld [vmem:[#allocation3 + $0x8] sm:$0xff]  ;;  %v11317_v55 = vld [vmem:[#allocation3 + $0x10] sm:$0xff] }
 0x5c5   : > { %v5737_v2 = vadd.f32 %v11315_v21, %v11313_v30  ;;  %v11321_v5 = vld [vmem:[#allocation3 + $0x18] sm:$0xff]  ;;  %v11324_v61 = vld [vmem:[#allocation3 + $0x20] sm:$0xff]  ;;  %v11327_v54 = vld [vmem:[#allocation3 + $0x28] sm:$0xff] }
 0x5c6   : > { %v11330_v32 = vld [vmem:[#allocation3 + $0x30] sm:$0xff]  ;;  %v11333_v31 = vld [vmem:[#allocation3 + $0x38] sm:$0xff]  ;;  %v11336_v60 = vld [vmem:[#allocation3 + $0x40] sm:$0xff] }
 0x5c7   : > { %v5738_v28 = vadd.f32 %v5737_v2, %v11317_v55  ;;  %v11339_v22 = vld [vmem:[#allocation3 + $0x48] sm:$0xff]  ;;  %v11342_v13 = vld [vmem:[#allocation3 + $0x50] sm:$0xff]  ;;  %v11345_v51 = vld [vmem:[#allocation3 + $0x58] sm:$0xff] }
 0x5c8   : > { %v11348_v53 = vld [vmem:[#allocation3 + $0x60] sm:$0xff]  ;;  %v11351_v33 = vld [vmem:[#allocation3 + $0x68] sm:$0xff]  ;;  %v11354_v43 = vld [vmem:[#allocation3 + $0x70] sm:$0xff] }
 0x5c9   : > { %v5739_v7 = vadd.f32 %v5738_v28, %v11321_v5  ;;  %v11357_v12 = vld [vmem:[#allocation3 + $0x78] sm:$0xff]  ;;  %v11360_v45 = vld [vmem:[#allocation3 + $0x80] sm:$0xff]  ;;  %v11363_v56 = vld [vmem:[#allocation3 + $0x88] sm:$0xff] }
 0x5ca   : > { %v11366_v35 = vld [vmem:[#allocation3 + $0x90] sm:$0xff]  ;;  %v11369_v9 = vld [vmem:[#allocation3 + $0x98] sm:$0xff]  ;;  %v11372_v14 = vld [vmem:[#allocation3 + $0xa0] sm:$0xff] }
 0x5cb   : > { %v5740_v27 = vadd.f32 %v5739_v7, %v11324_v61  ;;  %v11375_v38 = vld [vmem:[#allocation3 + $0xa8] sm:$0xff]  ;;  %v11378_v63 = vld [vmem:[#allocation3 + $0xb0] sm:$0xff]  ;;  %v11381_v3 = vld [vmem:[#allocation3 + $0xb8] sm:$0xff] }
 0x5cc   : > { %v11384_v1 = vld [vmem:[#allocation3 + $0xc0] sm:$0xff]  ;;  %v11387_v40 = vld [vmem:[#allocation3 + $0xc8] sm:$0xff]  ;;  %v11390_v47 = vld [vmem:[#allocation3 + $0xd0] sm:$0xff] }
 0x5cd   : > { %v5741_v36 = vadd.f32 %v5740_v27, %v11327_v54  ;;  %v11393_v52 = vld [vmem:[#allocation3 + $0xd8] sm:$0xff]  ;;  %v11396_v15 = vld [vmem:[#allocation3 + $0xe0] sm:$0xff]  ;;  %v11399_v46 = vld [vmem:[#allocation3 + $0xe8] sm:$0xff] }
 0x5ce   : > { %v11402_v42 = vld [vmem:[#allocation3 + $0xf0] sm:$0xff]  ;;  %v11405_v19 = vld [vmem:[#allocation3 + $0xf8] sm:$0xff]  ;;  %v11408_v59 = vld [vmem:[#allocation3 + $0x100] sm:$0xff] }
 0x5cf   : > { %v5742_v62 = vadd.f32 %v5741_v36, %v11330_v32  ;;  %12606 = vst [vmem:[#allocation51_spill] sm:$0xff] %v11402_v42  ;;  %12607 = vst [vmem:[#allocation52_spill] sm:$0xff] %v11405_v19  ;;  %v11411_v2 = vld [vmem:[#allocation3 + $0x108] sm:$0xff]  ;;  %v11414_v7 = vld [vmem:[#allocation3 + $0x110] sm:$0xff] }
 0x5d0   : > { %12608 = vst [vmem:[#allocation53_spill] sm:$0xff] %v11408_v59  ;;  %12609 = vst [vmem:[#allocation54_spill] sm:$0xff] %v11411_v2  ;;  %v11417_v36 = vld [vmem:[#allocation3 + $0x118] sm:$0xff] }
 0x5d1   : > { %v5743_v0 = vadd.f32 %v5742_v62, %v11333_v31  ;;  %12610 = vst [vmem:[#allocation55_spill] sm:$0xff] %v11414_v7  ;;  %12611 = vst [vmem:[#allocation56_spill] sm:$0xff] %v11417_v36 }
 0x5d3   : > { %v5744_v6 = vadd.f32 %v5743_v0, %v11336_v60  ;;  %v11420_v0 = vld [vmem:[#allocation3 + $0x120] sm:$0xff] }
 0x5d4   : > { %12612 = vst [vmem:[#allocation57_spill] sm:$0xff] %v11420_v0 }
 0x5d5   : > { %v5745_v44 = vadd.f32 %v5744_v6, %v11339_v22 }
 0x5d7   : > { %v5746_v8 = vadd.f32 %v5745_v44, %v11342_v13  ;;  %v11423_v44 = vld [vmem:[#allocation3 + $0x128] sm:$0xff] }
 0x5d8   : > { %12613 = vst [vmem:[#allocation58_spill] sm:$0xff] %v11423_v44 }
 0x5d9   : > { %v5747_v57 = vadd.f32 %v5746_v8, %v11345_v51 }
 0x5db   : > { %v5748_v29 = vadd.f32 %v5747_v57, %v11348_v53  ;;  %v11426_v57 = vld [vmem:[#allocation3 + $0x130] sm:$0xff] }
 0x5dc   : > { %12614 = vst [vmem:[#allocation59_spill] sm:$0xff] %v11426_v57 }
 0x5dd   : > { %v5749_v41 = vadd.f32 %v5748_v29, %v11351_v33 }
 0x5df   : > { %v5750_v49 = vadd.f32 %v5749_v41, %v11354_v43  ;;  %v11429_v41 = vld [vmem:[#allocation3 + $0x138] sm:$0xff] }
 0x5e0   : > { %12615 = vst [vmem:[#allocation60_spill] sm:$0xff] %v11429_v41 }
 0x5e1   : > { %v5751_v23 = vadd.f32 %v5750_v49, %v11357_v12 }
 0x5e3   : > { %v5752_v16 = vadd.f32 %v5751_v23, %v11360_v45  ;;  %v11432_v23 = vld [vmem:[#allocation3 + $0x140] sm:$0xff] }
 0x5e4   : > { %12616 = vst [vmem:[#allocation61_spill] sm:$0xff] %v11432_v23 }
 0x5e5   : > { %v5753_v20 = vadd.f32 %v5752_v16, %v11363_v56 }
 0x5e7   : > { %v5754_v39 = vadd.f32 %v5753_v20, %v11366_v35  ;;  %v11435_v20 = vld [vmem:[#allocation3 + $0x148] sm:$0xff] }
 0x5e8   : > { %12617 = vst [vmem:[#allocation62_spill] sm:$0xff] %v11435_v20 }
 0x5e9   : > { %v5755_v58 = vadd.f32 %v5754_v39, %v11369_v9 }
 0x5eb   : > { %v5756_v34 = vadd.f32 %v5755_v58, %v11372_v14  ;;  %v11438_v58 = vld [vmem:[#allocation3 + $0x150] sm:$0xff] }
 0x5ec   : > { %12618 = vst [vmem:[#allocation63_spill] sm:$0xff] %v11438_v58 }
 0x5ed   : > { %v5757_v50 = vadd.f32 %v5756_v34, %v11375_v38 }
 0x5ef   : > { %v5758_v24 = vadd.f32 %v5757_v50, %v11378_v63  ;;  %v11441_v50 = vld [vmem:[#allocation3 + $0x158] sm:$0xff] }
 0x5f0   : > { %12619 = vst [vmem:[#allocation64_spill] sm:$0xff] %v11441_v50 }
 0x5f1   : > { %v5759_v18 = vadd.f32 %v5758_v24, %v11381_v3 }
 0x5f3   : > { %v5760_v48 = vadd.f32 %v5759_v18, %v11384_v1  ;;  %v11444_v18 = vld [vmem:[#allocation3 + $0x160] sm:$0xff] }
 0x5f4   : > { %12620 = vst [vmem:[#allocation65_spill] sm:$0xff] %v11444_v18 }
 0x5f5   : > { %v5761_v17 = vadd.f32 %v5760_v48, %v11387_v40 }
 0x5f7   : > { %v5762_v11 = vadd.f32 %v5761_v17, %v11390_v47  ;;  %v5718_v17 = vld [vmem:[#allocation3 + $0x168] sm:$0xff] }
 0x5f9   : > { %v5763_v26 = vadd.f32 %v5762_v11, %v11393_v52 }
 0x5fb   : > { %v5764_v4 = vadd.f32 %v5763_v26, %v11396_v15  ;;  %v5719_v26 = vld [vmem:[#allocation3 + $0x170] sm:$0xff] }
 0x5fd   : > { %v5765_v37 = vadd.f32 %v5764_v4, %v11399_v46 }
 0x5ff   : > { %v5766_v10 = vadd.f32 %v5765_v37, %v11402_v42  ;;  %v5720_v37 = vld [vmem:[#allocation3 + $0x178] sm:$0xff] }
 0x601   : > { %v5767_v25 = vadd.f32 %v5766_v10, %v11405_v19 }
 0x603   : > { %v5768_v28 = vadd.f32 %v5767_v25, %v11408_v59  ;;  %v5721_v25 = vld [vmem:[#allocation3 + $0x180] sm:$0xff] }
 0x605   : > { %v5769_v27 = vadd.f32 %v5768_v28, %v11411_v2 }
 0x607   : > { %v5770_v62 = vadd.f32 %v5769_v27, %v11414_v7  ;;  %v5722_v27 = vld [vmem:[#allocation3 + $0x188] sm:$0xff]  ;;  %v5736_v7 = vld [vmem:[#allocation3 + $0x1f8] sm:$0xff] }
 0x609   : > { %v5771_v6 = vadd.f32 %v5770_v62, %v11417_v36  ;;  %v5735_v36 = vld [vmem:[#allocation3 + $0x1f0] sm:$0xff] }
 0x60b   : > { %v5772_v8 = vadd.f32 %v5771_v6, %v11420_v0  ;;  %v5723_v6 = vld [vmem:[#allocation3 + $0x190] sm:$0xff]  ;;  %v5734_v0 = vld [vmem:[#allocation3 + $0x1e8] sm:$0xff] }
 0x60d   : > { %v5773_v29 = vadd.f32 %v5772_v8, %v11423_v44  ;;  %v5733_v44 = vld [vmem:[#allocation3 + $0x1e0] sm:$0xff] }
 0x60f   : > { %v5774_v49 = vadd.f32 %v5773_v29, %v11426_v57  ;;  %v5724_v29 = vld [vmem:[#allocation3 + $0x198] sm:$0xff] }
 0x610   : > { %v5732_v57 = vld [vmem:[#allocation3 + $0x1d8] sm:$0xff] }
 0x611   : > { %v5775_v16 = vadd.f32 %v5774_v49, %v11429_v41  ;;  %v5731_v41 = vld [vmem:[#allocation3 + $0x1d0] sm:$0xff] }
 0x613   : > { %v5776_v39 = vadd.f32 %v5775_v16, %v11432_v23  ;;  %v5725_v16 = vld [vmem:[#allocation3 + $0x1a0] sm:$0xff]  ;;  %v5730_v23 = vld [vmem:[#allocation3 + $0x1c8] sm:$0xff] }
 0x615   : > { %v5777_v34 = vadd.f32 %v5776_v39, %v11435_v20  ;;  %v5728_v20 = vld [vmem:[#allocation3 + $0x1b8] sm:$0xff] }
 0x617   : > { %v5778_v24 = vadd.f32 %v5777_v34, %v11438_v58  ;;  %v5726_v34 = vld [vmem:[#allocation3 + $0x1a8] sm:$0xff] }
 0x619   : > { %v5779_v48 = vadd.f32 %v5778_v24, %v11441_v50  ;;  %v5727_v24 = vld [vmem:[#allocation3 + $0x1b0] sm:$0xff] }
 0x61b   : > { %v5780_v11 = vadd.f32 %v5779_v48, %v11444_v18  ;;  %v5729_v18 = vld [vmem:[#allocation3 + $0x1c0] sm:$0xff] }
 0x61d   : > { %v5781_v4 = vadd.f32 %v5780_v11, %v5718_v17 }
 0x61f   : > { %v5782_v10 = vadd.f32 %v5781_v4, %v5719_v26 }
 0x621   : > { %v5783_v28 = vadd.f32 %v5782_v10, %v5720_v37 }
 0x623   : > { %v5784_v62 = vadd.f32 %v5783_v28, %v5721_v25 }
 0x625   : > { %v5785_v8 = vadd.f32 %v5784_v62, %v5722_v27 }
 0x627   : > { %v5786_v49 = vadd.f32 %v5785_v8, %v5723_v6 }
 0x629   : > { %v5787_v39 = vadd.f32 %v5786_v49, %v5724_v29 }
 0x62b   : > { %v5788_v58 = vadd.f32 %v5787_v39, %v5725_v16 }
 0x62d   : > { %v5789_v50 = vadd.f32 %v5788_v58, %v5726_v34 }
 0x62f   : > { %v5790_v48 = vadd.f32 %v5789_v50, %v5727_v24 }
 0x631   : > { %v5791_v11 = vadd.f32 %v5790_v48, %v5728_v20 }
 0x633   : > { %v5792_v4 = vadd.f32 %v5791_v11, %v5729_v18 }
 0x635   : > { %v5793_v10 = vadd.f32 %v5792_v4, %v5730_v23 }
 0x637   : > { %v5794_v28 = vadd.f32 %v5793_v10, %v5731_v41 }
 0x639   : > { %v5795_v62 = vadd.f32 %v5794_v28, %v5732_v57 }
 0x63b   : > { %v5796_v8 = vadd.f32 %v5795_v62, %v5733_v44 }
 0x63d   : > { %v5797_v49 = vadd.f32 %v5796_v8, %v5734_v0 }
 0x63f   : > { %v5798_v39 = vadd.f32 %v5797_v49, %v5735_v36 }
 0x641   : > { %v5799_v2 = vadd.f32 %v5798_v39, %v5736_v7 }
 0x643   : > { %v5800_v58 = vrot.slane %v5799_v2, 4 }
 0x645   : > { %v5801_v59 = vadd.f32 %v5800_v58, %v5799_v2 }
 0x647   : > { %v5802_v50 = vrot.slane %v5801_v59, 2 }
 0x649   : > { %v5803_v19 = vadd.f32 %v5802_v50, %v5801_v59 }
 0x64b   : > { %v5804_v48 = vrot.slane %v5803_v19, 1 }
 0x64d   : > { %v5805_v42 = vadd.f32 %v5804_v48, %v5803_v19 }
 0x64f   : > { %v11448_v11 = vmul.f32 0.001953125, %v5805_v42 }
 0x651   : > { %v11451_v4 = vsub.f32 %v5718_v17, %v11448_v11  ;;  %v11454_v10 = vsub.f32 %v5719_v26, %v11448_v11  ;;  %v11457_v28 = vsub.f32 %v5720_v37, %v11448_v11  ;;  %v11460_v62 = vsub.f32 %v5721_v25, %v11448_v11 }
 0x652   : > { %v11463_v2 = vsub.f32 %v5722_v27, %v11448_v11  ;;  %v11466_v59 = vsub.f32 %v5723_v6, %v11448_v11  ;;  %v11469_v42 = vsub.f32 %v5724_v29, %v11448_v11  ;;  %v11472_v19 = vsub.f32 %v5725_v16, %v11448_v11 }
 0x653   : > { %v11475_v17 = vsub.f32 %v5726_v34, %v11448_v11  ;;  %v11478_v26 = vsub.f32 %v5727_v24, %v11448_v11  ;;  %v11481_v37 = vsub.f32 %v5728_v20, %v11448_v11  ;;  %v11484_v25 = vsub.f32 %v5729_v18, %v11448_v11 }
 0x654   : > { %v11487_v27 = vsub.f32 %v5730_v23, %v11448_v11  ;;  %v11490_v6 = vsub.f32 %v5731_v41, %v11448_v11  ;;  %v11493_v29 = vsub.f32 %v5732_v57, %v11448_v11  ;;  %v11496_v16 = vsub.f32 %v5733_v44, %v11448_v11 }
 0x655   : > { %12621 = vst [vmem:[#allocation66_spill] sm:$0xff] %v11484_v25  ;;  %v11499_v34 = vsub.f32 %v5734_v0, %v11448_v11  ;;  %v11502_v20 = vsub.f32 %v5735_v36, %v11448_v11  ;;  %v11505_v18 = vsub.f32 %v5736_v7, %v11448_v11  ;;  %v11509_v23 = vsub.f32 %v11313_v30, %v11448_v11 }
 0x656   : > { %12622 = vst [vmem:[#allocation67_spill] sm:$0xff] %v11487_v27  ;;  %12623 = vst [vmem:[#allocation68_spill] sm:$0xff] %v11490_v6  ;;  %v11513_v57 = vsub.f32 %v11315_v21, %v11448_v11  ;;  %v11517_v44 = vsub.f32 %v11317_v55, %v11448_v11  ;;  %v11521_v0 = vsub.f32 %v11321_v5, %v11448_v11 }
 0x657   : > { %12624 = vst [vmem:[#allocation69_spill] sm:$0xff] %v11493_v29  ;;  %12625 = vst [vmem:[#allocation70_spill] sm:$0xff] %v11496_v16  ;;  %v5871_v7 = vmul.f32 %v11509_v23, %v11509_v23  ;;  %v11529_v30 = vsub.f32 %v11324_v61, %v11448_v11  ;;  %v11535_v55 = vsub.f32 %v11327_v54, %v11448_v11 }
 0x658   : > { %12626 = vst [vmem:[#allocation71_spill] sm:$0xff] %v11505_v18  ;;  %v5872_v36 = vmul.f32 %v11513_v57, %v11513_v57  ;;  %v5873_v21 = vmul.f32 %v11517_v44, %v11517_v44  ;;  %v5874_v5 = vmul.f32 %v11521_v0, %v11521_v0  ;;  %v11541_v24 = vsub.f32 %v11330_v32, %v11448_v11 }
 0x659   : > { %v5875_v8 = vmul.f32 %v11529_v30, %v11529_v30  ;;  %v11547_v49 = vsub.f32 %v11333_v31, %v11448_v11  ;;  %v5876_v54 = vmul.f32 %v11535_v55, %v11535_v55  ;;  %v11553_v58 = vsub.f32 %v11336_v60, %v11448_v11 }
 0x65a   : > { %v5935_v41 = vadd.f32 %v5872_v36, %v5871_v7  ;;  %v5877_v32 = vmul.f32 %v11541_v24, %v11541_v24  ;;  %v11559_v48 = vsub.f32 %v11339_v22, %v11448_v11  ;;  %v11565_v36 = vsub.f32 %v11342_v13, %v11448_v11 }
 0x65b   : > { %v5878_v31 = vmul.f32 %v11547_v49, %v11547_v49  ;;  %v5879_v60 = vmul.f32 %v11553_v58, %v11553_v58 }
 0x65c   : > { %v5936_v61 = vadd.f32 %v5935_v41, %v5873_v21  ;;  %v5880_v22 = vmul.f32 %v11559_v48, %v11559_v48  ;;  %v5881_v13 = vmul.f32 %v11565_v36, %v11565_v36 }
 0x65e   : > { %v5937_v39 = vadd.f32 %v5936_v61, %v5874_v5  ;;  %v11571_v5 = vsub.f32 %v11345_v51, %v11448_v11 }
 0x660   : > { %v5938_v50 = vadd.f32 %v5937_v39, %v5875_v8  ;;  %v11577_v8 = vsub.f32 %v11348_v53, %v11448_v11  ;;  %v5882_v51 = vmul.f32 %v11571_v5, %v11571_v5 }
 0x662   : > { %v5939_v7 = vadd.f32 %v5938_v50, %v5876_v54  ;;  %v11583_v54 = vsub.f32 %v11351_v33, %v11448_v11  ;;  %v5883_v53 = vmul.f32 %v11577_v8, %v11577_v8 }
 0x664   : > { %v5940_v21 = vadd.f32 %v5939_v7, %v5877_v32  ;;  %v11589_v32 = vsub.f32 %v11354_v43, %v11448_v11  ;;  %v5884_v33 = vmul.f32 %v11583_v54, %v11583_v54 }
 0x666   : > { %v5941_v41 = vadd.f32 %v5940_v21, %v5878_v31  ;;  %v11595_v31 = vsub.f32 %v11357_v12, %v11448_v11  ;;  %v5885_v43 = vmul.f32 %v11589_v32, %v11589_v32 }
 0x668   : > { %v5942_v61 = vadd.f32 %v5941_v41, %v5879_v60  ;;  %v11601_v60 = vsub.f32 %v11360_v45, %v11448_v11  ;;  %v5886_v12 = vmul.f32 %v11595_v31, %v11595_v31 }
 0x66a   : > { %v5943_v39 = vadd.f32 %v5942_v61, %v5880_v22  ;;  %v11607_v22 = vsub.f32 %v11363_v56, %v11448_v11  ;;  %v5887_v45 = vmul.f32 %v11601_v60, %v11601_v60 }
 0x66c   : > { %v5944_v50 = vadd.f32 %v5943_v39, %v5881_v13  ;;  %v11613_v13 = vsub.f32 %v11366_v35, %v11448_v11  ;;  %v5888_v56 = vmul.f32 %v11607_v22, %v11607_v22 }
 0x66e   : > { %v5945_v7 = vadd.f32 %v5944_v50, %v5882_v51  ;;  %v11619_v51 = vsub.f32 %v11369_v9, %v11448_v11  ;;  %v5889_v35 = vmul.f32 %v11613_v13, %v11613_v13 }
 0x670   : > { %v5946_v21 = vadd.f32 %v5945_v7, %v5883_v53  ;;  %v11625_v53 = vsub.f32 %v11372_v14, %v11448_v11  ;;  %v5890_v9 = vmul.f32 %v11619_v51, %v11619_v51 }
 0x672   : > { %v5947_v41 = vadd.f32 %v5946_v21, %v5884_v33  ;;  %v11631_v33 = vsub.f32 %v11375_v38, %v11448_v11  ;;  %v5891_v14 = vmul.f32 %v11625_v53, %v11625_v53 }
 0x674   : > { %v5948_v61 = vadd.f32 %v5947_v41, %v5885_v43  ;;  %v11637_v43 = vsub.f32 %v11378_v63, %v11448_v11  ;;  %v5892_v38 = vmul.f32 %v11631_v33, %v11631_v33 }
 0x676   : > { %v5949_v39 = vadd.f32 %v5948_v61, %v5886_v12  ;;  %v11643_v12 = vsub.f32 %v11381_v3, %v11448_v11  ;;  %v5893_v63 = vmul.f32 %v11637_v43, %v11637_v43 }
 0x678   : > { %v5950_v50 = vadd.f32 %v5949_v39, %v5887_v45  ;;  %v11649_v45 = vsub.f32 %v11384_v1, %v11448_v11  ;;  %v5894_v3 = vmul.f32 %v11643_v12, %v11643_v12 }
 0x67a   : > { %v5951_v7 = vadd.f32 %v5950_v50, %v5888_v56  ;;  %v11655_v56 = vsub.f32 %v11387_v40, %v11448_v11  ;;  %v5895_v1 = vmul.f32 %v11649_v45, %v11649_v45 }
 0x67c   : > { %v5952_v21 = vadd.f32 %v5951_v7, %v5889_v35  ;;  %v11661_v35 = vsub.f32 %v11390_v47, %v11448_v11  ;;  %v5896_v40 = vmul.f32 %v11655_v56, %v11655_v56 }
 0x67e   : > { %v5953_v41 = vadd.f32 %v5952_v21, %v5890_v9  ;;  %v11667_v9 = vsub.f32 %v11393_v52, %v11448_v11  ;;  %v5897_v47 = vmul.f32 %v11661_v35, %v11661_v35 }
 0x680   : > { %v5954_v61 = vadd.f32 %v5953_v41, %v5891_v14  ;;  %12627 = vst [vmem:[#allocation72_spill] sm:$0xff] %v11667_v9  ;;  %v11673_v14 = vsub.f32 %v11396_v15, %v11448_v11  ;;  %v5898_v52 = vmul.f32 %v11667_v9, %v11667_v9 }
 0x682   : > { %v5955_v39 = vadd.f32 %v5954_v61, %v5892_v38  ;;  %12628 = vst [vmem:[#allocation73_spill] sm:$0xff] %v11673_v14  ;;  %v11679_v38 = vsub.f32 %v11399_v46, %v11448_v11  ;;  %v5899_v15 = vmul.f32 %v11673_v14, %v11673_v14 }
 0x684   : > { %v5956_v50 = vadd.f32 %v5955_v39, %v5893_v63  ;;  %12629 = vst [vmem:[#allocation74_spill] sm:$0xff] %v11679_v38  ;;  %v12630_v63 = vld [vmem:[#allocation51_spill] sm:$0xff]  ;;  %v12632_v39 = vld [vmem:[#allocation52_spill] sm:$0xff]  ;;  %v5900_v46 = vmul.f32 %v11679_v38, %v11679_v38 }
 0x685   : > { %v11685_v61 = vsub.f32 %v12630_v63, %v11448_v11  ;;  %v12636_v63 = vld [vmem:[#allocation54_spill] sm:$0xff] }
 0x686   : > { %v5957_v7 = vadd.f32 %v5956_v50, %v5894_v3  ;;  %v11691_v50 = vsub.f32 %v12632_v39, %v11448_v11  ;;  %v11703_v14 = vsub.f32 %v12636_v63, %v11448_v11  ;;  %v12638_v39 = vld [vmem:[#allocation55_spill] sm:$0xff]  ;;  %v12642_v63 = vld [vmem:[#allocation57_spill] sm:$0xff] }
 0x687   : > { %12631 = vst [vmem:[#allocation51_spill] sm:$0xff] %v11685_v61  ;;  %v11709_v38 = vsub.f32 %v12638_v39, %v11448_v11  ;;  %v12644_v39 = vld [vmem:[#allocation58_spill] sm:$0xff] }
 0x688   : > { %v5958_v21 = vadd.f32 %v5957_v7, %v5895_v1  ;;  %12633 = vst [vmem:[#allocation52_spill] sm:$0xff] %v11691_v50  ;;  %v12634_v7 = vld [vmem:[#allocation53_spill] sm:$0xff]  ;;  %12637 = vst [vmem:[#allocation54_spill] sm:$0xff] %v11703_v14 }
 0x689   : > { %v11697_v9 = vsub.f32 %v12634_v7, %v11448_v11  ;;  %12639 = vst [vmem:[#allocation55_spill] sm:$0xff] %v11709_v38  ;;  %v12640_v7 = vld [vmem:[#allocation56_spill] sm:$0xff] }
 0x68a   : > { %v5959_v41 = vadd.f32 %v5958_v21, %v5896_v40  ;;  %v5901_v40 = vmul.f32 %v11685_v61, %v11685_v61  ;;  %v11715_v61 = vsub.f32 %v12640_v7, %v11448_v11  ;;  %v12646_v7 = vld [vmem:[#allocation59_spill] sm:$0xff] }
 0x68b   : > { %12635 = vst [vmem:[#allocation53_spill] sm:$0xff] %v11697_v9 }
 0x68c   : > { %v5960_v3 = vadd.f32 %v5959_v41, %v5897_v47  ;;  %v5902_v47 = vmul.f32 %v11691_v50, %v11691_v50  ;;  %12641 = vst [vmem:[#allocation56_spill] sm:$0xff] %v11715_v61  ;;  %v11721_v50 = vsub.f32 %v12642_v63, %v11448_v11  ;;  %v12648_v63 = vld [vmem:[#allocation60_spill] sm:$0xff] }
 0x68e   : > { %v5961_v1 = vadd.f32 %v5960_v3, %v5898_v52  ;;  %v5903_v52 = vmul.f32 %v11697_v9, %v11697_v9  ;;  %12643 = vst [vmem:[#allocation57_spill] sm:$0xff] %v11721_v50  ;;  %v11727_v9 = vsub.f32 %v12644_v39, %v11448_v11  ;;  %v12650_v39 = vld [vmem:[#allocation61_spill] sm:$0xff] }
 0x690   : > { %v5962_v21 = vadd.f32 %v5961_v1, %v5899_v15  ;;  %v5904_v15 = vmul.f32 %v11703_v14, %v11703_v14  ;;  %12645 = vst [vmem:[#allocation58_spill] sm:$0xff] %v11727_v9  ;;  %v11733_v14 = vsub.f32 %v12646_v7, %v11448_v11  ;;  %v12651_v7 = vld [vmem:[#allocation62_spill] sm:$0xff] }
 0x692   : > { %v5963_v41 = vadd.f32 %v5962_v21, %v5900_v46  ;;  %v5905_v46 = vmul.f32 %v11709_v38, %v11709_v38  ;;  %12647 = vst [vmem:[#allocation59_spill] sm:$0xff] %v11733_v14  ;;  %v11739_v38 = vsub.f32 %v12648_v63, %v11448_v11  ;;  %v12653_v63 = vld [vmem:[#allocation63_spill] sm:$0xff] }
 0x694   : > { %v5964_v3 = vadd.f32 %v5963_v41, %v5901_v40  ;;  %v5906_v40 = vmul.f32 %v11715_v61, %v11715_v61  ;;  %12649 = vst [vmem:[#allocation60_spill] sm:$0xff] %v11739_v38  ;;  %v11745_v61 = vsub.f32 %v12650_v39, %v11448_v11  ;;  %v12654_v39 = vld [vmem:[#allocation64_spill] sm:$0xff] }
 0x696   : > { %v5965_v1 = vadd.f32 %v5964_v3, %v5902_v47  ;;  %v5907_v47 = vmul.f32 %v11721_v50, %v11721_v50  ;;  %v11751_v50 = vsub.f32 %v12651_v7, %v11448_v11  ;;  %v12655_v7 = vld [vmem:[#allocation65_spill] sm:$0xff] }
 0x698   : > { %v5966_v21 = vadd.f32 %v5965_v1, %v5903_v52  ;;  %v5908_v52 = vmul.f32 %v11727_v9, %v11727_v9  ;;  %12652 = vst [vmem:[#allocation61_spill] sm:$0xff] %v11751_v50  ;;  %v11757_v9 = vsub.f32 %v12653_v63, %v11448_v11 }
 0x69a   : > { %v5967_v41 = vadd.f32 %v5966_v21, %v5904_v15  ;;  %v5909_v15 = vmul.f32 %v11733_v14, %v11733_v14  ;;  %v11763_v14 = vsub.f32 %v12654_v39, %v11448_v11 }
 0x69c   : > { %v5968_v3 = vadd.f32 %v5967_v41, %v5905_v46  ;;  %v5910_v46 = vmul.f32 %v11739_v38, %v11739_v38  ;;  %v11769_v38 = vsub.f32 %v12655_v7, %v11448_v11  ;;  %v5914_v63 = vmul.f32 %v11763_v14, %v11763_v14 }
 0x69d   : > { %v5917_v11 = vmul.f32 %v11454_v10, %v11454_v10  ;;  %v5918_v7 = vmul.f32 %v11457_v28, %v11457_v28 }
 0x69e   : > { %v5969_v1 = vadd.f32 %v5968_v3, %v5906_v40  ;;  %v5911_v40 = vmul.f32 %v11745_v61, %v11745_v61 }
 0x6a0   : > { %v5970_v21 = vadd.f32 %v5969_v1, %v5907_v47  ;;  %v5912_v47 = vmul.f32 %v11751_v50, %v11751_v50  ;;  %v5916_v50 = vmul.f32 %v11451_v4, %v11451_v4 }
 0x6a2   : > { %v5971_v41 = vadd.f32 %v5970_v21, %v5908_v52  ;;  %v5913_v52 = vmul.f32 %v11757_v9, %v11757_v9 }
 0x6a4   : > { %v5972_v3 = vadd.f32 %v5971_v41, %v5909_v15  ;;  %v5915_v41 = vmul.f32 %v11769_v38, %v11769_v38 }
 0x6a6   : > { %v5973_v1 = vadd.f32 %v5972_v3, %v5910_v46 }
 0x6a8   : > { %v5974_v21 = vadd.f32 %v5973_v1, %v5911_v40  ;;  %v5919_v1 = vmul.f32 %v11460_v62, %v11460_v62 }
 0x6aa   : > { %v5975_v15 = vadd.f32 %v5974_v21, %v5912_v47  ;;  %v5920_v21 = vmul.f32 %v11463_v2, %v11463_v2 }
 0x6ac   : > { %v5976_v39 = vadd.f32 %v5975_v15, %v5913_v52  ;;  %v5921_v15 = vmul.f32 %v11466_v59, %v11466_v59 }
 0x6ae   : > { %v5977_v46 = vadd.f32 %v5976_v39, %v5914_v63  ;;  %v5922_v39 = vmul.f32 %v11469_v42, %v11469_v42 }
 0x6b0   : > { %v5978_v3 = vadd.f32 %v5977_v46, %v5915_v41  ;;  %v5923_v46 = vmul.f32 %v11472_v19, %v11472_v19 }
 0x6b2   : > { %v5979_v40 = vadd.f32 %v5978_v3, %v5916_v50  ;;  %v5924_v3 = vmul.f32 %v11475_v17, %v11475_v17 }
 0x6b4   : > { %v5980_v47 = vadd.f32 %v5979_v40, %v5917_v11  ;;  %v5925_v40 = vmul.f32 %v11478_v26, %v11478_v26 }
 0x6b6   : > { %v5981_v52 = vadd.f32 %v5980_v47, %v5918_v7  ;;  %v5926_v47 = vmul.f32 %v11481_v37, %v11481_v37 }
 0x6b8   : > { %v5982_v63 = vadd.f32 %v5981_v52, %v5919_v1  ;;  %v5927_v52 = vmul.f32 %v11484_v25, %v11484_v25 }
 0x6ba   : > { %v5983_v41 = vadd.f32 %v5982_v63, %v5920_v21  ;;  %v5928_v63 = vmul.f32 %v11487_v27, %v11487_v27 }
 0x6bc   : > { %v5984_v50 = vadd.f32 %v5983_v41, %v5921_v15  ;;  %v5929_v41 = vmul.f32 %v11490_v6, %v11490_v6 }
 0x6be   : > { %v5985_v11 = vadd.f32 %v5984_v50, %v5922_v39  ;;  %v5930_v50 = vmul.f32 %v11493_v29, %v11493_v29 }
 0x6c0   : > { %v5986_v7 = vadd.f32 %v5985_v11, %v5923_v46  ;;  %v5931_v11 = vmul.f32 %v11496_v16, %v11496_v16 }
 0x6c2   : > { %v5987_v1 = vadd.f32 %v5986_v7, %v5924_v3  ;;  %v5932_v7 = vmul.f32 %v11499_v34, %v11499_v34 }
 0x6c4   : > { %v5988_v21 = vadd.f32 %v5987_v1, %v5925_v40  ;;  %v5933_v1 = vmul.f32 %v11502_v20, %v11502_v20 }
 0x6c6   : > { %v5989_v15 = vadd.f32 %v5988_v21, %v5926_v47  ;;  %v5934_v21 = vmul.f32 %v11505_v18, %v11505_v18 }
 0x6c8   : > { %v5990_v39 = vadd.f32 %v5989_v15, %v5927_v52 }
 0x6ca   : > { %v5991_v46 = vadd.f32 %v5990_v39, %v5928_v63 }
 0x6cc   : > { %v5992_v3 = vadd.f32 %v5991_v46, %v5929_v41 }
 0x6ce   : > { %v5993_v40 = vadd.f32 %v5992_v3, %v5930_v50  ;;  %v6007_v50 = vld [vmem:[%s12219_s5] sm:$0x1] }
 0x6d0   : > { %v5994_v47 = vadd.f32 %v5993_v40, %v5931_v11  ;;  %v12656_v40 = vld [vmem:[#allocation49_spill] sm:$0xff] }
 0x6d1   : > { %v12657_v18 = vsub.s32 0, %v12656_v40 }
 0x6d2   : > { %v5995_v52 = vadd.f32 %v5994_v47, %v5932_v7 }
 0x6d4   : > { %v5996_v15 = vadd.f32 %v5995_v52, %v5933_v1 }
 0x6d6   : > { %v5997_v6 = vadd.f32 %v5996_v15, %v5934_v21 }
 0x6d8   : > { %v5998_v29 = vrot.slane %v5997_v6, 4 }
 0x6da   : > { %v5999_v63 = vadd.f32 %v5998_v29, %v5997_v6  ;;  %v11825_v6 = vld [vmem:[%s12220_s6] ss:$0 sm:$0xff] }
 0x6dc   : > { %v6000_v39 = vrot.slane %v5999_v63, 2 }
 0x6de   : > { %v6001_v27 = vadd.f32 %v6000_v39, %v5999_v63 }
 0x6e0   : > { %v6002_v16 = vrot.slane %v6001_v27, 1 }
 0x6e2   : > { %v6003_v41 = vadd.f32 %v6002_v16, %v6001_v27 }
 0x6e4   : > { %v6004_v46 = vmul.f32 0.001953125, %v6003_v41 }
 0x6e6   : > { %v6005_v25 = vadd.f32 1e-05, %v6004_v46 }
 0x6e8   : > { %8121 = vrsqrt.f32 %v6005_v25 }
 0x6f2   : > { %v8122_v11 = vpop.eup %8121 }
 0x6f3   : > { %v6008_v3 = vmul.f32 %v8122_v11, %v6007_v50 }
 0x6f5   : > { %v11820_v7 = vrot.slane %v6008_v3, %v12657_v18 }
 0x6f7   : > { %v6013_v27 = vmul.f32 %v11820_v7, %v11509_v23  ;;  %v6014_v25 = vmul.f32 %v11820_v7, %v11513_v57  ;;  %v6015_v29 = vmul.f32 %v11820_v7, %v11517_v44  ;;  %v6016_v16 = vmul.f32 %v11820_v7, %v11521_v0 }
 0x6f8   : > { %v6017_v18 = vmul.f32 %v11820_v7, %v11529_v30  ;;  %v6018_v1 = vmul.f32 %v11820_v7, %v11535_v55  ;;  %v6019_v47 = vmul.f32 %v11820_v7, %v11541_v24  ;;  %v6020_v23 = vmul.f32 %v11820_v7, %v11547_v49 }
 0x6f9   : > { %v6084_v57 = vadd.f32 %v11825_v6, %v6013_v27  ;;  %v6085_v21 = vadd.f32 %v11825_v6, %v6014_v25  ;;  %v6086_v44 = vadd.f32 %v11825_v6, %v6015_v29  ;;  %v6087_v0 = vadd.f32 %v11825_v6, %v6016_v16 }
 0x6fa   : > { %v6088_v52 = vadd.f32 %v11825_v6, %v6017_v18  ;;  %v6089_v30 = vadd.f32 %v11825_v6, %v6018_v1  ;;  %v6090_v55 = vadd.f32 %v11825_v6, %v6019_v47  ;;  %v6091_v15 = vadd.f32 %v11825_v6, %v6020_v23 }
 0x6fb   : > { %6148 = vst [vmem:[%s12221_s7] sm:$0xff] %v6084_v57  ;;  %6149 = vst [vmem:[%s12221_s7 + $0x8] sm:$0xff] %v6085_v21  ;;  %v6021_v24 = vmul.f32 %v11820_v7, %v11553_v58  ;;  %v6022_v49 = vmul.f32 %v11820_v7, %v11559_v48  ;;  %v6023_v63 = vmul.f32 %v11820_v7, %v11565_v36  ;;  %v12658_v21 = vld [vmem:[#allocation72_spill] sm:$0xff] }
 0x6fc   : > { %6150 = vst [vmem:[%s12221_s7 + $0x10] sm:$0xff] %v6086_v44  ;;  %6151 = vst [vmem:[%s12221_s7 + $0x18] sm:$0xff] %v6087_v0  ;;  %v6024_v39 = vmul.f32 %v11820_v7, %v11571_v5  ;;  %v6025_v58 = vmul.f32 %v11820_v7, %v11577_v8  ;;  %v6026_v48 = vmul.f32 %v11820_v7, %v11583_v54 }
 0x6fd   : > { %6152 = vst [vmem:[%s12221_s7 + $0x20] sm:$0xff] %v6088_v52  ;;  %6153 = vst [vmem:[%s12221_s7 + $0x28] sm:$0xff] %v6089_v30  ;;  %v6027_v36 = vmul.f32 %v11820_v7, %v11589_v32  ;;  %v6028_v5 = vmul.f32 %v11820_v7, %v11595_v31  ;;  %v6092_v41 = vadd.f32 %v11825_v6, %v6021_v24  ;;  %v12661_v52 = vld [vmem:[#allocation51_spill] sm:$0xff] }
 0x6fe   : > { %6154 = vst [vmem:[%s12221_s7 + $0x30] sm:$0xff] %v6090_v55  ;;  %6155 = vst [vmem:[%s12221_s7 + $0x38] sm:$0xff] %v6091_v15  ;;  %v6093_v46 = vadd.f32 %v11825_v6, %v6022_v49  ;;  %v6094_v50 = vadd.f32 %v11825_v6, %v6023_v63  ;;  %v6095_v11 = vadd.f32 %v11825_v6, %v6024_v39  ;;  %v12662_v55 = vld [vmem:[#allocation52_spill] sm:$0xff] }
 0x6ff   : > { %v6096_v3 = vadd.f32 %v11825_v6, %v6025_v58  ;;  %v6097_v8 = vadd.f32 %v11825_v6, %v6026_v48  ;;  %v6098_v54 = vadd.f32 %v11825_v6, %v6027_v36  ;;  %v6099_v40 = vadd.f32 %v11825_v6, %v6028_v5  ;;  %6156 = vst [vmem:[%s12221_s7 + $0x40] sm:$0xff] %v6092_v41  ;;  %v12663_v41 = vld [vmem:[#allocation53_spill] sm:$0xff] }
 0x700   : > { %6157 = vst [vmem:[%s12221_s7 + $0x48] sm:$0xff] %v6093_v46  ;;  %6158 = vst [vmem:[%s12221_s7 + $0x50] sm:$0xff] %v6094_v50  ;;  %v6029_v32 = vmul.f32 %v11820_v7, %v11601_v60  ;;  %v6030_v31 = vmul.f32 %v11820_v7, %v11607_v22  ;;  %v6031_v27 = vmul.f32 %v11820_v7, %v11613_v13  ;;  %v12664_v50 = vld [vmem:[#allocation54_spill] sm:$0xff] }
 0x701   : > { %6159 = vst [vmem:[%s12221_s7 + $0x58] sm:$0xff] %v6095_v11  ;;  %v6032_v25 = vmul.f32 %v11820_v7, %v11619_v51  ;;  %6160 = vst [vmem:[%s12221_s7 + $0x60] sm:$0xff] %v6096_v3  ;;  %v6033_v60 = vmul.f32 %v11820_v7, %v11625_v53  ;;  %v6034_v22 = vmul.f32 %v11820_v7, %v11631_v33  ;;  %v12665_v3 = vld [vmem:[#allocation55_spill] sm:$0xff] }
 0x702   : > { %6161 = vst [vmem:[%s12221_s7 + $0x68] sm:$0xff] %v6097_v8  ;;  %6162 = vst [vmem:[%s12221_s7 + $0x70] sm:$0xff] %v6098_v54  ;;  %v6035_v13 = vmul.f32 %v11820_v7, %v11637_v43  ;;  %v6036_v51 = vmul.f32 %v11820_v7, %v11643_v12  ;;  %v6100_v29 = vadd.f32 %v11825_v6, %v6029_v32  ;;  %v12666_v54 = vld [vmem:[#allocation56_spill] sm:$0xff]  ;;  %v12667_v32 = vld [vmem:[#allocation57_spill] sm:$0xff] }
 0x703   : > { %6163 = vst [vmem:[%s12221_s7 + $0x78] sm:$0xff] %v6099_v40  ;;  %v6101_v16 = vadd.f32 %v11825_v6, %v6030_v31  ;;  %v6102_v18 = vadd.f32 %v11825_v6, %v6031_v27  ;;  %v6103_v1 = vadd.f32 %v11825_v6, %v6032_v25  ;;  %v6104_v47 = vadd.f32 %v11825_v6, %v6033_v60  ;;  %v12668_v27 = vld [vmem:[#allocation58_spill] sm:$0xff]  ;;  %v12669_v60 = vld [vmem:[#allocation59_spill] sm:$0xff] }
 0x704   : > { %v6105_v53 = vadd.f32 %v11825_v6, %v6034_v22  ;;  %v6106_v33 = vadd.f32 %v11825_v6, %v6035_v13  ;;  %v6107_v23 = vadd.f32 %v11825_v6, %v6036_v51  ;;  %6164 = vst [vmem:[%s12221_s7 + $0x80] sm:$0xff] %v6100_v29  ;;  %v6037_v43 = vmul.f32 %v11820_v7, %v11649_v45  ;;  %v12659_v45 = vld [vmem:[#allocation73_spill] sm:$0xff]  ;;  %v12670_v13 = vld [vmem:[#allocation60_spill] sm:$0xff] }
 0x705   : > { %6165 = vst [vmem:[%s12221_s7 + $0x88] sm:$0xff] %v6101_v16  ;;  %6166 = vst [vmem:[%s12221_s7 + $0x90] sm:$0xff] %v6102_v18  ;;  %v6038_v12 = vmul.f32 %v11820_v7, %v11655_v56  ;;  %v6039_v57 = vmul.f32 %v11820_v7, %v11661_v35  ;;  %v6040_v44 = vmul.f32 %v11820_v7, %v12658_v21  ;;  %v12660_v35 = vld [vmem:[#allocation74_spill] sm:$0xff] }
 0x706   : > { %6167 = vst [vmem:[%s12221_s7 + $0x98] sm:$0xff] %v6103_v1  ;;  %6168 = vst [vmem:[%s12221_s7 + $0xa0] sm:$0xff] %v6104_v47  ;;  %v6041_v56 = vmul.f32 %v11820_v7, %v12659_v45  ;;  %v6042_v0 = vmul.f32 %v11820_v7, %v12660_v35  ;;  %v6043_v30 = vmul.f32 %v11820_v7, %v12661_v52 }
 0x707   : > { %6169 = vst [vmem:[%s12221_s7 + $0xa8] sm:$0xff] %v6105_v53  ;;  %6170 = vst [vmem:[%s12221_s7 + $0xb0] sm:$0xff] %v6106_v33  ;;  %v6044_v15 = vmul.f32 %v11820_v7, %v12662_v55  ;;  %v6108_v24 = vadd.f32 %v11825_v6, %v6037_v43  ;;  %v6109_v49 = vadd.f32 %v11825_v6, %v6038_v12  ;;  %v12671_v12 = vld [vmem:[#allocation61_spill] sm:$0xff] }
 0x708   : > { %6171 = vst [vmem:[%s12221_s7 + $0xb8] sm:$0xff] %v6107_v23  ;;  %v6110_v63 = vadd.f32 %v11825_v6, %v6039_v57  ;;  %v6111_v39 = vadd.f32 %v11825_v6, %v6040_v44  ;;  %v6112_v58 = vadd.f32 %v11825_v6, %v6041_v56  ;;  %v6113_v48 = vadd.f32 %v11825_v6, %v6042_v0 }
 0x709   : > { %v6114_v36 = vadd.f32 %v11825_v6, %v6043_v30  ;;  %v6115_v5 = vadd.f32 %v11825_v6, %v6044_v15  ;;  %6172 = vst [vmem:[%s12221_s7 + $0xc0] sm:$0xff] %v6108_v24  ;;  %6173 = vst [vmem:[%s12221_s7 + $0xc8] sm:$0xff] %v6109_v49  ;;  %v6045_v46 = vmul.f32 %v11820_v7, %v12663_v41 }
 0x70a   : > { %6174 = vst [vmem:[%s12221_s7 + $0xd0] sm:$0xff] %v6110_v63  ;;  %6175 = vst [vmem:[%s12221_s7 + $0xd8] sm:$0xff] %v6111_v39  ;;  %v6046_v11 = vmul.f32 %v11820_v7, %v12664_v50  ;;  %v6047_v8 = vmul.f32 %v11820_v7, %v12665_v3  ;;  %v6048_v40 = vmul.f32 %v11820_v7, %v12666_v54 }
 0x70b   : > { %6176 = vst [vmem:[%s12221_s7 + $0xe0] sm:$0xff] %v6112_v58  ;;  %6177 = vst [vmem:[%s12221_s7 + $0xe8] sm:$0xff] %v6113_v48  ;;  %v6049_v31 = vmul.f32 %v11820_v7, %v12667_v32  ;;  %v6050_v25 = vmul.f32 %v11820_v7, %v12668_v27  ;;  %v6051_v22 = vmul.f32 %v11820_v7, %v12669_v60 }
 0x70c   : > { %6178 = vst [vmem:[%s12221_s7 + $0xf0] sm:$0xff] %v6114_v36  ;;  %6179 = vst [vmem:[%s12221_s7 + $0xf8] sm:$0xff] %v6115_v5  ;;  %v6052_v51 = vmul.f32 %v11820_v7, %v12670_v13  ;;  %v6116_v29 = vadd.f32 %v11825_v6, %v6045_v46  ;;  %v6117_v16 = vadd.f32 %v11825_v6, %v6046_v11  ;;  %v12673_v5 = vld [vmem:[#allocation67_spill] sm:$0xff]  ;;  %v12674_v46 = vld [vmem:[#allocation68_spill] sm:$0xff] }
 0x70d   : > { %v6118_v18 = vadd.f32 %v11825_v6, %v6047_v8  ;;  %v6119_v1 = vadd.f32 %v11825_v6, %v6048_v40  ;;  %v6120_v47 = vadd.f32 %v11825_v6, %v6049_v31  ;;  %v6121_v53 = vadd.f32 %v11825_v6, %v6050_v25  ;;  %v12675_v11 = vld [vmem:[#allocation69_spill] sm:$0xff]  ;;  %v12676_v8 = vld [vmem:[#allocation70_spill] sm:$0xff]  ;;  %v12677_v31 = vld [vmem:[#allocation71_spill] sm:$0xff] }
 0x70e   : > { %v6122_v33 = vadd.f32 %v11825_v6, %v6051_v22  ;;  %v6123_v23 = vadd.f32 %v11825_v6, %v6052_v51  ;;  %6180 = vst [vmem:[%s12221_s7 + $0x100] sm:$0xff] %v6116_v29  ;;  %6181 = vst [vmem:[%s12221_s7 + $0x108] sm:$0xff] %v6117_v16  ;;  %v6053_v43 = vmul.f32 %v11820_v7, %v11745_v61 }
 0x70f   : > { %6182 = vst [vmem:[%s12221_s7 + $0x110] sm:$0xff] %v6118_v18  ;;  %6183 = vst [vmem:[%s12221_s7 + $0x118] sm:$0xff] %v6119_v1  ;;  %v6054_v57 = vmul.f32 %v11820_v7, %v12671_v12  ;;  %v6055_v21 = vmul.f32 %v11820_v7, %v11757_v9  ;;  %v6056_v44 = vmul.f32 %v11820_v7, %v11763_v14 }
 0x710   : > { %6184 = vst [vmem:[%s12221_s7 + $0x120] sm:$0xff] %v6120_v47  ;;  %6185 = vst [vmem:[%s12221_s7 + $0x128] sm:$0xff] %v6121_v53  ;;  %v6057_v9 = vmul.f32 %v11820_v7, %v11769_v38  ;;  %v6058_v14 = vmul.f32 %v11820_v7, %v11451_v4  ;;  %v6059_v61 = vmul.f32 %v11820_v7, %v11454_v10 }
 0x711   : > { %6186 = vst [vmem:[%s12221_s7 + $0x130] sm:$0xff] %v6122_v33  ;;  %6187 = vst [vmem:[%s12221_s7 + $0x138] sm:$0xff] %v6123_v23  ;;  %v6060_v45 = vmul.f32 %v11820_v7, %v11457_v28  ;;  %v6124_v56 = vadd.f32 %v11825_v6, %v6053_v43  ;;  %v6125_v35 = vadd.f32 %v11825_v6, %v6054_v57 }
 0x712   : > { %v6126_v0 = vadd.f32 %v11825_v6, %v6055_v21  ;;  %v6127_v52 = vadd.f32 %v11825_v6, %v6056_v44  ;;  %v6128_v30 = vadd.f32 %v11825_v6, %v6057_v9  ;;  %v6129_v38 = vadd.f32 %v11825_v6, %v6058_v14 }
 0x713   : > { %v6130_v4 = vadd.f32 %v11825_v6, %v6059_v61  ;;  %v6131_v55 = vadd.f32 %v11825_v6, %v6060_v45  ;;  %6188 = vst [vmem:[%s12221_s7 + $0x140] sm:$0xff] %v6124_v56  ;;  %6189 = vst [vmem:[%s12221_s7 + $0x148] sm:$0xff] %v6125_v35  ;;  %v6061_v10 = vmul.f32 %v11820_v7, %v11460_v62 }
 0x714   : > { %6190 = vst [vmem:[%s12221_s7 + $0x150] sm:$0xff] %v6126_v0  ;;  %6191 = vst [vmem:[%s12221_s7 + $0x158] sm:$0xff] %v6127_v52  ;;  %v6062_v28 = vmul.f32 %v11820_v7, %v11463_v2  ;;  %v6063_v15 = vmul.f32 %v11820_v7, %v11466_v59  ;;  %v6064_v24 = vmul.f32 %v11820_v7, %v11469_v42 }
 0x715   : > { %6192 = vst [vmem:[%s12221_s7 + $0x160] sm:$0xff] %v6128_v30  ;;  %6193 = vst [vmem:[%s12221_s7 + $0x168] sm:$0xff] %v6129_v38  ;;  %v6065_v62 = vmul.f32 %v11820_v7, %v11472_v19  ;;  %v6066_v2 = vmul.f32 %v11820_v7, %v11475_v17  ;;  %v6067_v59 = vmul.f32 %v11820_v7, %v11478_v26  ;;  %v12672_v26 = vld [vmem:[#allocation66_spill] sm:$0xff] }
 0x716   : > { %6194 = vst [vmem:[%s12221_s7 + $0x170] sm:$0xff] %v6130_v4  ;;  %6195 = vst [vmem:[%s12221_s7 + $0x178] sm:$0xff] %v6131_v55  ;;  %v6068_v42 = vmul.f32 %v11820_v7, %v11481_v37  ;;  %v6132_v49 = vadd.f32 %v11825_v6, %v6061_v10  ;;  %v6133_v63 = vadd.f32 %v11825_v6, %v6062_v28 }
 0x717   : > { %v6134_v39 = vadd.f32 %v11825_v6, %v6063_v15  ;;  %v6135_v58 = vadd.f32 %v11825_v6, %v6064_v24  ;;  %v6136_v48 = vadd.f32 %v11825_v6, %v6065_v62  ;;  %v6137_v19 = vadd.f32 %v11825_v6, %v6066_v2 }
 0x718   : > { %v6138_v17 = vadd.f32 %v11825_v6, %v6067_v59  ;;  %v6139_v36 = vadd.f32 %v11825_v6, %v6068_v42  ;;  %6196 = vst [vmem:[%s12221_s7 + $0x180] sm:$0xff] %v6132_v49  ;;  %6197 = vst [vmem:[%s12221_s7 + $0x188] sm:$0xff] %v6133_v63  ;;  %v6069_v37 = vmul.f32 %v11820_v7, %v12672_v26 }
 0x719   : > { %6198 = vst [vmem:[%s12221_s7 + $0x190] sm:$0xff] %v6134_v39  ;;  %6199 = vst [vmem:[%s12221_s7 + $0x198] sm:$0xff] %v6135_v58  ;;  %v6070_v41 = vmul.f32 %v11820_v7, %v12673_v5  ;;  %v6071_v50 = vmul.f32 %v11820_v7, %v12674_v46  ;;  %v6072_v3 = vmul.f32 %v11820_v7, %v12675_v11 }
 0x71a   : > { %6200 = vst [vmem:[%s12221_s7 + $0x1a0] sm:$0xff] %v6136_v48  ;;  %6201 = vst [vmem:[%s12221_s7 + $0x1a8] sm:$0xff] %v6137_v19  ;;  %v6073_v54 = vmul.f32 %v11820_v7, %v12676_v8  ;;  %v6074_v40 = vmul.f32 %v11820_v7, %v11499_v34  ;;  %v6075_v32 = vmul.f32 %v11820_v7, %v11502_v20 }
 0x71b   : > { %6202 = vst [vmem:[%s12221_s7 + $0x1b0] sm:$0xff] %v6138_v17  ;;  %6203 = vst [vmem:[%s12221_s7 + $0x1b8] sm:$0xff] %v6139_v36  ;;  %v6076_v27 = vmul.f32 %v11820_v7, %v12677_v31  ;;  %v6140_v25 = vadd.f32 %v11825_v6, %v6069_v37  ;;  %v6141_v60 = vadd.f32 %v11825_v6, %v6070_v41 }
 0x71c   : > { %v6142_v22 = vadd.f32 %v11825_v6, %v6071_v50  ;;  %v6143_v13 = vadd.f32 %v11825_v6, %v6072_v3  ;;  %v6144_v51 = vadd.f32 %v11825_v6, %v6073_v54  ;;  %v6145_v29 = vadd.f32 %v11825_v6, %v6074_v40 }
 0x71d   : > { %v6146_v34 = vadd.f32 %v11825_v6, %v6075_v32  ;;  %v6147_v16 = vadd.f32 %v11825_v6, %v6076_v27  ;;  %6204 = vst [vmem:[%s12221_s7 + $0x1c0] sm:$0xff] %v6140_v25  ;;  %6205 = vst [vmem:[%s12221_s7 + $0x1c8] sm:$0xff] %v6141_v60 }
 0x71e   : > { %6206 = vst [vmem:[%s12221_s7 + $0x1d0] sm:$0xff] %v6142_v22  ;;  %6207 = vst [vmem:[%s12221_s7 + $0x1d8] sm:$0xff] %v6143_v13 }
 0x71f   : > { %6208 = vst [vmem:[%s12221_s7 + $0x1e0] sm:$0xff] %v6144_v51  ;;  %6209 = vst [vmem:[%s12221_s7 + $0x1e8] sm:$0xff] %v6145_v29 }
 0x720   : > { %6210 = vst [vmem:[%s12221_s7 + $0x1f0] sm:$0xff] %v6146_v34  ;;  %6211 = vst [vmem:[%s12221_s7 + $0x1f8] sm:$0xff] %v6147_v16 }
 0x721 PF: > { %s17_s24 = sadd.s32 1, %s8129_s24  }
 0x722   : > { %p14_p7 = scmp.ge.s32.totalorder %s17_s24, 4  }
 0x724   :  { %16 = sbr.rel (!%p14_p7) target bundleno = 1 (0x1), region = 113 }

</bundles_post_ra>
